<compile_context>
chip_gen: v7x
topology: tpu7x:2x2x1
jax: 0.10.0
libtpu: 0.0.40
codegen_flags: <defaults>
</compile_context>

<pallas_src>
import functools

import numpy as np

import jax
import jax.numpy as jnp
from jax import lax
from jax.experimental import pallas as pl
from jax.experimental.pallas import tpu as pltpu


def _convblock_kernel(x_ref, w_ref, shift_ref, m_ref, o_ref, *, offsets, slab):
    """One batch tile, fully lane-dense.

    x_ref    : (NbC, Wflat)   zero-padded input, spatially flattened
    w_ref    : (T, NbC, NbC)  per-tap block-diagonal conv weights (BN scale
                              and residual identity folded in on the host)
    shift_ref: (NbC, 1)       per-channel BN shift: beta + (bias - mean)*scale
    m_ref    : (slab, HW)     fused junk-column-drop + symmetrize operator
    o_ref    : (NbC, HW)      lane-dense output
    """
    # Dilated conv + residual: each tap is a contiguous lane slice of the
    # flattened padded input; the channel contraction is a small MXU matmul
    # (block-diagonal over the batch tile, so batch is vectorized into the
    # sublane dim — no Python batch unroll).
    acc = None
    for t, off in enumerate(offsets):
        xs = x_ref[:, off:off + slab]                       # (NbC, slab)
        part = jnp.dot(w_ref[t], xs,
                       preferred_element_type=jnp.float32,
                       precision=lax.Precision.HIGHEST)     # MXU
        acc = part if acc is None else acc + part

    # Folded BN shift (per output channel).
    y = acc + shift_ref[...]                                # (NbC, slab)

    # Drop the 2*pad junk columns per spatial row and apply the spatial
    # symmetrize (y + y^T)/2 in a single constant matmul over the lane axis
    # (m = 0.5 * (select_valid + select_valid @ transpose_perm)).
    y = jnp.dot(y, m_ref[...],
                preferred_element_type=jnp.float32,
                precision=lax.Precision.HIGHEST)            # (NbC, HW)

    # ReLU + lane-dense store.
    o_ref[...] = jnp.maximum(y, 0.0).astype(o_ref.dtype)


def convblock_forward(x, w, conv_bias, gamma, beta, run_mean, run_var, *,
                      kernel_size, dilate_size, eps=1e-5, batch_tile=None):
    """x: (N, C, H, W) float32. Returns (N, C, H, W) float32 (eval mode)."""
    N, C, H, W = x.shape
    if H != W:
        raise ValueError("Convblock.symmetric requires square spatial dims")
    K, D = kernel_size, dilate_size
    if ((K - 1) * D) % 2 != 0:
        raise ValueError("(kernel_size-1)*dilate_size must be even for 'same' "
                         "padding to match the PyTorch module")
    pad = (K - 1) * D // 2
    Hp, Wp = H + 2 * pad, W + 2 * pad
    HW = H * W
    slab = H * Wp                     # flattened working width per tap slice
    tail = (K - 1) * D                # extra flat columns so the last tap slice is in range
    Wflat = Hp * Wp + tail

    # ---- host-side folding (once per call, outside the grid loop) ----
    inv_std = gamma / jnp.sqrt(run_var + eps)                       # (C,)
    w_scaled = (w * inv_std[:, None, None, None]).astype(jnp.float32)
    shift_c = (beta + (conv_bias - run_mean) * inv_std).astype(jnp.float32)

    # ---- batch tile: VMEM-budgeted; keep >=2 grid steps when N >= 2 ----
    if batch_tile is None:
        per_elem = C * (Wflat + HW) * 4                   # bytes / batch element / step
        cap = max(1, (8 * 1024 * 1024) // (2 * per_elem))  # 2x double buffering
        min_steps = 2 if N < 8 else 4
        batch_tile = 1
        for nb in range(1, N + 1):
            if N % nb == 0 and nb <= cap and (N // nb >= min_steps or N == 1):
                batch_tile = nb
    Nb = batch_tile
    assert N % Nb == 0
    G = N // Nb
    NbC = Nb * C

    # ---- padded + flattened input: (G, Nb*C, Wflat) ----
    xpad = jnp.pad(x.astype(jnp.float32),
                   ((0, 0), (0, 0), (pad, pad), (pad, pad)))
    xflat = xpad.reshape(N, C, Hp * Wp)
    xflat = jnp.pad(xflat, ((0, 0), (0, 0), (0, tail)))
    xflat = xflat.reshape(G, NbC, Wflat)

    # ---- per-tap block-diagonal weights (residual identity folded in) ----
    offsets = [kh * D * Wp + kw * D for kh in range(K) for kw in range(K)]
    w_taps = jnp.transpose(w_scaled, (2, 3, 0, 1)).reshape(K * K, C, C)
    eye_nb = jnp.eye(Nb, dtype=jnp.float32)
    w_bd = jnp.einsum('ab,tij->taibj', eye_nb, w_taps).reshape(K * K, NbC, NbC)
    res_off = pad * Wp + pad
    eye_nbc = jnp.eye(NbC, dtype=jnp.float32)
    if res_off in offsets:                # odd K: residual aligns with center tap
        w_bd = w_bd.at[offsets.index(res_off)].add(eye_nbc)
    else:                                 # even K: residual as an extra identity tap
        offsets.append(res_off)
        w_bd = jnp.concatenate([w_bd, eye_nbc[None]], axis=0)
    T = len(offsets)

    shift = jnp.tile(shift_c, Nb).reshape(NbC, 1)

    # ---- fused junk-column drop + symmetrize operator (slab, HW) ----
    sel = np.zeros((slab, HW), np.float32)
    for h in range(H):
        sel[h * Wp + np.arange(W), h * W + np.arange(W)] = 1.0
    perm = np.zeros((HW, HW), np.float32)
    for h in range(H):
        for w_ in range(W):
            perm[h * W + w_, w_ * W + h] = 1.0
    m_op = jnp.asarray(0.5 * (sel + sel @ perm))

    kernel = functools.partial(_convblock_kernel,
                               offsets=tuple(offsets), slab=slab)

    out_flat = pl.pallas_call(
        kernel,
        out_shape=jax.ShapeDtypeStruct((G, NbC, HW), jnp.float32),
        grid=(G,),
        in_specs=[
            pl.BlockSpec((None, NbC, Wflat), lambda b: (b, 0, 0)),
            pl.BlockSpec((T, NbC, NbC), lambda b: (0, 0, 0)),
            pl.BlockSpec((NbC, 1), lambda b: (0, 0)),
            pl.BlockSpec((slab, HW), lambda b: (0, 0)),
        ],
        out_specs=pl.BlockSpec((None, NbC, HW), lambda b: (b, 0, 0)),
        compiler_params=pltpu.CompilerParams(
            dimension_semantics=("parallel",),
            vmem_limit_bytes=32 * 1024 * 1024),
    )(xflat, w_bd, shift, m_op)

    return out_flat.reshape(N, C, H, W)


def convblock_reference(x, w, conv_bias, gamma, beta, run_mean, run_var, *,
                        kernel_size, dilate_size, eps=1e-5):
    """Pure-JAX reference mirroring the PyTorch module in eval mode."""
    K, D = kernel_size, dilate_size
    pad = (K - 1) * D // 2
    out = lax.conv_general_dilated(
        x, w, window_strides=(1, 1), padding=[(pad, pad), (pad, pad)],
        rhs_dilation=(D, D), dimension_numbers=("NCHW", "OIHW", "NCHW"))
    out = out + conv_bias[None, :, None, None]
    out = ((out - run_mean[None, :, None, None]) /
           jnp.sqrt(run_var[None, :, None, None] + eps))
    out = out * gamma[None, :, None, None] + beta[None, :, None, None]
    y = out + x
    y = (y + jnp.transpose(y, (0, 1, 3, 2))) / 2.0
    return jnp.maximum(y, 0.0)


if __name__ == "__main__":
    # Small shapes consistent with the module (square spatial dims required
    # by symmetric()).
    N, C, H, W = 2, 4, 16, 16
    kernel_size, dilate_size = 3, 2

    key = jax.random.PRNGKey(0)
    kx, kw, kb, kg, kbt, km, kv = jax.random.split(key, 7)

    x = jax.random.normal(kx, (N, C, H, W), dtype=jnp.float32)
    w = jax.random.normal(kw, (C, C, kernel_size, kernel_size),
                          dtype=jnp.float32) * 0.1
    conv_bias = jax.random.normal(kb, (C,), dtype=jnp.float32) * 0.1
    gamma = 1.0 + 0.1 * jax.random.normal(kg, (C,), dtype=jnp.float32)
    beta = 0.1 * jax.random.normal(kbt, (C,), dtype=jnp.float32)
    run_mean = 0.1 * jax.random.normal(km, (C,), dtype=jnp.float32)
    run_var = jax.random.uniform(kv, (C,), minval=0.5, maxval=1.5,
                                 dtype=jnp.float32)

    out = convblock_forward(x, w, conv_bias, gamma, beta, run_mean, run_var,
                            kernel_size=kernel_size, dilate_size=dilate_size)
    out = jax.block_until_ready(out)

    ref = convblock_reference(x, w, conv_bias, gamma, beta, run_mean, run_var,
                              kernel_size=kernel_size,
                              dilate_size=dilate_size)
    np.testing.assert_allclose(np.asarray(out), np.asarray(ref),
                               atol=1e-3, rtol=1e-3)

    print("KERNEL_OK")
</pallas_src>

<mosaic_0001>
module attributes {stable_mosaic.version = 11 : i64} {
  func.func @_convblock_kernel(%arg0: i32, %arg1: memref<1x4x404xf32, #tpu.memory_space<vmem>>, %arg2: memref<9x4x4xf32, #tpu.memory_space<vmem>>, %arg3: memref<4x1xf32, #tpu.memory_space<vmem>>, %arg4: memref<320x256xf32, #tpu.memory_space<vmem>>, %arg5: memref<1x4x256xf32, #tpu.memory_space<vmem>>) attributes {dimension_semantics = [#tpu.dimension_semantics<parallel>], iteration_bounds = array<i64: 2>, scalar_prefetch = 0 : i64, scratch_operands = 0 : i64, tpu.core_type = #tpu.core_type<tc>, window_params = [{transform_indices = @transform_0, window_bounds = array<i64: 1, 4, 404>}, {pipeline_mode = #tpu.pipeline_mode<synchronous>, transform_indices = @transform_1, window_bounds = array<i64: 9, 4, 4>}, {pipeline_mode = #tpu.pipeline_mode<synchronous>, transform_indices = @transform_2, window_bounds = array<i64: 4, 1>}, {pipeline_mode = #tpu.pipeline_mode<synchronous>, transform_indices = @transform_3, window_bounds = array<i64: 320, 256>}, {transform_indices = @transform_4, window_bounds = array<i64: 1, 4, 256>}]} {
    %c0 = arith.constant 0 : index
    %c0_0 = arith.constant 0 : index
    %c0_1 = arith.constant 0 : index
    %0 = vector.load %arg1[%c0, %c0_0, %c0_1] : memref<1x4x404xf32, #tpu.memory_space<vmem>>, vector<1x4x320xf32>
    %1 = vector.shape_cast %0 : vector<1x4x320xf32> to vector<4x320xf32>
    %c0_2 = arith.constant 0 : index
    %c0_3 = arith.constant 0 : index
    %c0_4 = arith.constant 0 : index
    %2 = vector.load %arg2[%c0_2, %c0_3, %c0_4] : memref<9x4x4xf32, #tpu.memory_space<vmem>>, vector<1x4x4xf32>
    %3 = vector.shape_cast %2 : vector<1x4x4xf32> to vector<4x4xf32>
    %cst = arith.constant dense<0.000000e+00> : vector<4x320xf32>
    %4 = tpu.matmul %3, %1, %cst {dimension_numbers = #tpu.dot_dimension_numbers<[1], [0], [0], [1], [0, 0, 1, 1], [], []>, precision = #tpu.contract_precision<fp32>} : vector<4x4xf32>, vector<4x320xf32>, vector<4x320xf32> -> vector<4x320xf32>
    %c0_5 = arith.constant 0 : index
    %c0_6 = arith.constant 0 : index
    %c2 = arith.constant 2 : index
    %5 = vector.load %arg1[%c0_5, %c0_6, %c2] : memref<1x4x404xf32, #tpu.memory_space<vmem>>, vector<1x4x320xf32>
    %6 = vector.shape_cast %5 : vector<1x4x320xf32> to vector<4x320xf32>
    %c1 = arith.constant 1 : index
    %c0_7 = arith.constant 0 : index
    %c0_8 = arith.constant 0 : index
    %7 = vector.load %arg2[%c1, %c0_7, %c0_8] : memref<9x4x4xf32, #tpu.memory_space<vmem>>, vector<1x4x4xf32>
    %8 = vector.shape_cast %7 : vector<1x4x4xf32> to vector<4x4xf32>
    %cst_9 = arith.constant dense<0.000000e+00> : vector<4x320xf32>
    %9 = tpu.matmul %8, %6, %cst_9 {dimension_numbers = #tpu.dot_dimension_numbers<[1], [0], [0], [1], [0, 0, 1, 1], [], []>, precision = #tpu.contract_precision<fp32>} : vector<4x4xf32>, vector<4x320xf32>, vector<4x320xf32> -> vector<4x320xf32>
    %10 = arith.addf %4, %9 : vector<4x320xf32>
    %c0_10 = arith.constant 0 : index
    %c0_11 = arith.constant 0 : index
    %c4 = arith.constant 4 : index
    %11 = vector.load %arg1[%c0_10, %c0_11, %c4] : memref<1x4x404xf32, #tpu.memory_space<vmem>>, vector<1x4x320xf32>
    %12 = vector.shape_cast %11 : vector<1x4x320xf32> to vector<4x320xf32>
    %c2_12 = arith.constant 2 : index
    %c0_13 = arith.constant 0 : index
    %c0_14 = arith.constant 0 : index
    %13 = vector.load %arg2[%c2_12, %c0_13, %c0_14] : memref<9x4x4xf32, #tpu.memory_space<vmem>>, vector<1x4x4xf32>
    %14 = vector.shape_cast %13 : vector<1x4x4xf32> to vector<4x4xf32>
    %cst_15 = arith.constant dense<0.000000e+00> : vector<4x320xf32>
    %15 = tpu.matmul %14, %12, %cst_15 {dimension_numbers = #tpu.dot_dimension_numbers<[1], [0], [0], [1], [0, 0, 1, 1], [], []>, precision = #tpu.contract_precision<fp32>} : vector<4x4xf32>, vector<4x320xf32>, vector<4x320xf32> -> vector<4x320xf32>
    %16 = arith.addf %10, %15 : vector<4x320xf32>
    %c0_16 = arith.constant 0 : index
    %c0_17 = arith.constant 0 : index
    %c40 = arith.constant 40 : index
    %17 = vector.load %arg1[%c0_16, %c0_17, %c40] : memref<1x4x404xf32, #tpu.memory_space<vmem>>, vector<1x4x320xf32>
    %18 = vector.shape_cast %17 : vector<1x4x320xf32> to vector<4x320xf32>
    %c3 = arith.constant 3 : index
    %c0_18 = arith.constant 0 : index
    %c0_19 = arith.constant 0 : index
    %19 = vector.load %arg2[%c3, %c0_18, %c0_19] : memref<9x4x4xf32, #tpu.memory_space<vmem>>, vector<1x4x4xf32>
    %20 = vector.shape_cast %19 : vector<1x4x4xf32> to vector<4x4xf32>
    %cst_20 = arith.constant dense<0.000000e+00> : vector<4x320xf32>
    %21 = tpu.matmul %20, %18, %cst_20 {dimension_numbers = #tpu.dot_dimension_numbers<[1], [0], [0], [1], [0, 0, 1, 1], [], []>, precision = #tpu.contract_precision<fp32>} : vector<4x4xf32>, vector<4x320xf32>, vector<4x320xf32> -> vector<4x320xf32>
    %22 = arith.addf %16, %21 : vector<4x320xf32>
    %c0_21 = arith.constant 0 : index
    %c0_22 = arith.constant 0 : index
    %c42 = arith.constant 42 : index
    %23 = vector.load %arg1[%c0_21, %c0_22, %c42] : memref<1x4x404xf32, #tpu.memory_space<vmem>>, vector<1x4x320xf32>
    %24 = vector.shape_cast %23 : vector<1x4x320xf32> to vector<4x320xf32>
    %c4_23 = arith.constant 4 : index
    %c0_24 = arith.constant 0 : index
    %c0_25 = arith.constant 0 : index
    %25 = vector.load %arg2[%c4_23, %c0_24, %c0_25] : memref<9x4x4xf32, #tpu.memory_space<vmem>>, vector<1x4x4xf32>
    %26 = vector.shape_cast %25 : vector<1x4x4xf32> to vector<4x4xf32>
    %cst_26 = arith.constant dense<0.000000e+00> : vector<4x320xf32>
    %27 = tpu.matmul %26, %24, %cst_26 {dimension_numbers = #tpu.dot_dimension_numbers<[1], [0], [0], [1], [0, 0, 1, 1], [], []>, precision = #tpu.contract_precision<fp32>} : vector<4x4xf32>, vector<4x320xf32>, vector<4x320xf32> -> vector<4x320xf32>
    %28 = arith.addf %22, %27 : vector<4x320xf32>
    %c0_27 = arith.constant 0 : index
    %c0_28 = arith.constant 0 : index
    %c44 = arith.constant 44 : index
    %29 = vector.load %arg1[%c0_27, %c0_28, %c44] : memref<1x4x404xf32, #tpu.memory_space<vmem>>, vector<1x4x320xf32>
    %30 = vector.shape_cast %29 : vector<1x4x320xf32> to vector<4x320xf32>
    %c5 = arith.constant 5 : index
    %c0_29 = arith.constant 0 : index
    %c0_30 = arith.constant 0 : index
    %31 = vector.load %arg2[%c5, %c0_29, %c0_30] : memref<9x4x4xf32, #tpu.memory_space<vmem>>, vector<1x4x4xf32>
    %32 = vector.shape_cast %31 : vector<1x4x4xf32> to vector<4x4xf32>
    %cst_31 = arith.constant dense<0.000000e+00> : vector<4x320xf32>
    %33 = tpu.matmul %32, %30, %cst_31 {dimension_numbers = #tpu.dot_dimension_numbers<[1], [0], [0], [1], [0, 0, 1, 1], [], []>, precision = #tpu.contract_precision<fp32>} : vector<4x4xf32>, vector<4x320xf32>, vector<4x320xf32> -> vector<4x320xf32>
    %34 = arith.addf %28, %33 : vector<4x320xf32>
    %c0_32 = arith.constant 0 : index
    %c0_33 = arith.constant 0 : index
    %c80 = arith.constant 80 : index
    %35 = vector.load %arg1[%c0_32, %c0_33, %c80] : memref<1x4x404xf32, #tpu.memory_space<vmem>>, vector<1x4x320xf32>
    %36 = vector.shape_cast %35 : vector<1x4x320xf32> to vector<4x320xf32>
    %c6 = arith.constant 6 : index
    %c0_34 = arith.constant 0 : index
    %c0_35 = arith.constant 0 : index
    %37 = vector.load %arg2[%c6, %c0_34, %c0_35] : memref<9x4x4xf32, #tpu.memory_space<vmem>>, vector<1x4x4xf32>
    %38 = vector.shape_cast %37 : vector<1x4x4xf32> to vector<4x4xf32>
    %cst_36 = arith.constant dense<0.000000e+00> : vector<4x320xf32>
    %39 = tpu.matmul %38, %36, %cst_36 {dimension_numbers = #tpu.dot_dimension_numbers<[1], [0], [0], [1], [0, 0, 1, 1], [], []>, precision = #tpu.contract_precision<fp32>} : vector<4x4xf32>, vector<4x320xf32>, vector<4x320xf32> -> vector<4x320xf32>
    %40 = arith.addf %34, %39 : vector<4x320xf32>
    %c0_37 = arith.constant 0 : index
    %c0_38 = arith.constant 0 : index
    %c82 = arith.constant 82 : index
    %41 = vector.load %arg1[%c0_37, %c0_38, %c82] : memref<1x4x404xf32, #tpu.memory_space<vmem>>, vector<1x4x320xf32>
    %42 = vector.shape_cast %41 : vector<1x4x320xf32> to vector<4x320xf32>
    %c7 = arith.constant 7 : index
    %c0_39 = arith.constant 0 : index
    %c0_40 = arith.constant 0 : index
    %43 = vector.load %arg2[%c7, %c0_39, %c0_40] : memref<9x4x4xf32, #tpu.memory_space<vmem>>, vector<1x4x4xf32>
    %44 = vector.shape_cast %43 : vector<1x4x4xf32> to vector<4x4xf32>
    %cst_41 = arith.constant dense<0.000000e+00> : vector<4x320xf32>
    %45 = tpu.matmul %44, %42, %cst_41 {dimension_numbers = #tpu.dot_dimension_numbers<[1], [0], [0], [1], [0, 0, 1, 1], [], []>, precision = #tpu.contract_precision<fp32>} : vector<4x4xf32>, vector<4x320xf32>, vector<4x320xf32> -> vector<4x320xf32>
    %46 = arith.addf %40, %45 : vector<4x320xf32>
    %c0_42 = arith.constant 0 : index
    %c0_43 = arith.constant 0 : index
    %c84 = arith.constant 84 : index
    %47 = vector.load %arg1[%c0_42, %c0_43, %c84] : memref<1x4x404xf32, #tpu.memory_space<vmem>>, vector<1x4x320xf32>
    %48 = vector.shape_cast %47 : vector<1x4x320xf32> to vector<4x320xf32>
    %c8 = arith.constant 8 : index
    %c0_44 = arith.constant 0 : index
    %c0_45 = arith.constant 0 : index
    %49 = vector.load %arg2[%c8, %c0_44, %c0_45] : memref<9x4x4xf32, #tpu.memory_space<vmem>>, vector<1x4x4xf32>
    %50 = vector.shape_cast %49 : vector<1x4x4xf32> to vector<4x4xf32>
    %cst_46 = arith.constant dense<0.000000e+00> : vector<4x320xf32>
    %51 = tpu.matmul %50, %48, %cst_46 {dimension_numbers = #tpu.dot_dimension_numbers<[1], [0], [0], [1], [0, 0, 1, 1], [], []>, precision = #tpu.contract_precision<fp32>} : vector<4x4xf32>, vector<4x320xf32>, vector<4x320xf32> -> vector<4x320xf32>
    %52 = arith.addf %46, %51 : vector<4x320xf32>
    %c0_47 = arith.constant 0 : index
    %c0_48 = arith.constant 0 : index
    %53 = vector.load %arg3[%c0_47, %c0_48] : memref<4x1xf32, #tpu.memory_space<vmem>>, vector<4x1xf32>
    %54 = vector.broadcast %53 : vector<4x1xf32> to vector<4x320xf32>
    %55 = arith.addf %52, %54 : vector<4x320xf32>
    %c0_49 = arith.constant 0 : index
    %c0_50 = arith.constant 0 : index
    %56 = vector.load %arg4[%c0_49, %c0_50] : memref<320x256xf32, #tpu.memory_space<vmem>>, vector<320x256xf32>
    %cst_51 = arith.constant dense<0.000000e+00> : vector<4x256xf32>
    %57 = tpu.matmul %55, %56, %cst_51 {dimension_numbers = #tpu.dot_dimension_numbers<[1], [0], [0], [1], [0, 0, 1, 1], [], []>, precision = #tpu.contract_precision<fp32>} : vector<4x320xf32>, vector<320x256xf32>, vector<4x256xf32> -> vector<4x256xf32>
    %cst_52 = arith.constant 0.000000e+00 : f32
    %58 = vector.broadcast %cst_52 : f32 to vector<4x256xf32>
    %59 = arith.maximumf %57, %58 : vector<4x256xf32>
    %c0_53 = arith.constant 0 : index
    %c0_54 = arith.constant 0 : index
    %c0_55 = arith.constant 0 : index
    %60 = vector.load %arg5[%c0_53, %c0_54, %c0_55] : memref<1x4x256xf32, #tpu.memory_space<vmem>>, vector<1x4x256xf32>
    %61 = vector.shape_cast %60 : vector<1x4x256xf32> to vector<4x256xf32>
    %62 = vector.shape_cast %59 : vector<4x256xf32> to vector<1x4x256xf32>
    tpu.vector_store %arg5[%c0_53, %c0_54, %c0_55], %62 {strides = array<i32>} : memref<1x4x256xf32, #tpu.memory_space<vmem>>, vector<1x4x256xf32>,
    return
  }
  func.func @transform_0(%arg0: i32) -> (i32, i32, i32) {
    %c0_i32 = arith.constant 0 : i32
    %c0_i32_0 = arith.constant 0 : i32
    %c0_i32_1 = arith.constant 0 : i32
    return %arg0, %c0_i32, %c0_i32_0 : i32, i32, i32
  }
  func.func @transform_1(%arg0: i32) -> (i32, i32, i32) {
    %c0_i32 = arith.constant 0 : i32
    %c0_i32_0 = arith.constant 0 : i32
    %c0_i32_1 = arith.constant 0 : i32
    %c0_i32_2 = arith.constant 0 : i32
    return %c0_i32, %c0_i32_0, %c0_i32_1 : i32, i32, i32
  }
  func.func @transform_2(%arg0: i32) -> (i32, i32) {
    %c0_i32 = arith.constant 0 : i32
    %c0_i32_0 = arith.constant 0 : i32
    %c0_i32_1 = arith.constant 0 : i32
    return %c0_i32, %c0_i32_0 : i32, i32
  }
  func.func @transform_3(%arg0: i32) -> (i32, i32) {
    %c0_i32 = arith.constant 0 : i32
    %c0_i32_0 = arith.constant 0 : i32
    %c0_i32_1 = arith.constant 0 : i32
    return %c0_i32, %c0_i32_0 : i32, i32
  }
  func.func @transform_4(%arg0: i32) -> (i32, i32, i32) {
    %c0_i32 = arith.constant 0 : i32
    %c0_i32_0 = arith.constant 0 : i32
    %c0_i32_1 = arith.constant 0 : i32
    return %arg0, %c0_i32, %c0_i32_0 : i32, i32, i32
  }
}

</mosaic_0001>

<bundles_post_ra>
// kernel: tpu_custom_call.1
= control target key start
LH: loop header
LB: loop body
LE: loop exit
PB: predicated region body
PF: predicated region fallthrough
CT: control target
= control target key end

     0   :  { %9 = vsyncpa [#allocation3], 0  ;;  %s14113_s0 = inlined_call_operand.vmem [shape: f32[2,4,404], index: 0, kind: input, shape index: {}]   ;;  %s14114_s1 = inlined_call_operand.vmem [shape: f32[9,4,4], index: 1, kind: input, shape index: {}]   ;;  %s14115_s2 = inlined_call_operand.vmem [shape: f32[4,1], index: 2, kind: input, shape index: {}]   ;;  %s14116_s3 = inlined_call_operand.hbm [shape: f32[320,256], index: 3, kind: input, shape index: {}]   ;;  %s14117_s4 = inlined_call_operand.hbm [shape: f32[2,4,256], index: 4, kind: output, shape index: {}]  }
   0x1   :  { %10 = vsyncpa [#allocation4], 0 }
   0x2   :  { %12 = vsyncpa [#allocation4 + $0x1], 0  ;;  %s11985_s15 = smov 0   ;;  %s11987_s16 = smov 0  }
   0x3   :  { %s11989_s17 = smov 0   ;;  %s11991_s18 = smov 0  }
   0x4 LB: > { %s12006_s19 = sadd.s32 4294967295, %s11943_s18   ;;  %s10772_s20 = sadd.s32 4294967294, %s11943_s18   ;;  %s11943_s18 = sphi %s11991_s18, %s14739_s18   ;;  %s11939_s17 = sphi %s11989_s17, %s14738_s17   ;;  %s11935_s16 = sphi %s11987_s16, %s14737_s16   ;;  %s11931_s15 = sphi %s11985_s15, %s14736_s15  }
   0x5   : > { %s12010_s21 = sadd.s32 1, %s11943_s18   ;;  %s114_s22 = sadd.s32 1, %s11939_s17 }
   0x6   : > { %s111_s23 = ssub.s32 %s11943_s18, %s12010_s21  ;;  %p124_p0 = scmp.ne.s32.totalorder %s11939_s17, %s11935_s16 }
   0x7   : > { %p112_p1 = scmp.eq.s32.totalorder %s111_s23, 0  ;;  %p125_p2 = scmp.eq.s32.totalorder %s12006_s19, 1 }
   0x8   : > { %p130_p3 = scmp.ne.s32.totalorder %s11935_s16, %s11931_s15  ;;  %p131_p4 = scmp.eq.s32.totalorder %s10772_s20, 1 }
   0x9   : > { %s12021_s24 = scalar_select %p112_p1, %s11939_s17, %s114_s22  }
   0xa   : > { %p12023_p5 = por %p125_p2, %p124_p0  ;;  %p12027_p6 = por %p131_p4, %p130_p3 }
   0xb   : > { %p10773_p7 = scmp.ge.s32.totalorder %s11943_s18, 1  ;;  %p138_p8 = scmp.lt.s32.totalorder %s11943_s18, 3 }
   0xc   : > { %s14360_s25 = scalar_select %p12023_p5, 1, 0 }
   0xd   : > { %s14361_s26 = scalar_select %p12027_p6, 1, 0 }
   0xe   : > { %p14118_p9 = scmp.eq.s32.totalorder %s12006_s19, 0  ;;  %p12034_p10 = pnand %p10773_p7, %p138_p8 }
   0xf   : > { %s11945_s28 = smov [#allocation2]   ;;  %s11849_s7 = scalar_lea.hbm %s14116_s3, 10240 }
  0x10   : > { %s14362_s27 = scalar_select %p12034_p10, 1, 0 }
  0x11   : > { %s156_s29 = sshll.u32 %s11945_s28, 4  ;;  %p11788_p11 = pneg %p12034_p10  ;;  %s157_s29 = int_to_ptr.vmem [resolvable:$true] %s156_s29 }
  0x12   : > { %p11850_p13 = scmp.ne.s32.totalorder %s14116_s3, %s11849_s7  ;;  %p11856_p3 = scmp.lt.u32.totalorder %s11849_s7, %s14116_s3 }
  0x13   : > { %p12042_p12 = pnand %p14118_p9, %p11788_p11 }
  0x15   : > { %p11851_p0 = pneg %p12042_p12 }
  0x17   : > { %p11852_p1 = pnand %p11851_p0, %p11850_p13 }
  0x19   : > { %p11853_p2 = pneg %p11852_p1 }
  0x1b   : > { %p11858_p4 = pnand %p11856_p3, %p11853_p2 }
  0x1d   : > { %11861 = shalt.err (!%p11858_p4)
}
  0x1e   : > { %s11862_s12 = scalar_lea.vmem %s157_s29, 10240  ;;  %p11870_p9 = scmp.lt.s32.totalorder %s157_s29, %s157_s29 }
  0x1f   : > { %p11863_p7 = scmp.ne.s32.totalorder %s157_s29, %s11862_s12  ;;  %p11871_p6 = scmp.lt.s32.totalorder %s11862_s12, %s11862_s12 }
  0x21   : > { %p11865_p8 = pnand %p11863_p7, %p11851_p0  ;;  %p11872_p5 = por %p11871_p6, %p11870_p9 }
  0x23   : > { %p11866_p11 = pneg %p11865_p8 }
  0x25   : > { %p11873_p10 = pnand %p11872_p5, %p11866_p11 }
  0x27   : > { %11876 = shalt.err (!%p11873_p10)
}
  0x28   : > { %s11946_s13 = smov 256   ;;  %s11947_s14 = smov 16  }
  0x29   : > { %11791 = dma.hbm_to_vmem [thread:$0]  (!%p12042_p12), %s14116_s3, 10240, %s157_s29, [#allocation3], %s11946_s13, %s11946_s13, %s11947_s14  }
  0x2a   : > { %p14364_p13 = scmp.ne.s32.totalorder %s14362_s27, 0 }
  0x2c   : > { %180 = sbr.rel (%p14364_p13) target bundleno = 1275 (0x4fb), region = 36 }
  0x33   : > { %p14365_p1 = scmp.eq.s32.totalorder %s12006_s19, 0 }
  0x35   : > { %11922 = dma.done.wait (%p14365_p1), [#allocation3], 10240   ;;  %p14366_p0 = pmov %p14365_p1 }
  0x36   : > { %p206_p5 = scmp.lt.s32.totalorder %s12006_s19, 1  ;;  %v14121_v0 = vmov 0.0   ;;  %s11949_s27 = smov 126   ;;  %vm11950_vm0 = vmmov 0   ;;  %v10781_v10 = vld [vmem:[%s14114_s1 + $0x4] sm:$0xf] }
  0x37   : > { %11924 = vsyncadd (%p14366_p0), [#allocation3], 4294957056  ;;  %305 = vmatprep.mubr.f32.mxu0 %v14121_v0  ;;  %10924 = vmatprep.subr.mxu1 %v14121_v0  ;;  %s11951_s29 = smov 124   ;;  %s11952_s7 = smov 88   ;;  %vm228_vm1 = vcmask 31744   ;;  %vm225_vm2 = vcmask 1031168  }
  0x38   : > { %s207_s23 = scalar_select %p206_p5, %s12006_s19, 1  ;;  %10926 = vmatprep.mubr.msk.f32.mxu1 %vm11950_vm0, %v14121_v0  ;;  %v230_v11 = vsel %vm228_vm1, %v10781_v10, 0  ;;  %v213_v14 = vld [vmem:[%s14114_s1] sm:$0xf]  ;;  %vm232_vm3 = vcmask 1043456   ;;  %vm3022_vm4 = vcmask 719872  }
  0x39   : > { %s11953_s8 = smov 86   ;;  %s11954_s9 = smov 84   ;;  %v12112_v12 = vand.u32 4294901760, %v230_v11  ;;  %v1151_v16 = vsel %vm228_vm1, %v213_v14, 0  ;;  %vm3961_vm5 = vcmask 703488   ;;  %vm4900_vm6 = vcmask 687104  }
  0x3a   : > { %s10794_s28 = sshll.u32 %s207_s23, 4  ;;  %s11955_s10 = smov 48   ;;  %v12125_v21 = vand.u32 4294901760, %v1151_v16  ;;  %v10782_v61 = vld [vmem:[%s14114_s1 + $0x8] sm:$0xf]  ;;  %vm5842_vm7 = vcmask 392192  }
  0x3b   : > { %s12073_s6 = scalar_lea.vmem %s14113_s0, %s10794_s28  ;;  %s11956_s11 = smov 46   ;;  %v12115_v13 = vsub.f32 %v230_v11, %v12112_v12  ;;  %vm6785_vm8 = vcmask 375808   ;;  %vm7728_vm9 = vcmask 359424   ;;  %vm2083_vm10 = vcmask 1014784  }
  0x3c   : > { %v12078_v1 = vld [vmem:[%s12073_s6] sm:$0xff]  ;;  %v212_v3 = vld [vmem:[%s12073_s6 + $0x8] sm:$0xf]  ;;  %s11957_s12 = smov 44   ;;  %v12141_v31 = vsub.f32 %v1151_v16, %v12125_v21  ;;  %vm8744_vm11 = vcmask 523264   ;;  %s203_s22 = sand.u32 1, %s11935_s16  }
  0x3d   : > { %219 = vrot.lane.b32.xlu1 %v12078_v1, %s11949_s27  ;;  %v12083_v2 = vcombine.high %v12078_v1, %v12078_v1  ;;  %v2071_v4 = vld [vmem:[%s12073_s6 + $0x8] sm:$0xf]  ;;  %v12122_v17 = vand.u32 4294901760, %v12115_v13  ;;  %v1157_v18 = vsel %vm232_vm3, %v212_v3, 0  ;;  %s10778_s23 = sshll.u32 %s203_s22, 3  ;;  %s10795_s28 = sshll.u32 %s12006_s19, 7 }
  0x3e   : > { %v3010_v5 = vld [vmem:[%s12073_s6 + $0x8] sm:$0xf]  ;;  %v12130_v24 = vand.u32 4294901760, %v1157_v18  ;;  %v12166_v42 = vand.u32 4294901760, %v12141_v31  ;;  %s205_s5 = scalar_lea.vmem [#allocation5], %s10778_s23  ;;  %p14734_p9 = scmp.ne.s32.totalorder %s14360_s25, 0 }
  0x3f   : > { %221 = vrot.lane.b32.xlu0 %v12083_v2, %s11949_s27  ;;  %v3949_v6 = vld [vmem:[%s12073_s6 + $0x8] sm:$0xf]  ;;  %v309_v26 = vsub.f32 %v12115_v13, %v12122_v17  ;;  %s10701_s30 = sshll.u32 %s205_s5, 4  ;;  %s11959_s19 = smov [#allocation5]   ;;  %s14073_s30 = int_to_ptr.vmem [resolvable:$true] %s10701_s30 }
  0x40   : > { %v4888_v7 = vld [vmem:[%s12073_s6 + $0x8] sm:$0xf]  ;;  %v12149_v35 = vsub.f32 %v1157_v18, %v12130_v24  ;;  %v1229_v50 = vsub.f32 %v12141_v31, %v12166_v42 }
  0x41   : > { %2079 = vrot.lane.b32.xlu1 %v12083_v2, %s11951_s29  ;;  %v5827_v8 = vld [vmem:[%s12073_s6 + $0x8] sm:$0xff]  ;;  %v12153_v37 = vand.u32 4294901760, %v309_v26 }
  0x42   : > { %v5833_v9 = vcombine.high %v5827_v8, %v5827_v8  ;;  %v1703_v45 = vand.u32 4294901760, %v12149_v35  ;;  %v12198_v57 = vand.u32 4294901760, %v1229_v50 }
  0x43   : > { %223 = vrot.lane.b32.xlu0 %v212_v3, %s11949_s27 }
  0x44   : > { %v1704_v54 = vsub.f32 %v12149_v35, %v1703_v45 }
  0x45   : > { %2077 = vrot.lane.b32.xlu1 %v12078_v1, %s11951_s29 }
  0x46   : > { %v1705_v60 = vand.u32 4294901760, %v1704_v54 }
  0x47   : > { %2081 = vrot.lane.b32.xlu0 %v2071_v4, %s11951_s29  ;;  %v2087_v4 = vsel %vm228_vm1, %v10782_v61, 0  ;;  %s14071_s29 = scalar_lea.hbm %s14117_s4, %s10795_s28 }
  0x49   : > { %3020 = vrot.lane.b32.xlu1 %v3010_v5, %s11952_s7 }
  0x4b   : > { %3018 = vrot.lane.b32.xlu0 %v12083_v2, %s11952_s7 }
  0x4d   : > { %3957 = vrot.lane.b32.xlu1 %v12083_v2, %s11953_s8 }
  0x4f   : > { %3016 = vrot.lane.b32.xlu0 %v12078_v1, %s11952_s7  ;;  %s10687_s7 = scalar_lea.sflag [#allocation4], %s203_s22 }
  0x51   : > { %3955 = vrot.lane.b32.xlu1 %v12078_v1, %s11953_s8 }
  0x53   : > { %3959 = vrot.lane.b32.xlu0 %v3949_v6, %s11953_s8  ;;  %s11877_s8 = scalar_lea.vmem %s14073_s30, 128 }
  0x54   : > { %p11878_p6 = scmp.ne.s32.totalorder %s14073_s30, %s11877_s8 }
  0x55   : > { %4898 = vrot.lane.b32.xlu1 %v4888_v7, %s11954_s9 }
  0x56   : > { %p11879_p10 = pnand %p11878_p6, %p14734_p9 }
  0x57   : > { %4896 = vrot.lane.b32.xlu0 %v12083_v2, %s11954_s9 }
  0x58   : > { %p11880_p12 = pneg %p11879_p10 }
  0x59   : > { %5836 = vrot.lane.b32.xlu1 %v12083_v2, %s11955_s10 }
  0x5b   : > { %4894 = vrot.lane.b32.xlu0 %v12078_v1, %s11954_s9  ;;  %s11881_s9 = sshll.u32 %s11959_s19, 4  ;;  %s11882_s9 = int_to_ptr.vmem [resolvable:$false] %s11881_s9 }
  0x5c   : > { %p11884_p2 = scmp.lt.s32.totalorder %s14073_s30, %s11882_s9 }
  0x5d   : > { %5834 = vrot.lane.b32.xlu1 %v12078_v1, %s11955_s10 }
  0x5f   : > { %5838 = vrot.lane.b32.xlu0 %v5827_v8, %s11955_s10 }
  0x61   : > { %6781 = vrot.lane.b32.xlu1 %v5827_v8, %s11956_s11 }
  0x63   : > { %6779 = vrot.lane.b32.xlu0 %v12083_v2, %s11956_s11 }
  0x65   : > { %7722 = vrot.lane.b32.xlu1 %v12083_v2, %s11957_s12 }
  0x67   : > { %6777 = vrot.lane.b32.xlu0 %v12078_v1, %s11956_s11 }
  0x69   : > { %7720 = vrot.lane.b32.xlu1 %v12078_v1, %s11957_s12 }
  0x6b   : > { %7724 = vrot.lane.b32.xlu0 %v5827_v8, %s11957_s12  ;;  %v12234_v8 = vand.u32 4294901760, %v2087_v4 }
  0x6d   : > { %6783 = vrot.lane.b32.xlu1 %v5833_v9, %s11956_s11 }
  0x6f   : > { %5840 = vrot.lane.b32.xlu0 %v5833_v9, %s11955_s10  ;;  %s11883_s10 = scalar_lea.vmem %s11882_s9, 256 }
  0x70   : > { %p11885_p3 = scmp.lt.s32.totalorder %s11883_s10, %s11877_s8 }
  0x72   : > { %p11886_p4 = por %p11885_p3, %p11884_p2 }
  0x73   : > { %7726 = vrot.lane.b32.xlu0 %v5833_v9, %s11957_s12 }
  0x74   : > { %p11887_p7 = pnand %p11886_p4, %p11880_p12 }
  0xaf   : > { %v220_v15 = vpop.permute.xlu1 %219 }
  0xb1   : > { %v222_v19 = vpop.permute.xlu0 %221 }
  0xb2   : > { %v226_v20 = vsel %vm225_vm2, %v220_v15, %v222_v19  ;;  %v12251_v15 = vsub.f32 %v2087_v4, %v12234_v8 }
  0xb3   : > { %v233_v22 = vsel %vm232_vm3, %v226_v20, 0  ;;  %v12128_v23 = vpop.permute.xlu1 %2079 }
  0xb4   : > { %v12132_v25 = vand.u32 4294901760, %v233_v22  ;;  %v12270_v26 = vand.u32 4294901760, %v12251_v15 }
  0xb5   : > { %v224_v27 = vpop.permute.xlu0 %223 }
  0xb6   : > { %v12137_v28 = vsub.f32 %v233_v22, %v12132_v25  ;;  %v227_v29 = vsel %vm225_vm2, %v222_v19, %v224_v27  ;;  %v237_v30 = vsel %vm232_vm3, %v224_v27, 0 }
  0xb7   : > { %v235_v32 = vsel %vm232_vm3, %v227_v29, 0  ;;  %v12144_v33 = vand.u32 4294901760, %v237_v30  ;;  %v12146_v34 = vpop.permute.xlu1 %2077 }
  0xb8   : > { %v12151_v36 = vand.u32 4294901760, %v235_v32  ;;  %v325_v38 = vand.u32 4294901760, %v12137_v28 }
  0xb9   : > { %v12157_v39 = vsub.f32 %v237_v30, %v12144_v33  ;;  %v12159_v40 = vpop.permute.xlu0 %2081 }
  0xba   : > { %v12162_v41 = vsub.f32 %v235_v32, %v12151_v36  ;;  %240 = vmatprep.subr.mxu0 %v12151_v36  ;;  %v326_v47 = vsub.f32 %v12137_v28, %v325_v38  ;;  %v2093_v6 = vsel %vm232_vm3, %v12159_v40, 0 }
  0xbb   : > { %242 = vmatpush1.msra.mxu0 %v12132_v25  ;;  %v783_v43 = vand.u32 4294901760, %v12157_v39  ;;  %v12170_v44 = vpop.permute.xlu1 %3020  ;;  %v12243_v10 = vand.u32 4294901760, %v2093_v6 }
  0xbc   : > { %311 = vmatmul.mubr.f32.vlgmr.msra.gmra.mrb[0].mxu0 %v12153_v37  ;;  %v319_v46 = vand.u32 4294901760, %v12162_v41  ;;  %v327_v55 = vand.u32 4294901760, %v326_v47  ;;  %v3032_v54 = vsel %vm232_vm3, %v12170_v44, 0 }
  0xbd   : > { %10925 = vmatpush3.msra.mxu1 %v783_v43  ;;  %391 = vmatprep.mubr.f32.mxu0 %v14121_v0  ;;  %v3019_v48 = vpop.permute.xlu0 %3018  ;;  %v12260_v18 = vsub.f32 %v2093_v6, %v12243_v10 }
  0xbe   : > { %10927 = vmatmul.mubr.f32.vlgmr.msra.gmra.mrb[0].mxu1 %v12112_v12  ;;  %10929 = vmatprep.subr.mxu1 %v14121_v0  ;;  %v320_v49 = vsub.f32 %v12162_v41, %v319_v46  ;;  %v12188_v51 = vsel %vm3022_vm4, %v3019_v48, %v12170_v44 }
  0xbf   : > { %10930 = vmatpush3.msra.mxu1 %v12144_v33  ;;  %10931 = vmatprep.mubr.msk.f32.mxu1 %vm11950_vm0, %v14121_v0  ;;  %v3958_v52 = vpop.permute.xlu1 %3957  ;;  %v2639_v29 = vand.u32 4294901760, %v12260_v18 }
  0xc0   : > { %v321_v53 = vand.u32 4294901760, %v320_v49  ;;  %10934 = vmatprep.subr.mxu1 %v14121_v0 }
  0xc1   : > { %v3017_v56 = vpop.permute.xlu0 %3016 }
  0xc2   : > { %322 = vmatprep.subr.mxu0 %v321_v53  ;;  %10932 = vmatmul.mubr.f32.vlgmr.msra.gmra.mrb[2].mxu1 %v12112_v12  ;;  %v12201_v58 = vsel %vm3022_vm4, %v3017_v56, %v3019_v48  ;;  %v10783_v48 = vld [vmem:[%s14114_s1 + $0xc] sm:$0xf]  ;;  %v1155_v53 = vsel %vm232_vm3, %v12083_v2, 0  ;;  %v784_v2 = vsub.f32 %v12157_v39, %v783_v43 }
  0xc3   : > { %328 = vmatpush1.msra.mxu0 %v327_v55  ;;  %10935 = vmatpush3.msra.mxu1 %v12130_v24  ;;  %v3956_v59 = vpop.permute.xlu1 %3955  ;;  %v1153_v55 = vsel %vm232_vm3, %v12078_v1, 0  ;;  %v12340_v56 = vand.u32 4294901760, %v1155_v53 }
  0xc4   : > { %393 = vmatmul.mubr.f32.vlgmr.msra.gmra.mrb[0].mxu0 %v12112_v12  ;;  %401 = vmatprep.subr.mxu0 %v12162_v41  ;;  %v12210_v62 = vsel %vm3961_vm5, %v3956_v59, %v3958_v52  ;;  %v12355_v1 = vand.u32 4294901760, %v1153_v55  ;;  %v785_v61 = vand.u32 4294901760, %v784_v2  ;;  %v2084_v2 = vsel %vm2083_vm10, %v12146_v34, %v12128_v23 }
  0xc5   : > { %404 = vmatpush1.msra.mxu0 %v12137_v28  ;;  %10936 = vmatprep.mubr.msk.f32.mxu1 %vm11950_vm0, %v14121_v0  ;;  %v12215_v63 = vpop.permute.xlu0 %3959  ;;  %v2640_v28 = vsub.f32 %v12260_v18, %v2639_v29  ;;  %v12361_v43 = vsub.f32 %v1155_v53, %v12340_v56  ;;  %v2085_v53 = vsel %vm2083_vm10, %v12128_v23, %v12159_v40  ;;  %v10785_v40 = vld [vmem:[%s14114_s1 + $0x14] sm:$0xf]  ;;  %v2089_v34 = vsel %vm232_vm3, %v2084_v2, 0 }
  0xc6   : > { %477 = vmatprep.subr.mxu0 %v12151_v36  ;;  %10937 = vmatmul.mubr.f32.vlgmr.msra.gmra.mrb[4].mxu1 %v12198_v57  ;;  %v12221_v3 = vsel %vm3961_vm5, %v3958_v52, %v12215_v63  ;;  %v12377_v6 = vsub.f32 %v1153_v55, %v12355_v1 }
  0xc7   : > { %10939 = vmatprep.subr.mxu1 %v14121_v0  ;;  %10941 = vmatprep.mubr.msk.f32.mxu1 %vm11950_vm0, %v14121_v0  ;;  %v12227_v5 = vpop.permute.xlu1 %4898 }
  0xc8   : > { %10940 = vmatpush3.msra.mxu1 %v1705_v60  ;;  %467 = vmatprep.mubr.f32.mxu0 %v14121_v0  ;;  %v12351_v60 = vand.u32 4294901760, %v3032_v54 }
  0xc9   : > { %10944 = vmatprep.subr.mxu1 %v14121_v0  ;;  %v4897_v7 = vpop.permute.xlu0 %4896 }
  0xca   : > { %10942 = vmatmul.mubr.f32.vlgmr.msra.gmra.mrb[6].mxu1 %v12125_v21  ;;  %v12238_v9 = vsel %vm4900_vm6, %v4897_v7, %v12227_v5  ;;  %v12372_v4 = vsub.f32 %v3032_v54, %v12351_v60  ;;  %v2091_v54 = vsel %vm232_vm3, %v2085_v53, 0 }
  0xcb   : > { %10945 = vmatpush3.msra.mxu1 %v12149_v35  ;;  %10946 = vmatprep.mubr.msk.f32.mxu1 %vm11950_vm0, %v14121_v0  ;;  %v5837_v11 = vpop.permute.xlu1 %5836  ;;  %v2165_v35 = vsub.f32 %v12251_v15, %v12270_v26  ;;  %v12500_v55 = vand.u32 4294901760, %v2091_v54 }
  0xcc   : > { %470 = vmatmul.mubr.f32.vlgmr.msra.gmra.mrb[0].mxu0 %v12115_v13  ;;  %10949 = vmatprep.subr.mxu1 %v14121_v0 }
  0xcd   : > { %479 = vmatpush1.msra.mxu0 %v12132_v25  ;;  %542 = vmatprep.mubr.f32.mxu0 %v14121_v0  ;;  %v4895_v14 = vpop.permute.xlu0 %4894  ;;  %v12517_v23 = vsub.f32 %v2091_v54, %v12500_v55 }
  0xce   : > { %555 = vmatprep.subr.mxu0 %v319_v46  ;;  %10947 = vmatmul.mubr.f32.vlgmr.msra.gmra.mrb[8].mxu1 %v12141_v31  ;;  %v12254_v16 = vsel %vm4900_vm6, %v4895_v14, %v4897_v7  ;;  %v1245_v14 = vand.u32 4294901760, %v12377_v6 }
  0xcf   : > { %10950 = vmatpush3.msra.mxu1 %v12130_v24  ;;  %10951 = vmatprep.mubr.msk.f32.mxu1 %vm11950_vm0, %v14121_v0  ;;  %v5835_v19 = vpop.permute.xlu1 %5834 }
  0xd0   : > { %10954 = vmatprep.subr.mxu1 %v14121_v0  ;;  %v12264_v20 = vsel %vm5842_vm7, %v5835_v19, %v5837_v11 }
  0xd1   : > { %v12266_v22 = vpop.permute.xlu0 %5838 }
  0xd2   : > { %10952 = vmatmul.mubr.f32.vlgmr.msra.gmra.mrb[10].mxu1 %v12166_v42  ;;  %v12274_v27 = vsel %vm5842_vm7, %v5837_v11, %v12266_v22  ;;  %v1239_v11 = vand.u32 4294901760, %v12361_v43 }
  0xd3   : > { %10955 = vmatpush3.msra.mxu1 %v1703_v45  ;;  %10956 = vmatprep.mubr.msk.f32.mxu1 %vm11950_vm0, %v14121_v0  ;;  %v12281_v30 = vpop.permute.xlu1 %6781  ;;  %v12304_v45 = vand.u32 4294901760, %v2165_v35  ;;  %v3971_v35 = vsel %vm232_vm3, %v12215_v63, 0 }
  0xd4   : > { %546 = vmatmul.mubr.f32.vlgmr.msra.gmra.mrb[0].mxu0 %v12122_v17  ;;  %10959 = vmatprep.subr.mxu1 %v14121_v0 }
  0xd5   : > { %559 = vmatpush1.msra.mxu0 %v325_v38  ;;  %622 = vmatprep.mubr.f32.mxu0 %v14121_v0  ;;  %v6780_v32 = vpop.permute.xlu0 %6779 }
  0xd6   : > { %631 = vmatprep.subr.mxu0 %v12151_v36  ;;  %10957 = vmatmul.mubr.f32.vlgmr.msra.gmra.mrb[12].mxu1 %v12125_v21  ;;  %v12294_v41 = vsel %vm6785_vm8, %v6780_v32, %v12281_v30 }
  0xd7   : > { %10960 = vmatpush3.msra.mxu1 %v12130_v24  ;;  %10961 = vmatprep.mubr.msk.f32.mxu1 %vm11950_vm0, %v14121_v0  ;;  %v7723_v38 = vpop.permute.xlu1 %7722  ;;  %v2641_v24 = vand.u32 4294901760, %v2640_v28 }
  0xd8   : > { %10964 = vmatprep.subr.mxu1 %v14121_v0 }
  0xd9   : > { %v6778_v36 = vpop.permute.xlu0 %6777 }
  0xda   : > { %10962 = vmatmul.mubr.f32.vlgmr.msra.gmra.mrb[14].mxu1 %v12125_v21  ;;  %v12307_v46 = vsel %vm6785_vm8, %v6778_v36, %v6780_v32 }
  0xdb   : > { %10965 = vmatpush3.msra.mxu1 %v12243_v10  ;;  %10966 = vmatprep.mubr.msk.f32.mxu1 %vm11950_vm0, %v14121_v0  ;;  %v7721_v47 = vpop.permute.xlu1 %7720 }
  0xdc   : > { %624 = vmatmul.mubr.f32.vlgmr.msra.gmra.mrb[0].mxu0 %v12112_v12  ;;  %10969 = vmatprep.subr.mxu1 %v14121_v0  ;;  %v12318_v49 = vsel %vm7728_vm9, %v7721_v47, %v7723_v38 }
  0xdd   : > { %633 = vmatpush1.msra.mxu0 %v12132_v25  ;;  %696 = vmatprep.mubr.f32.mxu0 %v14121_v0  ;;  %v12322_v50 = vpop.permute.xlu0 %7724  ;;  %v3026_v25 = vsel %vm228_vm1, %v10783_v48, 0 }
  0xde   : > { %10967 = vmatmul.mubr.f32.vlgmr.msra.gmra.mrb[16].mxu1 %v12304_v45  ;;  %10904 = vmatprep.subr.mxu0 %v14121_v0  ;;  %v12328_v52 = vsel %vm7728_vm9, %v7723_v38, %v12322_v50  ;;  %v12343_v59 = vand.u32 4294901760, %v3026_v25 }
  0xdf   : > { %10970 = vmatpush3.msra.mxu1 %v2641_v24  ;;  %10971 = vmatprep.mubr.msk.f32.mxu1 %vm11950_vm0, %v14121_v0  ;;  %v6784_v2 = vpop.permute.xlu1 %6783 }
  0xe0   : > { %10974 = vmatprep.subr.mxu1 %v14121_v0  ;;  %v12366_v44 = vsub.f32 %v3026_v25, %v12343_v59 }
  0xe2   : > { %10972 = vmatmul.mubr.f32.vlgmr.msra.gmra.mrb[18].mxu1 %v12234_v8  ;;  %v12384_v7 = vand.u32 4294901760, %v12366_v44 }
  0xe3   : > { %10975 = vmatpush3.msra.mxu1 %v12260_v18  ;;  %10976 = vmatprep.mubr.msk.f32.mxu1 %vm11950_vm0, %v14121_v0 }
  0xe4   : > { %698 = vmatmul.mubr.f32.vlgmr.msra.gmra.mrb[0].mxu0 %v12112_v12  ;;  %10979 = vmatprep.subr.mxu1 %v14121_v0  ;;  %v3104_v18 = vsub.f32 %v12366_v44, %v12384_v7 }
  0xe5   : > { %10905 = vmatpush3.msra.mxu0 %v12144_v33  ;;  %10906 = vmatprep.mubr.msk.f32.mxu0 %vm11950_vm0, %v14121_v0 }
  0xe6   : > { %10977 = vmatmul.mubr.f32.vlgmr.msra.gmra.mrb[20].mxu1 %v12251_v15  ;;  %10909 = vmatprep.subr.mxu0 %v14121_v0 }
  0xe7   : > { %10980 = vmatpush3.msra.mxu1 %v12243_v10  ;;  %10981 = vmatprep.mubr.msk.f32.mxu1 %vm11950_vm0, %v14121_v0 }
  0xe8   : > { %10907 = vmatmul.mubr.f32.vlgmr.msra.gmra.mrb[2].mxu0 %v12153_v37  ;;  %10984 = vmatprep.subr.mxu1 %v14121_v0  ;;  %v3578_v37 = vand.u32 4294901760, %v12372_v4 }
  0xe9   : > { %10910 = vmatpush3.msra.mxu0 %v785_v61  ;;  %10911 = vmatprep.mubr.msk.f32.mxu0 %vm11950_vm0, %v14121_v0  ;;  %v12530_v61 = vand.u32 4294901760, %v2089_v34 }
  0xea   : > { %10982 = vmatmul.mubr.f32.vlgmr.msra.gmra.mrb[22].mxu1 %v12270_v26  ;;  %10914 = vmatprep.subr.mxu0 %v14121_v0  ;;  %v3579_v19 = vsub.f32 %v12372_v4, %v3578_v37 }
  0xeb   : > { %10985 = vmatpush3.msra.mxu1 %v2639_v29  ;;  %10986 = vmatprep.mubr.msk.f32.mxu1 %vm11950_vm0, %v14121_v0 }
  0xec   : > { %10912 = vmatmul.mubr.f32.vlgmr.msra.gmra.mrb[4].mxu0 %v12112_v12  ;;  %10989 = vmatprep.subr.mxu1 %v14121_v0  ;;  %v1240_v12 = vsub.f32 %v12361_v43, %v1239_v11 }
  0xed   : > { %10915 = vmatpush3.msra.mxu0 %v12157_v39  ;;  %10916 = vmatprep.mubr.msk.f32.mxu0 %vm11950_vm0, %v14121_v0  ;;  %v1246_v39 = vsub.f32 %v12377_v6, %v1245_v14 }
  0xee   : > { %10987 = vmatmul.mubr.f32.vlgmr.msra.gmra.mrb[24].mxu1 %v12234_v8  ;;  %10919 = vmatprep.subr.mxu0 %v14121_v0  ;;  %v1241_v29 = vand.u32 4294901760, %v1240_v12 }
  0xef   : > { %10990 = vmatpush3.msra.mxu1 %v12243_v10  ;;  %10991 = vmatprep.mubr.msk.f32.mxu1 %vm11950_vm0, %v14121_v0  ;;  %v12419_v10 = vand.u32 4294901760, %v3104_v18  ;;  %v1247_v32 = vand.u32 4294901760, %v1246_v39 }
  0xf0   : > { %10917 = vmatmul.mubr.f32.vlgmr.msra.gmra.mrb[6].mxu0 %v12115_v13  ;;  %10994 = vmatprep.subr.mxu1 %v14121_v0  ;;  %v3580_v13 = vand.u32 4294901760, %v3579_v19 }
  0xf1   : > { %10920 = vmatpush3.msra.mxu0 %v12144_v33  ;;  %10921 = vmatprep.mubr.msk.f32.mxu0 %vm11950_vm0, %v14121_v0  ;;  %v10784_v33 = vld [vmem:[%s14114_s1 + $0x10] sm:$0xf] }
  0xf2   : > { %10992 = vmatmul.mubr.f32.vlgmr.msra.gmra.mrb[26].mxu1 %v12234_v8  ;;  %1160 = vmatprep.subr.mxu0 %v12340_v56 }
  0xf3   : > { %10995 = vmatpush3.msra.mxu1 %v12351_v60  ;;  %10996 = vmatprep.mubr.msk.f32.mxu1 %vm11950_vm0, %v14121_v0 }
  0xf4   : > { %10922 = vmatmul.mubr.f32.vlgmr.msra.gmra.mrb[8].mxu0 %v12122_v17  ;;  %10999 = vmatprep.subr.mxu1 %v14121_v0  ;;  %v3965_v17 = vsel %vm228_vm1, %v10784_v33, 0  ;;  %v5841_v33 = vpop.permute.xlu0 %5840 }
  0xf5   : > { %1162 = vmatpush1.msra.mxu0 %v12355_v1  ;;  %1225 = vmatprep.mubr.f32.mxu0 %v14121_v0  ;;  %v12442_v28 = vand.u32 4294901760, %v3965_v17 }
  0xf6   : > { %10997 = vmatmul.mubr.f32.vlgmr.msra.gmra.mrb[28].mxu1 %v12419_v10  ;;  %1242 = vmatprep.subr.mxu0 %v1241_v29 }
  0xf7   : > { %11000 = vmatpush3.msra.mxu1 %v3580_v13  ;;  %11001 = vmatprep.mubr.msk.f32.mxu1 %vm11950_vm0, %v14121_v0  ;;  %v12452_v63 = vsub.f32 %v3965_v17, %v12442_v28 }
  0xf8   : > { %1231 = vmatmul.mubr.f32.vlgmr.msra.gmra.mrb[0].mxu0 %v12198_v57  ;;  %11004 = vmatprep.subr.mxu1 %v14121_v0  ;;  %v12447_v57 = vand.u32 4294901760, %v3971_v35 }
  0xf9   : > { %1248 = vmatpush1.msra.mxu0 %v1247_v32  ;;  %1311 = vmatprep.mubr.f32.mxu0 %v14121_v0  ;;  %v12467_v36 = vand.u32 4294901760, %v12452_v63  ;;  %v10786_v32 = vld [vmem:[%s14114_s1 + $0x18] sm:$0xf] }
  0xfa   : > { %11002 = vmatmul.mubr.f32.vlgmr.msra.gmra.mrb[30].mxu1 %v12343_v59  ;;  %1321 = vmatprep.subr.mxu0 %v12361_v43  ;;  %v12458_v38 = vsub.f32 %v3971_v35, %v12447_v57  ;;  %v4910_v43 = vsel %vm232_vm3, %v12227_v5, 0  ;;  %v5845_v35 = vsel %vm5842_vm7, %v12266_v22, %v5841_v33 }
  0xfb   : > { %11005 = vmatpush3.msra.mxu1 %v12372_v4  ;;  %11006 = vmatprep.mubr.msk.f32.mxu1 %vm11950_vm0, %v14121_v0  ;;  %v4043_v47 = vsub.f32 %v12452_v63, %v12467_v36  ;;  %v12527_v5 = vand.u32 4294901760, %v4910_v43 }
  0xfc   : > { %11009 = vmatprep.subr.mxu1 %v14121_v0  ;;  %v4517_v24 = vand.u32 4294901760, %v12458_v38 }
  0xfd   : > { %v12488_v25 = vand.u32 4294901760, %v4043_v47 }
  0xfe   : > { %11007 = vmatmul.mubr.f32.vlgmr.msra.gmra.mrb[32].mxu1 %v12366_v44  ;;  %v4518_v48 = vsub.f32 %v12458_v38, %v4517_v24 }
  0xff   : > { %11010 = vmatpush3.msra.mxu1 %v12351_v60  ;;  %11011 = vmatprep.mubr.msk.f32.mxu1 %vm11950_vm0, %v14121_v0 }
 0x100   : > { %1313 = vmatmul.mubr.f32.vlgmr.msra.gmra.mrb[0].mxu0 %v12125_v21  ;;  %11014 = vmatprep.subr.mxu1 %v14121_v0 }
 0x101   : > { %1324 = vmatpush1.msra.mxu0 %v12377_v6  ;;  %1387 = vmatprep.mubr.f32.mxu0 %v14121_v0  ;;  %v12541_v6 = vsub.f32 %v4910_v43, %v12527_v5  ;;  %v10787_v43 = vld [vmem:[%s14114_s1 + $0x1c] sm:$0xf] }
 0x102   : > { %11012 = vmatmul.mubr.f32.vlgmr.msra.gmra.mrb[34].mxu1 %v12384_v7  ;;  %1397 = vmatprep.subr.mxu0 %v12340_v56 }
 0x103   : > { %11015 = vmatpush3.msra.mxu1 %v3578_v37  ;;  %11016 = vmatprep.mubr.msk.f32.mxu1 %vm11950_vm0, %v14121_v0  ;;  %v5456_v18 = vand.u32 4294901760, %v12541_v6 }
 0x104   : > { %11019 = vmatprep.subr.mxu1 %v14121_v0 }
 0x105   : > { %v5457_v39 = vsub.f32 %v12541_v6, %v5456_v18 }
 0x106   : > { %11017 = vmatmul.mubr.f32.vlgmr.msra.gmra.mrb[36].mxu1 %v12343_v59 }
 0x107   : > { %11020 = vmatpush3.msra.mxu1 %v12351_v60  ;;  %11021 = vmatprep.mubr.msk.f32.mxu1 %vm11950_vm0, %v14121_v0  ;;  %v4904_v60 = vsel %vm228_vm1, %v10785_v40, 0 }
 0x108   : > { %1390 = vmatmul.mubr.f32.vlgmr.msra.gmra.mrb[0].mxu0 %v12141_v31  ;;  %11024 = vmatprep.subr.mxu1 %v14121_v0  ;;  %v4519_v31 = vand.u32 4294901760, %v4518_v48 }
 0x109   : > { %1399 = vmatpush1.msra.mxu0 %v12355_v1  ;;  %1462 = vmatprep.mubr.f32.mxu0 %v14121_v0 }
 0x10a   : > { %11022 = vmatmul.mubr.f32.vlgmr.msra.gmra.mrb[38].mxu1 %v12343_v59  ;;  %1475 = vmatprep.subr.mxu0 %v1239_v11  ;;  %v12546_v11 = vsub.f32 %v2089_v34, %v12530_v61 }
 0x10b   : > { %11025 = vmatpush3.msra.mxu1 %v12447_v57  ;;  %11026 = vmatprep.mubr.msk.f32.mxu1 %vm11950_vm0, %v14121_v0 }
 0x10c   : > { %11029 = vmatprep.subr.mxu1 %v14121_v0 }
 0x10e   : > { %11027 = vmatmul.mubr.f32.vlgmr.msra.gmra.mrb[40].mxu1 %v12488_v25 }
 0x10f   : > { %11030 = vmatpush3.msra.mxu1 %v4519_v31  ;;  %11031 = vmatprep.mubr.msk.f32.mxu1 %vm11950_vm0, %v14121_v0 }
 0x110   : > { %1466 = vmatmul.mubr.f32.vlgmr.msra.gmra.mrb[0].mxu0 %v12166_v42  ;;  %11034 = vmatprep.subr.mxu1 %v14121_v0  ;;  %v12522_v42 = vand.u32 4294901760, %v4904_v60 }
 0x111   : > { %1479 = vmatpush1.msra.mxu0 %v1245_v14  ;;  %1542 = vmatprep.mubr.f32.mxu0 %v14121_v0 }
 0x112   : > { %11032 = vmatmul.mubr.f32.vlgmr.msra.gmra.mrb[42].mxu1 %v12442_v28  ;;  %1551 = vmatprep.subr.mxu0 %v12340_v56  ;;  %v12534_v4 = vsub.f32 %v4904_v60, %v12522_v42  ;;  %v2175_v56 = vand.u32 4294901760, %v12517_v23  ;;  %v3030_v60 = vsel %vm232_vm3, %v12188_v51, 0  ;;  %v6790_v51 = vsel %vm228_vm1, %v10787_v43, 0 }
 0x113   : > { %11035 = vmatpush3.msra.mxu1 %v12458_v38  ;;  %11036 = vmatprep.mubr.msk.f32.mxu1 %vm11950_vm0, %v14121_v0  ;;  %v5853_v38 = vsel %vm232_vm3, %v5845_v35, 0  ;;  %v12657_v34 = vand.u32 4294901760, %v3030_v60  ;;  %v10788_v35 = vld [vmem:[%s14114_s1 + $0x20] sm:$0xf] }
 0x114   : > { %11039 = vmatprep.subr.mxu1 %v14121_v0  ;;  %v12553_v37 = vand.u32 4294901760, %v12534_v4  ;;  %v2176_v14 = vsub.f32 %v12517_v23, %v2175_v56 }
 0x116   : > { %11037 = vmatmul.mubr.f32.vlgmr.msra.gmra.mrb[44].mxu1 %v12452_v63  ;;  %v4982_v12 = vsub.f32 %v12534_v4, %v12553_v37  ;;  %v2177_v19 = vand.u32 4294901760, %v2176_v14 }
 0x117   : > { %11040 = vmatpush3.msra.mxu1 %v12447_v57  ;;  %11041 = vmatprep.mubr.msk.f32.mxu1 %vm11950_vm0, %v14121_v0 }
 0x118   : > { %1544 = vmatmul.mubr.f32.vlgmr.msra.gmra.mrb[0].mxu0 %v12125_v21  ;;  %11044 = vmatprep.subr.mxu1 %v14121_v0  ;;  %v12578_v13 = vand.u32 4294901760, %v4982_v12 }
 0x119   : > { %1553 = vmatpush1.msra.mxu0 %v12355_v1  ;;  %1616 = vmatprep.mubr.f32.mxu0 %v14121_v0  ;;  %v2181_v1 = vand.u32 4294901760, %v12546_v11 }
 0x11a   : > { %11042 = vmatmul.mubr.f32.vlgmr.msra.gmra.mrb[46].mxu1 %v12467_v36  ;;  %2096 = vmatprep.subr.mxu0 %v12500_v55 }
 0x11b   : > { %11045 = vmatpush3.msra.mxu1 %v4517_v24  ;;  %11046 = vmatprep.mubr.msk.f32.mxu1 %vm11950_vm0, %v14121_v0  ;;  %v2182_v29 = vsub.f32 %v12546_v11, %v2181_v1  ;;  %v12604_v24 = vand.u32 4294901760, %v5853_v38 }
 0x11c   : > { %11049 = vmatprep.subr.mxu1 %v14121_v0 }
 0x11d   : > { %v2183_v17 = vand.u32 4294901760, %v2182_v29  ;;  %v12615_v47 = vsub.f32 %v5853_v38, %v12604_v24 }
 0x11e   : > { %11047 = vmatmul.mubr.f32.vlgmr.msra.gmra.mrb[48].mxu1 %v12442_v28 }
 0x11f   : > { %11050 = vmatpush3.msra.mxu1 %v12447_v57  ;;  %11051 = vmatprep.mubr.msk.f32.mxu1 %vm11950_vm0, %v14121_v0  ;;  %v5847_v57 = vsel %vm228_vm1, %v10786_v32, 0  ;;  %v6399_v53 = vand.u32 4294901760, %v12615_v47 }
 0x120   : > { %1618 = vmatmul.mubr.f32.vlgmr.msra.gmra.mrb[0].mxu0 %v12125_v21  ;;  %11054 = vmatprep.subr.mxu1 %v14121_v0  ;;  %v5458_v21 = vand.u32 4294901760, %v5457_v39  ;;  %v12599_v22 = vand.u32 4294901760, %v5847_v57 }
 0x121   : > { %2098 = vmatpush1.msra.mxu0 %v12530_v61  ;;  %2161 = vmatprep.mubr.f32.mxu0 %v14121_v0  ;;  %v6400_v31 = vsub.f32 %v12615_v47, %v6399_v53 }
 0x122   : > { %11052 = vmatmul.mubr.f32.vlgmr.msra.gmra.mrb[50].mxu1 %v12442_v28  ;;  %2178 = vmatprep.subr.mxu0 %v2177_v19 }
 0x123   : > { %11055 = vmatpush3.msra.mxu1 %v12527_v5  ;;  %11056 = vmatprep.mubr.msk.f32.mxu1 %vm11950_vm0, %v14121_v0 }
 0x124   : > { %11059 = vmatprep.subr.mxu1 %v14121_v0 }
 0x126   : > { %11057 = vmatmul.mubr.f32.vlgmr.msra.gmra.mrb[52].mxu1 %v12578_v13 }
 0x127   : > { %11060 = vmatpush3.msra.mxu1 %v5458_v21  ;;  %11061 = vmatprep.mubr.msk.f32.mxu1 %vm11950_vm0, %v14121_v0 }
 0x128   : > { %2167 = vmatmul.mubr.f32.vlgmr.msra.gmra.mrb[0].mxu0 %v12304_v45  ;;  %11064 = vmatprep.subr.mxu1 %v14121_v0  ;;  %v12609_v45 = vsub.f32 %v5847_v57, %v12599_v22 }
 0x129   : > { %2184 = vmatpush1.msra.mxu0 %v2183_v17  ;;  %2247 = vmatprep.mubr.f32.mxu0 %v14121_v0  ;;  %v7727_v17 = vpop.permute.xlu0 %7726 }
 0x12a   : > { %2257 = vmatprep.subr.mxu0 %v12517_v23  ;;  %11062 = vmatmul.mubr.f32.vlgmr.msra.gmra.mrb[54].mxu1 %v12522_v42  ;;  %v12624_v48 = vand.u32 4294901760, %v12609_v45  ;;  %v6788_v23 = vsel %vm6785_vm8, %v12281_v30, %v6784_v2  ;;  %v12670_v30 = vsub.f32 %v3030_v60, %v12657_v34  ;;  %v7731_v38 = vsel %vm7728_vm9, %v12322_v50, %v7727_v17 }
 0x12b   : > { %11065 = vmatpush3.msra.mxu1 %v12541_v6  ;;  %11066 = vmatprep.mubr.msk.f32.mxu1 %vm11950_vm0, %v14121_v0 }
 0x12c   : > { %11069 = vmatprep.subr.mxu1 %v14121_v0  ;;  %v5925_v54 = vsub.f32 %v12609_v45, %v12624_v48 }
 0x12e   : > { %11067 = vmatmul.mubr.f32.vlgmr.msra.gmra.mrb[56].mxu1 %v12534_v4  ;;  %v12644_v40 = vand.u32 4294901760, %v5925_v54  ;;  %v11958_v54 = vmov 0  }
 0x12f   : > { %11070 = vmatpush3.msra.mxu1 %v12527_v5  ;;  %11071 = vmatprep.mubr.msk.f32.mxu1 %vm11950_vm0, %v14121_v0 }
 0x130   : > { %2249 = vmatmul.mubr.f32.vlgmr.msra.gmra.mrb[0].mxu0 %v12234_v8  ;;  %11074 = vmatprep.subr.mxu1 %v14121_v0 }
 0x131   : > { %2260 = vmatpush1.msra.mxu0 %v12546_v11  ;;  %2323 = vmatprep.mubr.f32.mxu0 %v14121_v0 }
 0x132   : > { %2333 = vmatprep.subr.mxu0 %v12500_v55  ;;  %11072 = vmatmul.mubr.f32.vlgmr.msra.gmra.mrb[58].mxu1 %v12553_v37 }
 0x133   : > { %11075 = vmatpush3.msra.mxu1 %v5456_v18  ;;  %11076 = vmatprep.mubr.msk.f32.mxu1 %vm11950_vm0, %v14121_v0 }
 0x134   : > { %11079 = vmatprep.subr.mxu1 %v14121_v0  ;;  %11845 = vset.pattern.permute.xlu1 %v11958_v54 }
 0x135   : > { %11846 = vset.pattern.permute.xlu0 %v11958_v54 }
 0x136   : > { %11077 = vmatmul.mubr.f32.vlgmr.msra.gmra.mrb[60].mxu1 %v12522_v42 }
 0x137   : > { %11080 = vmatpush3.msra.mxu1 %v12527_v5  ;;  %11081 = vmatprep.mubr.msk.f32.mxu1 %vm11950_vm0, %v14121_v0  ;;  %v6796_v5 = vsel %vm232_vm3, %v6788_v23, 0 }
 0x138   : > { %2326 = vmatmul.mubr.f32.vlgmr.msra.gmra.mrb[0].mxu0 %v12251_v15  ;;  %11084 = vmatprep.subr.mxu1 %v14121_v0  ;;  %v6401_v15 = vand.u32 4294901760, %v6400_v31  ;;  %v12681_v6 = vand.u32 4294901760, %v6796_v5 }
 0x139   : > { %2335 = vmatpush1.msra.mxu0 %v12530_v61  ;;  %2398 = vmatprep.mubr.f32.mxu0 %v14121_v0 }
 0x13a   : > { %2411 = vmatprep.subr.mxu0 %v2175_v56  ;;  %11082 = vmatmul.mubr.f32.vlgmr.msra.gmra.mrb[62].mxu1 %v12522_v42  ;;  %v3028_v56 = vsel %vm232_vm3, %v12201_v58, 0  ;;  %v12695_v14 = vsub.f32 %v6796_v5, %v12681_v6  ;;  %v3969_v5 = vsel %vm232_vm3, %v12221_v3, 0 }
 0x13b   : > { %11085 = vmatpush3.msra.mxu1 %v12604_v24  ;;  %11086 = vmatprep.mubr.msk.f32.mxu1 %vm11950_vm0, %v14121_v0  ;;  %v12684_v11 = vand.u32 4294901760, %v3028_v56 }
 0x13c   : > { %11089 = vmatprep.subr.mxu1 %v14121_v0  ;;  %v7342_v19 = vand.u32 4294901760, %v12695_v14 }
 0x13d   : > { %v12700_v18 = vsub.f32 %v3028_v56, %v12684_v11  ;;  %v12805_v56 = vand.u32 4294901760, %v3969_v5 }
 0x13e   : > { %11087 = vmatmul.mubr.f32.vlgmr.msra.gmra.mrb[64].mxu1 %v12644_v40  ;;  %v7343_v33 = vsub.f32 %v12695_v14, %v7342_v19 }
 0x13f   : > { %11090 = vmatpush3.msra.mxu1 %v6401_v15  ;;  %11091 = vmatprep.mubr.msk.f32.mxu1 %vm11950_vm0, %v14121_v0  ;;  %v4052_v3 = vsub.f32 %v3969_v5, %v12805_v56 }
 0x140   : > { %2402 = vmatmul.mubr.f32.vlgmr.msra.gmra.mrb[0].mxu0 %v12270_v26  ;;  %11094 = vmatprep.subr.mxu1 %v14121_v0  ;;  %v12676_v26 = vand.u32 4294901760, %v6790_v51 }
 0x141   : > { %2415 = vmatpush1.msra.mxu0 %v2181_v1  ;;  %2478 = vmatprep.mubr.f32.mxu0 %v14121_v0 }
 0x142   : > { %2487 = vmatprep.subr.mxu0 %v12500_v55  ;;  %11092 = vmatmul.mubr.f32.vlgmr.msra.gmra.mrb[66].mxu1 %v12599_v22  ;;  %v12688_v58 = vsub.f32 %v6790_v51, %v12676_v26  ;;  %v3114_v55 = vand.u32 4294901760, %v12670_v30 }
 0x143   : > { %11095 = vmatpush3.msra.mxu1 %v12615_v47  ;;  %11096 = vmatprep.mubr.msk.f32.mxu1 %vm11950_vm0, %v14121_v0  ;;  %v7739_v47 = vsel %vm232_vm3, %v7731_v38, 0 }
 0x144   : > { %11099 = vmatprep.subr.mxu1 %v14121_v0  ;;  %v12707_v1 = vand.u32 4294901760, %v12688_v58  ;;  %v3115_v12 = vsub.f32 %v12670_v30, %v3114_v55 }
 0x146   : > { %11097 = vmatmul.mubr.f32.vlgmr.msra.gmra.mrb[68].mxu1 %v12609_v45  ;;  %v6868_v39 = vsub.f32 %v12688_v58, %v12707_v1  ;;  %v3116_v29 = vand.u32 4294901760, %v3115_v12 }
 0x147   : > { %11100 = vmatpush3.msra.mxu1 %v12604_v24  ;;  %11101 = vmatprep.mubr.msk.f32.mxu1 %vm11950_vm0, %v14121_v0 }
 0x148   : > { %2480 = vmatmul.mubr.f32.vlgmr.msra.gmra.mrb[0].mxu0 %v12234_v8  ;;  %11104 = vmatprep.subr.mxu1 %v14121_v0  ;;  %v12732_v32 = vand.u32 4294901760, %v6868_v39 }
 0x149   : > { %2489 = vmatpush1.msra.mxu0 %v12530_v61  ;;  %2552 = vmatprep.mubr.f32.mxu0 %v14121_v0  ;;  %v3120_v61 = vand.u32 4294901760, %v12700_v18 }
 0x14a   : > { %11102 = vmatmul.mubr.f32.vlgmr.msra.gmra.mrb[70].mxu1 %v12624_v48  ;;  %3035 = vmatprep.subr.mxu0 %v12657_v34 }
 0x14b   : > { %11105 = vmatpush3.msra.mxu1 %v6399_v53  ;;  %11106 = vmatprep.mubr.msk.f32.mxu1 %vm11950_vm0, %v14121_v0  ;;  %v3121_v21 = vsub.f32 %v12700_v18, %v3120_v61  ;;  %v8655_v53 = vld [vmem:[%s14115_s2] sm:$0xf] }
 0x14c   : > { %11109 = vmatprep.subr.mxu1 %v14121_v0  ;;  %8658 = vperm.xlu1 %11845, %v8655_v53  }
 0x14d   : > { %v3122_v57 = vand.u32 4294901760, %v3121_v21 }
 0x14e   : > { %11107 = vmatmul.mubr.f32.vlgmr.msra.gmra.mrb[72].mxu1 %v12599_v22 }
 0x14f   : > { %11110 = vmatpush3.msra.mxu1 %v12604_v24  ;;  %11111 = vmatprep.mubr.msk.f32.mxu1 %vm11950_vm0, %v14121_v0  ;;  %v7733_v24 = vsel %vm228_vm1, %v10788_v35, 0  ;;  %v4906_v35 = vsel %vm232_vm3, %v12254_v16, 0 }
 0x150   : > { %2554 = vmatmul.mubr.f32.vlgmr.msra.gmra.mrb[0].mxu0 %v12234_v8  ;;  %11114 = vmatprep.subr.mxu1 %v14121_v0  ;;  %v7344_v8 = vand.u32 4294901760, %v7343_v33  ;;  %v12753_v50 = vand.u32 4294901760, %v7733_v24 }
 0x151   : > { %3037 = vmatpush1.msra.mxu0 %v12684_v11  ;;  %3100 = vmatprep.mubr.f32.mxu0 %v14121_v0 }
 0x152   : > { %11112 = vmatmul.mubr.f32.vlgmr.msra.gmra.mrb[74].mxu1 %v12599_v22  ;;  %3117 = vmatprep.subr.mxu0 %v3116_v29  ;;  %v12766_v31 = vsub.f32 %v7733_v24, %v12753_v50  ;;  %v4908_v29 = vsel %vm232_vm3, %v12238_v9, 0 }
 0x153   : > { %11115 = vmatpush3.msra.mxu1 %v12681_v6  ;;  %11116 = vmatprep.mubr.msk.f32.mxu1 %vm11950_vm0, %v14121_v0  ;;  %v12865_v21 = vand.u32 4294901760, %v4908_v29 }
 0x154   : > { %11119 = vmatprep.subr.mxu1 %v14121_v0  ;;  %v12779_v60 = vand.u32 4294901760, %v12766_v31 }
 0x156   : > { %11117 = vmatmul.mubr.f32.vlgmr.msra.gmra.mrb[76].mxu1 %v12732_v32  ;;  %v7811_v43 = vsub.f32 %v12766_v31, %v12779_v60 }
 0x157   : > { %11120 = vmatpush3.msra.mxu1 %v7344_v8  ;;  %11121 = vmatprep.mubr.msk.f32.mxu1 %vm11950_vm0, %v14121_v0  ;;  %v12872_v8 = vsub.f32 %v4908_v29, %v12865_v21 }
 0x158   : > { %3106 = vmatmul.mubr.f32.vlgmr.msra.gmra.mrb[0].mxu0 %v12419_v10  ;;  %11124 = vmatprep.subr.mxu1 %v14121_v0  ;;  %v12761_v10 = vand.u32 4294901760, %v7739_v47  ;;  %v12797_v51 = vand.u32 4294901760, %v7811_v43 }
 0x159   : > { %3123 = vmatpush1.msra.mxu0 %v3122_v57  ;;  %3186 = vmatprep.mubr.f32.mxu0 %v14121_v0  ;;  %v12877_v57 = vand.u32 4294901760, %v4906_v35 }
 0x15a   : > { %3196 = vmatprep.subr.mxu0 %v12670_v30  ;;  %11122 = vmatmul.mubr.f32.vlgmr.msra.gmra.mrb[78].mxu1 %v12676_v26  ;;  %v8284_v2 = vsub.f32 %v7739_v47, %v12761_v10  ;;  %v3967_v30 = vsel %vm232_vm3, %v12210_v62, 0 }
 0x15b   : > { %11125 = vmatpush3.msra.mxu1 %v12695_v14  ;;  %11126 = vmatprep.mubr.msk.f32.mxu1 %vm11950_vm0, %v14121_v0  ;;  %v12884_v47 = vsub.f32 %v4906_v35, %v12877_v57 }
 0x15c   : > { %11129 = vmatprep.subr.mxu1 %v14121_v0  ;;  %v8285_v15 = vand.u32 4294901760, %v8284_v2 }
 0x15d   : > { %v4998_v54 = vand.u32 4294901760, %v12884_v47 }
 0x15e   : > { %11127 = vmatmul.mubr.f32.vlgmr.msra.gmra.mrb[80].mxu1 %v12688_v58  ;;  %v8286_v23 = vsub.f32 %v8284_v2, %v8285_v15 }
 0x15f   : > { %11130 = vmatpush3.msra.mxu1 %v12681_v6  ;;  %11131 = vmatprep.mubr.msk.f32.mxu1 %vm11950_vm0, %v14121_v0 }
 0x160   : > { %3188 = vmatmul.mubr.f32.vlgmr.msra.gmra.mrb[0].mxu0 %v12343_v59  ;;  %11134 = vmatprep.subr.mxu1 %v14121_v0 }
 0x161   : > { %3199 = vmatpush1.msra.mxu0 %v12700_v18  ;;  %3262 = vmatprep.mubr.f32.mxu0 %v14121_v0 }
 0x162   : > { %3272 = vmatprep.subr.mxu0 %v12657_v34  ;;  %11132 = vmatmul.mubr.f32.vlgmr.msra.gmra.mrb[82].mxu1 %v12707_v1 }
 0x163   : > { %11135 = vmatpush3.msra.mxu1 %v7342_v19  ;;  %11136 = vmatprep.mubr.msk.f32.mxu1 %vm11950_vm0, %v14121_v0 }
 0x164   : > { %11139 = vmatprep.subr.mxu1 %v14121_v0 }
 0x166   : > { %11137 = vmatmul.mubr.f32.vlgmr.msra.gmra.mrb[84].mxu1 %v12676_v26 }
 0x167   : > { %11140 = vmatpush3.msra.mxu1 %v12681_v6  ;;  %11141 = vmatprep.mubr.msk.f32.mxu1 %vm11950_vm0, %v14121_v0  ;;  %v4053_v6 = vand.u32 4294901760, %v4052_v3 }
 0x168   : > { %3265 = vmatmul.mubr.f32.vlgmr.msra.gmra.mrb[0].mxu0 %v12366_v44  ;;  %11144 = vmatprep.subr.mxu1 %v14121_v0  ;;  %v8287_v44 = vand.u32 4294901760, %v8286_v23  ;;  %v4999_v23 = vsub.f32 %v12884_v47, %v4998_v54 }
 0x169   : > { %3274 = vmatpush1.msra.mxu0 %v12684_v11  ;;  %3337 = vmatprep.mubr.f32.mxu0 %v14121_v0 }
 0x16a   : > { %3350 = vmatprep.subr.mxu0 %v3114_v55  ;;  %11142 = vmatmul.mubr.f32.vlgmr.msra.gmra.mrb[86].mxu1 %v12676_v26 }
 0x16b   : > { %11145 = vmatpush3.msra.mxu1 %v12761_v10  ;;  %11146 = vmatprep.mubr.msk.f32.mxu1 %vm11950_vm0, %v14121_v0 }
 0x16c   : > { %11149 = vmatprep.subr.mxu1 %v14121_v0 }
 0x16e   : > { %11147 = vmatmul.mubr.f32.vlgmr.msra.gmra.mrb[88].mxu1 %v12797_v51 }
 0x16f   : > { %11150 = vmatpush3.msra.mxu1 %v8287_v44  ;;  %11151 = vmatprep.mubr.msk.f32.mxu1 %vm11950_vm0, %v14121_v0 }
 0x170   : > { %3341 = vmatmul.mubr.f32.vlgmr.msra.gmra.mrb[0].mxu0 %v12384_v7  ;;  %11154 = vmatprep.subr.mxu1 %v14121_v0  ;;  %v12823_v7 = vand.u32 4294901760, %v3967_v30 }
 0x171   : > { %3354 = vmatpush1.msra.mxu0 %v3120_v61  ;;  %3417 = vmatprep.mubr.f32.mxu0 %v14121_v0 }
 0x172   : > { %3426 = vmatprep.subr.mxu0 %v12657_v34  ;;  %11152 = vmatmul.mubr.f32.vlgmr.msra.gmra.mrb[90].mxu1 %v12753_v50  ;;  %v4058_v62 = vsub.f32 %v3967_v30, %v12823_v7  ;;  %v4054_v34 = vsub.f32 %v4052_v3, %v4053_v6 }
 0x173   : > { %11155 = vmatpush3.msra.mxu1 %v8284_v2  ;;  %11156 = vmatprep.mubr.msk.f32.mxu1 %vm11950_vm0, %v14121_v0 }
 0x174   : > { %11159 = vmatprep.subr.mxu1 %v14121_v0  ;;  %v4059_v55 = vand.u32 4294901760, %v4058_v62  ;;  %v4055_v14 = vand.u32 4294901760, %v4054_v34 }
 0x176   : > { %11157 = vmatmul.mubr.f32.vlgmr.msra.gmra.mrb[92].mxu1 %v12766_v31 }
 0x177   : > { %11160 = vmatpush3.msra.mxu1 %v12761_v10  ;;  %11161 = vmatprep.mubr.msk.f32.mxu1 %vm11950_vm0, %v14121_v0 }
 0x178   : > { %3419 = vmatmul.mubr.f32.vlgmr.msra.gmra.mrb[0].mxu0 %v12343_v59  ;;  %11164 = vmatprep.subr.mxu1 %v14121_v0 }
 0x179   : > { %3428 = vmatpush1.msra.mxu0 %v12684_v11  ;;  %3491 = vmatprep.mubr.f32.mxu0 %v14121_v0  ;;  %v4060_v11 = vsub.f32 %v4058_v62, %v4059_v55 }
 0x17a   : > { %11162 = vmatmul.mubr.f32.vlgmr.msra.gmra.mrb[94].mxu1 %v12779_v60  ;;  %3974 = vmatprep.subr.mxu0 %v12805_v56 }
 0x17b   : > { %11165 = vmatpush3.msra.mxu1 %v8285_v15  ;;  %11166 = vmatprep.mubr.msk.f32.mxu1 %vm11950_vm0, %v14121_v0  ;;  %v4061_v18 = vand.u32 4294901760, %v4060_v11 }
 0x17c   : > { %11169 = vmatprep.subr.mxu1 %v14121_v0 }
 0x17e   : > { %11167 = vmatmul.mubr.f32.vlgmr.msra.gmra.mrb[96].mxu1 %v12753_v50 }
 0x17f   : > { %11170 = vmatpush3.msra.mxu1 %v12761_v10  ;;  %11171 = vmatprep.mubr.msk.f32.mxu1 %vm11950_vm0, %v14121_v0 }
 0x180   : > { %3493 = vmatmul.mubr.f32.vlgmr.msra.gmra.mrb[0].mxu0 %v12343_v59 }
 0x181   : > { %3976 = vmatpush1.msra.mxu0 %v12823_v7  ;;  %4039 = vmatprep.mubr.f32.mxu0 %v14121_v0 }
 0x182   : > { %11172 = vmatmul.mubr.f32.vlgmr.msra.gmra.mrb[98].mxu1 %v12753_v50  ;;  %4056 = vmatprep.subr.mxu0 %v4055_v14 }
 0x188   : > { %4045 = vmatmul.mubr.f32.vlgmr.msra.gmra.mrb[0].mxu0 %v12488_v25 }
 0x189   : > { %4062 = vmatpush1.msra.mxu0 %v4061_v18  ;;  %4125 = vmatprep.mubr.f32.mxu0 %v14121_v0 }
 0x18a   : > { %4135 = vmatprep.subr.mxu0 %v4052_v3 }
 0x190   : > { %4127 = vmatmul.mubr.f32.vlgmr.msra.gmra.mrb[0].mxu0 %v12442_v28 }
 0x191   : > { %4138 = vmatpush1.msra.mxu0 %v4058_v62  ;;  %4201 = vmatprep.mubr.f32.mxu0 %v14121_v0  ;;  %v12851_v59 = vpop.f32.mrb[0].mxu1 }
 0x192   : > { %4211 = vmatprep.subr.mxu0 %v12805_v56  ;;  %v10928_v12 = vpop.f32.mrb[1].mxu1 }
 0x195   : > { %v12854_v19 = vpop.f32.mrb[2].mxu1 }
 0x196   : > { %v10933_v61 = vpop.f32.mrb[3].mxu1 }
 0x198   : > { %4204 = vmatmul.mubr.f32.vlgmr.msra.gmra.mrb[0].mxu0 %v12452_v63 }
 0x199   : > { %4213 = vmatpush1.msra.mxu0 %v12823_v7  ;;  %4276 = vmatprep.mubr.f32.mxu0 %v14121_v0  ;;  %v12859_v25 = vpop.f32.mrb[4].mxu1 }
 0x19a   : > { %4289 = vmatprep.subr.mxu0 %v4053_v6  ;;  %v10938_v39 = vpop.f32.mrb[5].mxu1 }
 0x19d   : > { %v12863_v33 = vpop.f32.mrb[6].mxu1 }
 0x19e   : > { %v10943_v17 = vpop.f32.mrb[7].mxu1 }
 0x1a0   : > { %4280 = vmatmul.mubr.f32.vlgmr.msra.gmra.mrb[0].mxu0 %v12467_v36  ;;  %v4992_v36 = vand.u32 4294901760, %v12872_v8 }
 0x1a1   : > { %4293 = vmatpush1.msra.mxu0 %v4059_v55  ;;  %4356 = vmatprep.mubr.f32.mxu0 %v14121_v0  ;;  %v12869_v63 = vpop.f32.mrb[8].mxu1 }
 0x1a2   : > { %4365 = vmatprep.subr.mxu0 %v12805_v56  ;;  %v10948_v9 = vpop.f32.mrb[9].mxu1  ;;  %v4993_v53 = vsub.f32 %v12872_v8, %v4992_v36  ;;  %v5000_v56 = vand.u32 4294901760, %v4999_v23 }
 0x1a4   : > { %v4994_v15 = vand.u32 4294901760, %v4993_v53 }
 0x1a5   : > { %v12879_v38 = vpop.f32.mrb[10].mxu1 }
 0x1a6   : > { %v10953_v24 = vpop.f32.mrb[11].mxu1 }
 0x1a8   : > { %4358 = vmatmul.mubr.f32.vlgmr.msra.gmra.mrb[0].mxu0 %v12442_v28 }
 0x1a9   : > { %4367 = vmatpush1.msra.mxu0 %v12823_v7  ;;  %4430 = vmatprep.mubr.f32.mxu0 %v14121_v0  ;;  %v12888_v16 = vpop.f32.mrb[12].mxu1 }
 0x1aa   : > { %4913 = vmatprep.subr.mxu0 %v12865_v21  ;;  %v10958_v10 = vpop.f32.mrb[13].mxu1 }
 0x1ad   : > { %v12893_v2 = vpop.f32.mrb[14].mxu1 }
 0x1ae   : > { %v10963_v43 = vpop.f32.mrb[15].mxu1 }
 0x1b0   : > { %4432 = vmatmul.mubr.f32.vlgmr.msra.gmra.mrb[0].mxu0 %v12442_v28 }
 0x1b1   : > { %4915 = vmatpush1.msra.mxu0 %v12877_v57  ;;  %4978 = vmatprep.mubr.f32.mxu0 %v14121_v0  ;;  %v2632_v5 = vpop.f32.mrb[16].mxu1 }
 0x1b2   : > { %4995 = vmatprep.subr.mxu0 %v4994_v15  ;;  %v10968_v44 = vpop.f32.mrb[17].mxu1 }
 0x1b5   : > { %v2708_v3 = vpop.f32.mrb[18].mxu1 }
 0x1b6   : > { %v2709_v30 = vadd.f32 %v2708_v3, %v2632_v5  ;;  %v10973_v7 = vpop.f32.mrb[19].mxu1 }
 0x1b8   : > { %4984 = vmatmul.mubr.f32.vlgmr.msra.gmra.mrb[0].mxu0 %v12578_v13 }
 0x1b9   : > { %5001 = vmatpush1.msra.mxu0 %v5000_v56  ;;  %5064 = vmatprep.mubr.f32.mxu0 %v14121_v0  ;;  %v2782_v6 = vpop.f32.mrb[20].mxu1  ;;  %v5851_v56 = vsel %vm232_vm3, %v12274_v27, 0  ;;  %v5849_v27 = vsel %vm232_vm3, %v12264_v20, 0 }
 0x1ba   : > { %5074 = vmatprep.subr.mxu0 %v12872_v8  ;;  %v2783_v28 = vadd.f32 %v2782_v6, %v2709_v30  ;;  %v10978_v62 = vpop.f32.mrb[21].mxu1  ;;  %v12913_v7 = vand.u32 4294901760, %v5851_v56 }
 0x1bb   : > { %v776_v34 = vpop.f32.mrb[2].mxu0 }
 0x1bc   : > { %v10908_v55 = vpop.f32.mrb[3].mxu0 }
 0x1bd   : > { %v2856_v14 = vpop.f32.mrb[22].mxu1  ;;  %v12927_v55 = vand.u32 4294901760, %v5849_v27 }
 0x1be   : > { %v2857_v11 = vadd.f32 %v2856_v14, %v2783_v28  ;;  %v10983_v18 = vpop.f32.mrb[23].mxu1 }
 0x1bf   : > { %v852_v12 = vpop.f32.mrb[4].mxu0  ;;  %v12934_v20 = vsub.f32 %v5849_v27, %v12927_v55 }
 0x1c0   : > { %5066 = vmatmul.mubr.f32.vlgmr.msra.gmra.mrb[0].mxu0 %v12522_v42  ;;  %v853_v61 = vadd.f32 %v852_v12, %v776_v34  ;;  %v10913_v39 = vpop.f32.mrb[5].mxu0 }
 0x1c1   : > { %5077 = vmatpush1.msra.mxu0 %v12884_v47  ;;  %5140 = vmatprep.mubr.f32.mxu0 %v14121_v0  ;;  %v2930_v13 = vpop.f32.mrb[24].mxu1 }
 0x1c2   : > { %5150 = vmatprep.subr.mxu0 %v12865_v21  ;;  %v2931_v29 = vadd.f32 %v2930_v13, %v2857_v11  ;;  %v10988_v17 = vpop.f32.mrb[25].mxu1 }
 0x1c3   : > { %v926_v8 = vpop.f32.mrb[6].mxu0 }
 0x1c4   : > { %v927_v35 = vadd.f32 %v926_v8, %v853_v61  ;;  %v10918_v9 = vpop.f32.mrb[7].mxu0 }
 0x1c5   : > { %v3002_v24 = vpop.f32.mrb[26].mxu1 }
 0x1c6   : > { %v3003_v53 = vadd.f32 %v3002_v24, %v2931_v29  ;;  %v10993_v10 = vpop.f32.mrb[27].mxu1 }
 0x1c7   : > { %v1000_v15 = vpop.f32.mrb[8].mxu0 }
 0x1c8   : > { %v1001_v43 = vadd.f32 %v1000_v15, %v927_v35  ;;  %5143 = vmatmul.mubr.f32.vlgmr.msra.gmra.mrb[0].mxu0 %v12534_v4  ;;  %v10923_v23 = vpop.f32.mrb[9].mxu0 }
 0x1c9   : > { %5152 = vmatpush1.msra.mxu0 %v12877_v57  ;;  %5215 = vmatprep.mubr.f32.mxu0 %v14121_v0  ;;  %v3571_v47 = vpop.f32.mrb[28].mxu1 }
 0x1ca   : > { %v1075_v5 = vadd.f32 %v12851_v59, %v1001_v43  ;;  %5228 = vmatprep.subr.mxu0 %v4992_v36  ;;  %v10998_v44 = vpop.f32.mrb[29].mxu1  ;;  %v12920_v36 = vsub.f32 %v5851_v56, %v12913_v7  ;;  %v8665_v56 = vld [vmem:[#allocation2 + $0x8] sm:$0xff] }
 0x1cc   : > { %v1147_v3 = vadd.f32 %v12854_v19, %v1075_v5  ;;  %v5935_v18 = vand.u32 4294901760, %v12920_v36 }
 0x1cd   : > { %v3647_v30 = vpop.f32.mrb[30].mxu1 }
 0x1ce   : > { %v1697_v4 = vadd.f32 %v12859_v25, %v1147_v3  ;;  %v3648_v6 = vadd.f32 %v3647_v30, %v3571_v47  ;;  %v11003_v28 = vpop.f32.mrb[31].mxu1  ;;  %v8667_v3 = vld [vmem:[#allocation2 + $0x18] sm:$0xff]  ;;  %v8664_v30 = vld [vmem:[#allocation2] sm:$0xff] }
 0x1cf   : > { %v8666_v28 = vld [vmem:[#allocation2 + $0x10] sm:$0xff] }
 0x1d0   : > { %v1773_v62 = vadd.f32 %v12863_v33, %v1697_v4  ;;  %5219 = vmatmul.mubr.f32.vlgmr.msra.gmra.mrb[0].mxu0 %v12553_v37 }
 0x1d1   : > { %5232 = vmatpush1.msra.mxu0 %v4998_v54  ;;  %v3721_v59 = vpop.f32.mrb[32].mxu1  ;;  %5295 = vmatprep.mubr.f32.mxu0 %v14121_v0 }
 0x1d2   : > { %v1847_v19 = vadd.f32 %v12869_v63, %v1773_v62  ;;  %5304 = vmatprep.subr.mxu0 %v12865_v21  ;;  %v3722_v25 = vadd.f32 %v3721_v59, %v3648_v6  ;;  %v11008_v34 = vpop.f32.mrb[33].mxu1  ;;  %v8752_v6 = vand.u32 4294901760, %v8667_v3  ;;  %v8750_v62 = vand.u32 4294901760, %v8664_v30  ;;  %v8669_v59 = vld [vmem:[#allocation2 + $0x28] sm:$0xff] }
 0x1d3   : > { %v8671_v34 = vld [vmem:[#allocation2 + $0x38] sm:$0xff] }
 0x1d4   : > { %v1921_v33 = vadd.f32 %v12879_v38, %v1847_v19 }
 0x1d5   : > { %v3795_v37 = vpop.f32.mrb[34].mxu1 }
 0x1d6   : > { %v1995_v54 = vadd.f32 %v12888_v16, %v1921_v33  ;;  %v3796_v14 = vadd.f32 %v3795_v37, %v3722_v25  ;;  %v11013_v11 = vpop.f32.mrb[35].mxu1  ;;  %v5936_v16 = vsub.f32 %v12920_v36, %v5935_v18  ;;  %v8754_v25 = vand.u32 4294901760, %v8666_v28  ;;  %v8668_v37 = vld [vmem:[#allocation2 + $0x20] sm:$0xff] }
 0x1d7   : > { %v8756_v33 = vand.u32 4294901760, %v8669_v59  ;;  %v12958_v11 = vsub.f32 %v8667_v3, %v8752_v6  ;;  %v8679_v3 = vld [vmem:[#allocation2 + $0x78] sm:$0xff] }
 0x1d8   : > { %v2067_v12 = vadd.f32 %v12893_v2, %v1995_v54  ;;  %5297 = vmatmul.mubr.f32.vlgmr.msra.gmra.mrb[0].mxu0 %v12522_v42  ;;  %v5941_v2 = vand.u32 4294901760, %v12934_v20  ;;  %v5937_v29 = vand.u32 4294901760, %v5936_v16  ;;  %v8670_v54 = vld [vmem:[#allocation2 + $0x30] sm:$0xff] }
 0x1d9   : > { %5306 = vmatpush1.msra.mxu0 %v12877_v57  ;;  %v3869_v21 = vpop.f32.mrb[36].mxu1  ;;  %5369 = vmatprep.mubr.f32.mxu0 %v14121_v0  ;;  %14368 = vst [vmem:[#allocation9_spill] sm:$0xff] %v12958_v11  ;;  %v8762_v16 = vand.u32 4294901760, %v8670_v54 }
 0x1da   : > { %v3008_v63 = vadd.f32 %v3003_v53, %v2067_v12  ;;  %v3870_v38 = vadd.f32 %v3869_v21, %v3796_v14  ;;  %v11018_v61 = vpop.f32.mrb[37].mxu1  ;;  %5856 = vmatprep.subr.mxu0 %v12913_v7  ;;  %v5942_v57 = vsub.f32 %v12934_v20, %v5941_v2  ;;  %v12960_v12 = vsub.f32 %v8664_v30, %v8750_v62 }
 0x1db   : > { %v8760_v21 = vand.u32 4294901760, %v8671_v34  ;;  %v8758_v61 = vand.u32 4294901760, %v8668_v37 }
 0x1dc   : > { %v5943_v24 = vand.u32 4294901760, %v5942_v57  ;;  %14369 = vst [vmem:[#allocation10_spill] sm:$0xff] %v12960_v12 }
 0x1dd   : > { %v3941_v39 = vpop.f32.mrb[38].mxu1 }
 0x1de   : > { %v3942_v13 = vadd.f32 %v3941_v39, %v3870_v38  ;;  %v11023_v17 = vpop.f32.mrb[39].mxu1  ;;  %v12964_v38 = vsub.f32 %v8669_v59, %v8756_v33  ;;  %v8678_v59 = vld [vmem:[#allocation2 + $0x70] sm:$0xff] }
 0x1e0   : > { %v3947_v8 = vadd.f32 %v3942_v13, %v3008_v63  ;;  %5371 = vmatmul.mubr.f32.vlgmr.msra.gmra.mrb[0].mxu0 %v12522_v42  ;;  %v12962_v63 = vsub.f32 %v8666_v28, %v8754_v25  ;;  %14371 = vst [vmem:[#allocation12_spill] sm:$0xff] %v12964_v38  ;;  %v12966_v13 = vsub.f32 %v8671_v34, %v8760_v21 }
 0x1e1   : > { %5858 = vmatpush1.msra.mxu0 %v12927_v55  ;;  %5921 = vmatprep.mubr.f32.mxu0 %v14121_v0  ;;  %v4510_v35 = vpop.f32.mrb[40].mxu1 }
 0x1e2   : > { %5938 = vmatprep.subr.mxu0 %v5937_v29  ;;  %v11028_v9 = vpop.f32.mrb[41].mxu1  ;;  %14370 = vst [vmem:[#allocation11_spill] sm:$0xff] %v12962_v63  ;;  %14372 = vst [vmem:[#allocation13_spill] sm:$0xff] %v12966_v13  ;;  %v8673_v29 = vld [vmem:[#allocation2 + $0x48] sm:$0xff] }
 0x1e3   : > { %v8675_v9 = vld [vmem:[#allocation2 + $0x58] sm:$0xff] }
 0x1e5   : > { %v4586_v53 = vpop.f32.mrb[42].mxu1 }
 0x1e6   : > { %v4587_v10 = vadd.f32 %v4586_v53, %v4510_v35  ;;  %v11033_v15 = vpop.f32.mrb[43].mxu1  ;;  %v12968_v35 = vsub.f32 %v8668_v37, %v8758_v61 }
 0x1e7   : > { %v8674_v15 = vld [vmem:[#allocation2 + $0x50] sm:$0xff] }
 0x1e8   : > { %5927 = vmatmul.mubr.f32.vlgmr.msra.gmra.mrb[0].mxu0 %v12644_v40  ;;  %v8748_v40 = vand.u32 4294901760, %v8665_v56  ;;  %14373 = vst [vmem:[#allocation14_spill] sm:$0xff] %v12968_v35 }
 0x1e9   : > { %5944 = vmatpush1.msra.mxu0 %v5943_v24  ;;  %v4660_v43 = vpop.f32.mrb[44].mxu1  ;;  %6007 = vmatprep.mubr.f32.mxu0 %v14121_v0  ;;  %v12970_v24 = vsub.f32 %v8670_v54, %v8762_v16  ;;  %v8681_v54 = vld [vmem:[#allocation2 + $0x88] sm:$0xff] }
 0x1ea   : > { %6017 = vmatprep.subr.mxu0 %v12920_v36  ;;  %v4661_v42 = vadd.f32 %v4660_v43, %v4587_v10  ;;  %v11038_v23 = vpop.f32.mrb[45].mxu1  ;;  %v12956_v14 = vsub.f32 %v8665_v56, %v8748_v40  ;;  %v12972_v53 = vpack.c.bf16 %v8752_v6, %v8748_v40  ;;  %v8672_v10 = vld [vmem:[#allocation2 + $0x40] sm:$0xff]  ;;  %v8677_v56 = vld [vmem:[#allocation2 + $0x68] sm:$0xff] }
 0x1eb   : > { %14374 = vst [vmem:[#allocation15_spill] sm:$0xff] %v12970_v24  ;;  %v6794_v23 = vsel %vm232_vm3, %v12294_v41, 0  ;;  %v8766_v30 = vand.u32 4294901760, %v8672_v10  ;;  %v8770_v41 = vand.u32 4294901760, %v8674_v15  ;;  %v8676_v40 = vld [vmem:[#allocation2 + $0x60] sm:$0xff]  ;;  %v8772_v28 = vand.u32 4294901760, %v8677_v56 }
 0x1ec   : > { %14367 = vst [vmem:[#allocation8_spill] sm:$0xff] %v12956_v14  ;;  %14375 = vst [vmem:[#allocation16_spill] sm:$0xff] %v12972_v53  ;;  %11175 = vmatprep.subr.bf16.mxu1 %v12972_v53  ;;  %v8774_v37 = vand.u32 4294901760, %v8676_v40 }
 0x1ed   : > { %v4734_v47 = vpop.f32.mrb[46].mxu1  ;;  %v12995_v36 = vsub.f32 %v8674_v15, %v8770_v41  ;;  %v13002_v34 = vsub.f32 %v8677_v56, %v8772_v28  ;;  %v8682_v15 = vld [vmem:[#allocation2 + $0x90] sm:$0xff]  ;;  %v6792_v56 = vsel %vm232_vm3, %v12307_v46, 0 }
 0x1ee   : > { %v4735_v5 = vadd.f32 %v4734_v47, %v4661_v42  ;;  %v11043_v44 = vpop.f32.mrb[47].mxu1  ;;  %v8764_v42 = vand.u32 4294901760, %v8673_v29 }
 0x1ef   : > { %v12981_v44 = vpack.c.bf16 %v8754_v25, %v8750_v62  ;;  %v8776_v62 = vand.u32 4294901760, %v8679_v3 }
 0x1f0   : > { %6009 = vmatmul.mubr.f32.vlgmr.msra.gmra.mrb[0].mxu0 %v12599_v22 }
 0x1f1   : > { %6020 = vmatpush1.msra.mxu0 %v12934_v20  ;;  %v4808_v4 = vpop.f32.mrb[48].mxu1  ;;  %6083 = vmatprep.mubr.f32.mxu0 %v14121_v0  ;;  %14376 = vst [vmem:[#allocation17_spill] sm:$0xff] %v12981_v44  ;;  %v8786_v20 = vand.u32 4294901760, %v8682_v15 }
 0x1f2   : > { %6093 = vmatprep.subr.mxu0 %v12913_v7  ;;  %v4809_v27 = vadd.f32 %v4808_v4, %v4735_v5  ;;  %v11048_v19 = vpop.f32.mrb[49].mxu1  ;;  %v8768_v5 = vand.u32 4294901760, %v8675_v9  ;;  %v12988_v4 = vpack.c.bf16 %v8760_v21, %v8756_v33  ;;  %11177 = vmatpush1.bf16.msra.mxu1 %v12981_v44  ;;  %v13004_v33 = vsub.f32 %v8679_v3, %v8776_v62 }
 0x1f3   : > { %v13000_v19 = vand.u32 4294901760, %v6794_v23 }
 0x1f4   : > { %14378 = vst [vmem:[#allocation19_spill] sm:$0xff] %v12988_v4  ;;  %v12990_v6 = vsub.f32 %v8675_v9, %v8768_v5  ;;  %11179 = vmatprep.subr.bf16.mxu1 %v12988_v4  ;;  %v8680_v9 = vld [vmem:[#allocation2 + $0x80] sm:$0xff]  ;;  %v8691_v4 = vld [vmem:[#allocation2 + $0xd8] sm:$0xff] }
 0x1f5   : > { %v4880_v39 = vpop.f32.mrb[50].mxu1 }
 0x1f6   : > { %v4881_v17 = vadd.f32 %v4880_v39, %v4809_v27  ;;  %v11053_v57 = vpop.f32.mrb[51].mxu1  ;;  %14379 = vst [vmem:[#allocation20_spill] sm:$0xff] %v12990_v6  ;;  %v12993_v27 = vsub.f32 %v8672_v10, %v8766_v30  ;;  %v8780_v10 = vand.u32 4294901760, %v8681_v54 }
 0x1f7   : > { %v13007_v57 = vsub.f32 %v8676_v40, %v8774_v37  ;;  %v8685_v40 = vld [vmem:[#allocation2 + $0xa8] sm:$0xff] }
 0x1f8   : > { %v12974_v43 = vadd.f32 %v4881_v17, %v3947_v8  ;;  %6086 = vmatmul.mubr.f32.vlgmr.msra.gmra.mrb[0].mxu0 %v12609_v45  ;;  %v12986_v45 = vsub.f32 %v8673_v29, %v8764_v42  ;;  %14380 = vst [vmem:[#allocation21_spill] sm:$0xff] %v12993_v27  ;;  %v8778_v29 = vand.u32 4294901760, %v8678_v59  ;;  %v8683_v17 = vld [vmem:[#allocation2 + $0x98] sm:$0xff]  ;;  %v13026_v46 = vsub.f32 %v8681_v54, %v8780_v10 }
 0x1f9   : > { %6095 = vmatpush1.msra.mxu0 %v12927_v55  ;;  %6158 = vmatprep.mubr.f32.mxu0 %v14121_v0  ;;  %v5449_v47 = vpop.f32.mrb[52].mxu1 }
 0x1fa   : > { %6171 = vmatprep.subr.mxu0 %v5935_v18  ;;  %v11058_v8 = vpop.f32.mrb[53].mxu1  ;;  %14377 = vst [vmem:[#allocation18_spill] sm:$0xff] %v12986_v45  ;;  %v12998_v18 = vpack.c.bf16 %v8762_v16, %v8758_v61  ;;  %v13010_v61 = vsub.f32 %v8678_v59, %v8778_v29  ;;  %v13012_v16 = vpack.c.bf16 %v8768_v5, %v8764_v42  ;;  %v8687_v42 = vld [vmem:[#allocation2 + $0xb8] sm:$0xff] }
 0x1fb   : > { %v8784_v8 = vand.u32 4294901760, %v8683_v17 }
 0x1fc   : > { %14381 = vst [vmem:[#allocation22_spill] sm:$0xff] %v12998_v18  ;;  %11181 = vmatpush1.bf16.msra.mxu1 %v12998_v18  ;;  %14382 = vst [vmem:[#allocation23_spill] sm:$0xff] %v13012_v16 }
 0x1fd   : > { %v5525_v25 = vpop.f32.mrb[54].mxu1  ;;  %11183 = vmatprep.subr.bf16.mxu1 %v13012_v16 }
 0x1fe   : > { %v5526_v21 = vadd.f32 %v5525_v25, %v5449_v47  ;;  %v11063_v39 = vpop.f32.mrb[55].mxu1  ;;  %v13017_v47 = vsub.f32 %v6794_v23, %v13000_v19  ;;  %v8782_v23 = vand.u32 4294901760, %v8680_v9  ;;  %v13028_v25 = vsub.f32 %v8683_v17, %v8784_v8 }
 0x1ff   : > { %v13033_v39 = vand.u32 4294901760, %v6792_v56 }
 0x200   : > { %6162 = vmatmul.mubr.f32.vlgmr.msra.gmra.mrb[0].mxu0 %v12624_v48  ;;  %v13022_v48 = vpack.c.bf16 %v8770_v41, %v8766_v30  ;;  %v8788_v30 = vand.u32 4294901760, %v8685_v40  ;;  %v8684_v41 = vld [vmem:[#allocation2 + $0xa0] sm:$0xff]  ;;  %v14141_v54 = vand.u32 4294901760, %v13017_v47 }
 0x201   : > { %6175 = vmatpush1.msra.mxu0 %v5941_v2  ;;  %v5599_v3 = vpop.f32.mrb[56].mxu1  ;;  %6238 = vmatprep.mubr.f32.mxu0 %v14121_v0  ;;  %v13031_v2 = vpack.c.bf16 %v8776_v62, %v8772_v28  ;;  %v13035_v0 = vsub.f32 %v8680_v9, %v8782_v23  ;;  %v13045_v28 = vld [vmem:[#allocation2 + $0xc8] sm:$0xff]  ;;  %v8790_v9 = vand.u32 4294901760, %v8684_v41 }
 0x202   : > { %14383 = vst [vmem:[#allocation24_spill] sm:$0xff] %v13022_v48  ;;  %6247 = vmatprep.subr.mxu0 %v12913_v7  ;;  %v5600_v5 = vadd.f32 %v5599_v3, %v5526_v21  ;;  %v11068_v59 = vpop.f32.mrb[57].mxu1  ;;  %11185 = vmatpush1.bf16.msra.mxu1 %v13022_v48  ;;  %v8792_v7 = vand.u32 4294901760, %v8687_v42  ;;  %v8686_v21 = vld [vmem:[#allocation2 + $0xb0] sm:$0xff]  ;;  %v13041_v17 = vsub.f32 %v8685_v40, %v8788_v30 }
 0x203   : > { %14384 = vst [vmem:[#allocation25_spill] sm:$0xff] %v13031_v2  ;;  %14385 = vst [vmem:[#allocation26_spill] sm:$0xff] %v13035_v0  ;;  %v13038_v59 = vsub.f32 %v8682_v15, %v8786_v20  ;;  %11187 = vmatprep.subr.bf16.mxu1 %v13031_v2  ;;  %v13043_v48 = vpack.c.bf16 %v8778_v29, %v8774_v37  ;;  %v8794_v44 = vand.u32 4294901760, %v8686_v21  ;;  %v8796_v29 = vand.u32 4294901760, %v13045_v28 }
 0x204   : > { %14387 = vst [vmem:[#allocation28_spill] sm:$0xff] %v13041_v17  ;;  %v13047_v18 = vsub.f32 %v8687_v42, %v8792_v7  ;;  %v13051_v15 = vsub.f32 %v6792_v56, %v13033_v39  ;;  %v13054_v40 = vsub.f32 %v8684_v41, %v8790_v9  ;;  %v13056_v37 = vpack.c.bf16 %v8784_v8, %v8780_v10  ;;  %v8693_v10 = vld [vmem:[#allocation2 + $0xe8] sm:$0xff]  ;;  %v8695_v8 = vld [vmem:[#allocation2 + $0xf8] sm:$0xff]  ;;  %v8692_v17 = vld [vmem:[#allocation2 + $0xe0] sm:$0xff] }
 0x205   : > { %v5673_v3 = vpop.f32.mrb[58].mxu1  ;;  %14386 = vst [vmem:[#allocation27_spill] sm:$0xff] %v13038_v59  ;;  %14388 = vst [vmem:[#allocation29_spill] sm:$0xff] %v13043_v48  ;;  %v6879_v56 = vsub.f32 %v13017_v47, %v14141_v54  ;;  %v8800_v2 = vand.u32 4294901760, %v8691_v4  ;;  %v13066_v41 = vpack.c.bf16 %v8786_v20, %v8782_v23  ;;  %v8804_v23 = vand.u32 4294901760, %v8693_v10 }
 0x206   : > { %v5674_v62 = vadd.f32 %v5673_v3, %v5600_v5  ;;  %v11073_v16 = vpop.f32.mrb[59].mxu1  ;;  %14389 = vst [vmem:[#allocation30_spill] sm:$0xff] %v13047_v18  ;;  %11189 = vmatpush1.bf16.msra.mxu1 %v13043_v48  ;;  %14390 = vst [vmem:[#allocation31_spill] sm:$0xff] %v13054_v40  ;;  %v8688_v5 = vld [vmem:[#allocation2 + $0xc0] sm:$0xff]  ;;  %v14392_v3 = vmov 0.0   ;;  %v13064_v48 = vsub.f32 %v8686_v21, %v8794_v44  ;;  %v8808_v20 = vand.u32 4294901760, %v8695_v8 }
 0x207   : > { %14391 = vst [vmem:[#allocation32_spill] sm:$0xff] %v13056_v37  ;;  %v8690_v16 = vld [vmem:[#allocation2 + $0xd0] sm:$0xff]  ;;  %14394 = vst [vmem:[#allocation34_spill] sm:$0xff] %v13066_v41  ;;  %11191 = vmatprep.subr.bf16.mxu1 %v13056_v37  ;;  %v13073_v18 = vsub.f32 %v8691_v4, %v8800_v2  ;;  %v8798_v21 = vand.u32 4294901760, %v8688_v5  ;;  %v8806_v0 = vand.u32 4294901760, %v8692_v17 }
 0x208   : > { %6240 = vmatmul.mubr.f32.vlgmr.msra.gmra.mrb[0].mxu0 %v12599_v22  ;;  %14393 = vst [vmem:[#allocation33_spill] sm:$0xff] %v13064_v48  ;;  %v8802_v54 = vand.u32 4294901760, %v8690_v16  ;;  %v13076_v48 = vpack.c.bf16 %v8792_v7, %v8788_v30  ;;  %v13086_v30 = vsub.f32 %v8695_v8, %v8808_v20  ;;  %v13088_v7 = vpack.c.bf16 %v8794_v44, %v8790_v9 }
 0x209   : > { %6249 = vmatpush1.msra.mxu0 %v12927_v55  ;;  %v5747_v42 = vpop.f32.mrb[60].mxu1  ;;  %6312 = vmatprep.mubr.f32.mxu0 %v14392_v3  ;;  %v13071_v55 = vsub.f32 %v13045_v28, %v8796_v29  ;;  %14396 = vst [vmem:[#allocation36_spill] sm:$0xff] %v13073_v18  ;;  %v13079_v59 = vsub.f32 %v8688_v5, %v8798_v21  ;;  %v8694_v28 = vld [vmem:[#allocation2 + $0xf0] sm:$0xff]  ;;  %v14402_v44 = vand.u32 4294901760, %v13051_v15 }
 0x20a   : > { %v5748_v53 = vadd.f32 %v5747_v42, %v5674_v62  ;;  %v11078_v40 = vpop.f32.mrb[61].mxu1  ;;  %6799 = vmatprep.subr.mxu0 %v13000_v19  ;;  %11193 = vmatpush1.bf16.msra.mxu1 %v13066_v41  ;;  %14397 = vst [vmem:[#allocation37_spill] sm:$0xff] %v13076_v48  ;;  %v6880_v42 = vand.u32 4294901760, %v6879_v56  ;;  %v13081_v37 = vsub.f32 %v8690_v16, %v8802_v54  ;;  %14400 = vst [vmem:[#allocation40_spill] sm:$0xff] %v13086_v30  ;;  %v8699_v62 = vld [vmem:[#allocation2 + $0x118] sm:$0xff]  ;;  %v8698_v5 = vld [vmem:[#allocation2 + $0x110] sm:$0xff] }
 0x20b   : > { %14395 = vst [vmem:[#allocation35_spill] sm:$0xff] %v13071_v55  ;;  %11195 = vmatprep.subr.bf16.mxu1 %v13076_v48  ;;  %v13084_v41 = vsub.f32 %v8693_v10, %v8804_v23  ;;  %14401 = vst [vmem:[#allocation41_spill] sm:$0xff] %v13088_v7  ;;  %v8697_v55 = vld [vmem:[#allocation2 + $0x108] sm:$0xff]  ;;  %v6885_v9 = vsub.f32 %v13051_v15, %v14402_v44  ;;  %v13100_v10 = vsub.f32 %v8692_v17, %v8806_v0  ;;  %v8703_v30 = vld [vmem:[#allocation2 + $0x138] sm:$0xff] }
 0x20c   : > { %14398 = vst [vmem:[#allocation38_spill] sm:$0xff] %v13081_v37  ;;  %v8812_v8 = vand.u32 4294901760, %v8697_v55  ;;  %v13106_v48 = vpack.c.bf16 %v8802_v54, %v8798_v21  ;;  %v8818_v37 = vand.u32 4294901760, %v8698_v5  ;;  %v8824_v21 = vand.u32 4294901760, %v8703_v30 }
 0x20d   : > { %v5819_v40 = vpop.f32.mrb[62].mxu1  ;;  %14399 = vst [vmem:[#allocation39_spill] sm:$0xff] %v13084_v41  ;;  %14403 = vst [vmem:[#allocation42_spill] sm:$0xff] %v13100_v10 }
 0x20e   : > { %v5820_v4 = vadd.f32 %v5819_v40, %v5748_v53  ;;  %v11083_v18 = vpop.f32.mrb[63].mxu1  ;;  %11197 = vmatpush1.bf16.msra.mxu1 %v13088_v7  ;;  %v8810_v53 = vand.u32 4294901760, %v8694_v28  ;;  %v8816_v7 = vand.u32 4294901760, %v8699_v62  ;;  %14406 = vst [vmem:[#allocation45_spill] sm:$0xff] %v13106_v48  ;;  %v13109_v41 = vsub.f32 %v8697_v55, %v8812_v8 }
 0x20f   : > { %v8696_v18 = vld [vmem:[#allocation2 + $0x100] sm:$0xff]  ;;  %v13118_v54 = vsub.f32 %v8698_v5, %v8818_v37 }
 0x210   : > { %v13091_v56 = vadd.f32 %v5820_v4, %v12974_v43  ;;  %6314 = vmatmul.mubr.f32.vlgmr.msra.gmra.mrb[0].mxu0 %v12599_v22  ;;  %v13102_v43 = vpack.c.bf16 %v8800_v2, %v8796_v29  ;;  %v8701_v22 = vld [vmem:[#allocation2 + $0x128] sm:$0xff]  ;;  %v13104_v4 = vsub.f32 %v8694_v28, %v8810_v53  ;;  %14407 = vst [vmem:[#allocation46_spill] sm:$0xff] %v13109_v41  ;;  %v8814_v44 = vand.u32 4294901760, %v8696_v18 }
 0x211   : > { %6801 = vmatpush1.msra.mxu0 %v13033_v39  ;;  %6864 = vmatprep.mubr.f32.mxu0 %v14392_v3  ;;  %v6392_v16 = vpop.f32.mrb[64].mxu1  ;;  %v13111_v17 = vsub.f32 %v8699_v62, %v8816_v7  ;;  %v13114_v2 = vpack.c.bf16 %v8808_v20, %v8804_v23  ;;  %v8820_v29 = vand.u32 4294901760, %v8701_v22  ;;  %14411 = vst [vmem:[#allocation50_spill] sm:$0xff] %v13118_v54  ;;  %v8707_v20 = vld [vmem:[#allocation2 + $0x158] sm:$0xff] }
 0x212   : > { %14404 = vst [vmem:[#allocation43_spill] sm:$0xff] %v13102_v43  ;;  %6881 = vmatprep.subr.mxu0 %v6880_v42  ;;  %v11088_v40 = vpop.f32.mrb[65].mxu1  ;;  %14405 = vst [vmem:[#allocation44_spill] sm:$0xff] %v13104_v4  ;;  %11199 = vmatprep.subr.bf16.mxu1 %v13102_v43  ;;  %v6886_v42 = vand.u32 4294901760, %v6885_v9  ;;  %v8700_v4 = vld [vmem:[#allocation2 + $0x120] sm:$0xff]  ;;  %v8702_v43 = vld [vmem:[#allocation2 + $0x130] sm:$0xff]  ;;  %v13125_v23 = vpack.c.bf16 %v8810_v53, %v8806_v0 }
 0x213   : > { %14408 = vst [vmem:[#allocation47_spill] sm:$0xff] %v13111_v17  ;;  %11201 = vmatpush1.bf16.msra.mxu1 %v13106_v48  ;;  %14409 = vst [vmem:[#allocation48_spill] sm:$0xff] %v13114_v2  ;;  %v13116_v40 = vsub.f32 %v8696_v18, %v8814_v44  ;;  %v13121_v62 = vsub.f32 %v8701_v22, %v8820_v29  ;;  %v8705_v17 = vld [vmem:[#allocation2 + $0x148] sm:$0xff]  ;;  %v13123_v48 = vsub.f32 %v8703_v30, %v8824_v21  ;;  %v8704_v9 = vld [vmem:[#allocation2 + $0x140] sm:$0xff] }
 0x214   : > { %11203 = vmatprep.subr.bf16.mxu1 %v13114_v2  ;;  %14414 = vst [vmem:[#allocation53_spill] sm:$0xff] %v13125_v23  ;;  %v8822_v18 = vand.u32 4294901760, %v8700_v4  ;;  %v8826_v5 = vand.u32 4294901760, %v8702_v43  ;;  %v8706_v22 = vld [vmem:[#allocation2 + $0x150] sm:$0xff]  ;;  %v8832_v53 = vand.u32 4294901760, %v8707_v20  ;;  %v8709_v2 = vld [vmem:[#allocation2 + $0x168] sm:$0xff] }
 0x215   : > { %v6468_v28 = vpop.f32.mrb[66].mxu1  ;;  %14410 = vst [vmem:[#allocation49_spill] sm:$0xff] %v13116_v40  ;;  %14412 = vst [vmem:[#allocation51_spill] sm:$0xff] %v13121_v62  ;;  %v8834_v62 = vand.u32 4294901760, %v8706_v22 }
 0x216   : > { %v6469_v55 = vadd.f32 %v6468_v28, %v6392_v16  ;;  %v11093_v41 = vpop.f32.mrb[67].mxu1  ;;  %14413 = vst [vmem:[#allocation52_spill] sm:$0xff] %v13123_v48  ;;  %v8828_v16 = vand.u32 4294901760, %v8705_v17  ;;  %v13133_v0 = vsub.f32 %v8700_v4, %v8822_v18  ;;  %v13142_v48 = vsub.f32 %v8707_v20, %v8832_v53 }
 0x217   : > { %v13129_v41 = vpack.c.bf16 %v8816_v7, %v8812_v8  ;;  %11205 = vmatpush1.bf16.msra.mxu1 %v13125_v23  ;;  %v13140_v7 = vpack.c.bf16 %v8818_v37, %v8814_v44  ;;  %v8830_v8 = vand.u32 4294901760, %v8704_v9  ;;  %v13146_v4 = vpack.c.bf16 %v8824_v21, %v8820_v29  ;;  %v8708_v23 = vld [vmem:[#allocation2 + $0x160] sm:$0xff]  ;;  %v8713_v37 = vld [vmem:[#allocation2 + $0x188] sm:$0xff] }
 0x218   : > { %6870 = vmatmul.mubr.f32.vlgmr.msra.gmra.mrb[0].mxu0 %v12732_v32  ;;  %14416 = vst [vmem:[#allocation55_spill] sm:$0xff] %v13133_v0  ;;  %v13135_v32 = vsub.f32 %v8702_v43, %v8826_v5  ;;  %14420 = vst [vmem:[#allocation59_spill] sm:$0xff] %v13142_v48  ;;  %v8836_v43 = vand.u32 4294901760, %v8709_v2  ;;  %v8838_v29 = vand.u32 4294901760, %v8708_v23 }
 0x219   : > { %6887 = vmatpush1.msra.mxu0 %v6886_v42  ;;  %v6542_v54 = vpop.f32.mrb[68].mxu1  ;;  %6950 = vmatprep.mubr.f32.mxu0 %v14392_v3  ;;  %14415 = vst [vmem:[#allocation54_spill] sm:$0xff] %v13129_v41  ;;  %v13138_v42 = vsub.f32 %v8705_v17, %v8828_v16  ;;  %14419 = vst [vmem:[#allocation58_spill] sm:$0xff] %v13140_v7  ;;  %v13149_v17 = vsub.f32 %v8706_v22, %v8834_v62 }
 0x21a   : > { %6960 = vmatprep.subr.mxu0 %v13017_v47  ;;  %v6543_v30 = vadd.f32 %v6542_v54, %v6469_v55  ;;  %v11098_v28 = vpop.f32.mrb[69].mxu1  ;;  %14417 = vst [vmem:[#allocation56_spill] sm:$0xff] %v13135_v32  ;;  %11207 = vmatprep.subr.bf16.mxu1 %v13129_v41  ;;  %v8711_v54 = vld [vmem:[#allocation2 + $0x178] sm:$0xff]  ;;  %14422 = vst [vmem:[#allocation61_spill] sm:$0xff] %v13146_v4  ;;  %v8710_v32 = vld [vmem:[#allocation2 + $0x170] sm:$0xff]  ;;  %v13152_v20 = vsub.f32 %v8709_v2, %v8836_v43 }
 0x21b   : > { %14418 = vst [vmem:[#allocation57_spill] sm:$0xff] %v13138_v42  ;;  %v13144_v28 = vsub.f32 %v8704_v9, %v8830_v8  ;;  %11209 = vmatpush1.bf16.msra.mxu1 %v13140_v7  ;;  %14423 = vst [vmem:[#allocation62_spill] sm:$0xff] %v13149_v17  ;;  %v8840_v44 = vand.u32 4294901760, %v8711_v54  ;;  %v13154_v41 = vpack.c.bf16 %v8826_v5, %v8822_v18  ;;  %v8715_v9 = vld [vmem:[#allocation2 + $0x198] sm:$0xff]  ;;  %v8842_v21 = vand.u32 4294901760, %v8710_v32  ;;  %v8714_v2 = vld [vmem:[#allocation2 + $0x190] sm:$0xff] }
 0x21c   : > { %11211 = vmatprep.subr.bf16.mxu1 %v13146_v4  ;;  %14424 = vst [vmem:[#allocation63_spill] sm:$0xff] %v13152_v20  ;;  %v8712_v4 = vld [vmem:[#allocation2 + $0x180] sm:$0xff]  ;;  %v13165_v7 = vsub.f32 %v8708_v23, %v8838_v29  ;;  %v8848_v20 = vand.u32 4294901760, %v8715_v9 }
 0x21d   : > { %v6616_v55 = vpop.f32.mrb[70].mxu1  ;;  %14421 = vst [vmem:[#allocation60_spill] sm:$0xff] %v13144_v28  ;;  %14425 = vst [vmem:[#allocation64_spill] sm:$0xff] %v13154_v41  ;;  %v13159_v22 = vsub.f32 %v8711_v54, %v8840_v44  ;;  %v13167_v17 = vsub.f32 %v8710_v32, %v8842_v21  ;;  %v8850_v28 = vand.u32 4294901760, %v8714_v2 }
 0x21e   : > { %v6617_v0 = vadd.f32 %v6616_v55, %v6543_v30  ;;  %v11103_v40 = vpop.f32.mrb[71].mxu1  ;;  %v13161_v30 = vpack.c.bf16 %v8832_v53, %v8828_v16  ;;  %v8844_v55 = vand.u32 4294901760, %v8713_v37  ;;  %14428 = vst [vmem:[#allocation67_spill] sm:$0xff] %v13165_v7  ;;  %v13172_v16 = vpack.c.bf16 %v8834_v62, %v8830_v8 }
 0x21f   : > { %14426 = vst [vmem:[#allocation65_spill] sm:$0xff] %v13159_v22  ;;  %11213 = vmatpush1.bf16.msra.mxu1 %v13154_v41  ;;  %14429 = vst [vmem:[#allocation68_spill] sm:$0xff] %v13167_v17  ;;  %v13174_v53 = vsub.f32 %v8715_v9, %v8848_v20  ;;  %v8846_v22 = vand.u32 4294901760, %v8712_v4  ;;  %v13181_v32 = vsub.f32 %v8714_v2, %v8850_v28  ;;  %v14437_v8 = vand.u32 4294901760, %v13017_v47  ;;  %v13380_v41 = vld [vmem:[#allocation2 + $0x1d8] sm:$0xff] }
 0x220   : > { %6952 = vmatmul.mubr.f32.vlgmr.msra.gmra.mrb[0].mxu0 %v12676_v26  ;;  %14427 = vst [vmem:[#allocation66_spill] sm:$0xff] %v13161_v30  ;;  %11215 = vmatprep.subr.bf16.mxu1 %v13161_v30  ;;  %v13170_v54 = vsub.f32 %v8713_v37, %v8844_v55  ;;  %14431 = vst [vmem:[#allocation70_spill] sm:$0xff] %v13172_v16  ;;  %v13184_v37 = vpack.c.bf16 %v8842_v21, %v8838_v29  ;;  %v14440_v47 = vand.u32 4294901760, %v13051_v15 }
 0x221   : > { %6963 = vmatpush1.msra.mxu0 %v13051_v15  ;;  %v6690_v40 = vpop.f32.mrb[72].mxu1  ;;  %7026 = vmatprep.mubr.f32.mxu0 %v14392_v3  ;;  %14432 = vst [vmem:[#allocation71_spill] sm:$0xff] %v13174_v53  ;;  %v13179_v23 = vsub.f32 %v8712_v4, %v8846_v22  ;;  %14435 = vst [vmem:[#allocation74_spill] sm:$0xff] %v13181_v32 }
 0x222   : > { %7036 = vmatprep.subr.mxu0 %v13000_v19  ;;  %v6691_v18 = vadd.f32 %v6690_v40, %v6617_v0  ;;  %v11108_v5 = vpop.f32.mrb[73].mxu1  ;;  %14430 = vst [vmem:[#allocation69_spill] sm:$0xff] %v13170_v54  ;;  %v13176_v0 = vpack.c.bf16 %v8840_v44, %v8836_v43  ;;  %14436 = vst [vmem:[#allocation75_spill] sm:$0xff] %v13184_v37  ;;  %v13193_v43 = vpack.c.bf16 %v8848_v20, %v8844_v55 }
 0x223   : > { %11217 = vmatpush1.bf16.msra.mxu1 %v13172_v16  ;;  %14434 = vst [vmem:[#allocation73_spill] sm:$0xff] %v13179_v23  ;;  %v7737_v44 = vsel %vm232_vm3, %v12328_v52, 0  ;;  %v13356_v16 = vld [vmem:[#allocation2 + $0x1a8] sm:$0xff] }
 0x224   : > { %14433 = vst [vmem:[#allocation72_spill] sm:$0xff] %v13176_v0  ;;  %11219 = vmatprep.subr.bf16.mxu1 %v13176_v0  ;;  %14438 = vst [vmem:[#allocation76_spill] sm:$0xff] %v13193_v43  ;;  %v13200_v9 = vand.u32 4294901760, %v7737_v44 }
 0x225   : > { %v6762_v48 = vpop.f32.mrb[74].mxu1 }
 0x226   : > { %v6763_v40 = vadd.f32 %v6762_v48, %v6691_v18  ;;  %v11113_v5 = vpop.f32.mrb[75].mxu1  ;;  %v7820_v52 = vsub.f32 %v7737_v44, %v13200_v9 }
 0x227   : > { %11221 = vmatpush1.bf16.msra.mxu1 %v13184_v37  ;;  %v14461_v37 = vld [vmem:[#allocation56_spill] sm:$0xff] }
 0x228   : > { %v6768_v62 = vadd.f32 %v6763_v40, %v13091_v56  ;;  %7029 = vmatmul.mubr.f32.vlgmr.msra.gmra.mrb[0].mxu0 %v12688_v58  ;;  %11223 = vmatprep.subr.bf16.mxu1 %v13193_v43  ;;  %v13198_v56 = vpack.c.bf16 %v8850_v28, %v8846_v22  ;;  %v7735_v28 = vsel %vm232_vm3, %v12318_v49, 0  ;;  %v7821_v5 = vand.u32 4294901760, %v7820_v52  ;;  %v13358_v43 = vld [vmem:[#allocation2 + $0x1b8] sm:$0xff] }
 0x229   : > { %7038 = vmatpush1.msra.mxu0 %v13033_v39  ;;  %7101 = vmatprep.mubr.f32.mxu0 %v14392_v3  ;;  %v7335_v48 = vpop.f32.mrb[76].mxu1  ;;  %v13211_v2 = vand.u32 4294901760, %v7735_v28  ;;  %v14244_v0 = vand.u32 4294901760, %v14461_v37 }
 0x22a   : > { %7114 = vmatprep.subr.mxu0 %v14437_v8  ;;  %v11118_v4 = vpop.f32.mrb[77].mxu1  ;;  %14439 = vst [vmem:[#allocation77_spill] sm:$0xff] %v13198_v56 }
 0x22b   : > { %11225 = vmatpush1.bf16.msra.mxu1 %v13198_v56  ;;  %v7826_v15 = vsub.f32 %v7735_v28, %v13211_v2 }
 0x22d   : > { %v7411_v58 = vpop.f32.mrb[78].mxu1  ;;  %v7827_v4 = vand.u32 4294901760, %v7826_v15 }
 0x22e   : > { %v7412_v29 = vadd.f32 %v7411_v58, %v7335_v48  ;;  %v11123_v21 = vpop.f32.mrb[79].mxu1 }
 0x230   : > { %7105 = vmatmul.mubr.f32.vlgmr.msra.gmra.mrb[0].mxu0 %v12707_v1 }
 0x231   : > { %7118 = vmatpush1.msra.mxu0 %v14440_v47  ;;  %7181 = vmatprep.mubr.f32.mxu0 %v14392_v3  ;;  %v7485_v20 = vpop.f32.mrb[80].mxu1 }
 0x232   : > { %7190 = vmatprep.subr.mxu0 %v13000_v19  ;;  %v7486_v22 = vadd.f32 %v7485_v20, %v7412_v29  ;;  %v11128_v55 = vpop.f32.mrb[81].mxu1  ;;  %v7822_v19 = vsub.f32 %v7820_v52, %v7821_v5 }
 0x234   : > { %v7823_v29 = vand.u32 4294901760, %v7822_v19 }
 0x235   : > { %v7559_v18 = vpop.f32.mrb[82].mxu1 }
 0x236   : > { %v7560_v40 = vadd.f32 %v7559_v18, %v7486_v22  ;;  %v11133_v1 = vpop.f32.mrb[83].mxu1 }
 0x238   : > { %7183 = vmatmul.mubr.f32.vlgmr.msra.gmra.mrb[0].mxu0 %v12676_v26 }
 0x239   : > { %7192 = vmatpush1.msra.mxu0 %v13033_v39  ;;  %v7633_v48 = vpop.f32.mrb[84].mxu1  ;;  %7255 = vmatprep.mubr.f32.mxu0 %v14392_v3  ;;  %v7828_v39 = vsub.f32 %v7826_v15, %v7827_v4 }
 0x23a   : > { %v7634_v49 = vadd.f32 %v7633_v48, %v7560_v40  ;;  %v11138_v8 = vpop.f32.mrb[85].mxu1  ;;  %7742 = vmatprep.subr.mxu0 %v13200_v9 }
 0x23b   : > { %v7829_v22 = vand.u32 4294901760, %v7828_v39 }
 0x23d   : > { %v7705_v44 = vpop.f32.mrb[86].mxu1 }
 0x23e   : > { %v7706_v58 = vadd.f32 %v7705_v44, %v7634_v49  ;;  %v11143_v21 = vpop.f32.mrb[87].mxu1 }
 0x240   : > { %v7711_v47 = vadd.f32 %v7706_v58, %v6768_v62  ;;  %7257 = vmatmul.mubr.f32.vlgmr.msra.gmra.mrb[0].mxu0 %v12676_v26 }
 0x241   : > { %7744 = vmatpush1.msra.mxu0 %v13211_v2  ;;  %7807 = vmatprep.mubr.f32.mxu0 %v14392_v3  ;;  %v8278_v20 = vpop.f32.mrb[88].mxu1 }
 0x242   : > { %7824 = vmatprep.subr.mxu0 %v7823_v29  ;;  %v11148_v28 = vpop.f32.mrb[89].mxu1 }
 0x245   : > { %v8354_v55 = vpop.f32.mrb[90].mxu1 }
 0x246   : > { %v8355_v18 = vadd.f32 %v8354_v55, %v8278_v20  ;;  %v11153_v40 = vpop.f32.mrb[91].mxu1  ;;  %v14202_v20 = vand.u32 4294901760, %v12968_v35  ;;  %v14195_v55 = vand.u32 4294901760, %v12990_v6 }
 0x247   : > { %v14192_v40 = vand.u32 4294901760, %v12993_v27 }
 0x248   : > { %7813 = vmatmul.mubr.f32.vlgmr.msra.gmra.mrb[0].mxu0 %v12797_v51 }
 0x249   : > { %7830 = vmatpush1.msra.mxu0 %v7829_v22  ;;  %7893 = vmatprep.mubr.f32.mxu0 %v14392_v3  ;;  %v8428_v62 = vpop.f32.mrb[92].mxu1  ;;  %v14196_v22 = vand.u32 4294901760, %v12986_v45 }
 0x24a   : > { %7903 = vmatprep.subr.mxu0 %v7820_v52  ;;  %v8429_v26 = vadd.f32 %v8428_v62, %v8355_v18  ;;  %v11158_v1 = vpop.f32.mrb[93].mxu1  ;;  %v14214_v52 = vand.u32 4294901760, %v12956_v14  ;;  %v14191_v62 = vand.u32 4294901760, %v12995_v36 }
 0x24b   : > { %v14188_v1 = vand.u32 4294901760, %v13002_v34 }
 0x24d   : > { %v8502_v48 = vpop.f32.mrb[94].mxu1 }
 0x24e   : > { %v8503_v49 = vadd.f32 %v8502_v48, %v8429_v26  ;;  %v11163_v8 = vpop.f32.mrb[95].mxu1  ;;  %v11438_v26 = vpack.c.bf16 %v14195_v55, %v14196_v22  ;;  %v11440_v48 = vpack.c.bf16 %v14191_v62, %v14192_v40  ;;  %v14447_v62 = vld [vmem:[#allocation33_spill] sm:$0xff]  ;;  %v14449_v55 = vld [vmem:[#allocation36_spill] sm:$0xff] }
 0x24f   : > { %v14189_v8 = vand.u32 4294901760, %v13010_v61  ;;  %v14204_v40 = vand.u32 4294901760, %v14447_v62  ;;  %v14207_v22 = vand.u32 4294901760, %v14449_v55 }
 0x250   : > { %7895 = vmatmul.mubr.f32.vlgmr.msra.gmra.mrb[0].mxu0 %v12753_v50 }
 0x251   : > { %7906 = vmatpush1.msra.mxu0 %v7826_v15  ;;  %v8576_v19 = vpop.f32.mrb[96].mxu1  ;;  %7969 = vmatprep.mubr.f32.mxu0 %v14392_v3  ;;  %v14213_v15 = vand.u32 4294901760, %v12958_v11 }
 0x252   : > { %7979 = vmatprep.subr.mxu0 %v13200_v9  ;;  %v8577_v44 = vadd.f32 %v8576_v19, %v8503_v49  ;;  %v11168_v51 = vpop.f32.mrb[97].mxu1  ;;  %v14190_v49 = vand.u32 4294901760, %v13007_v57 }
 0x253   : > { %v14193_v51 = vand.u32 4294901760, %v13028_v25 }
 0x255   : > { %v8648_v58 = vpop.f32.mrb[98].mxu1 }
 0x256   : > { %v8649_v29 = vadd.f32 %v8648_v58, %v8577_v44  ;;  %v11173_v21 = vpop.f32.mrb[99].mxu1  ;;  %v14194_v44 = vand.u32 4294901760, %v13026_v46  ;;  %v11444_v58 = vpack.c.bf16 %v14189_v8, %v14190_v49  ;;  %v14446_v8 = vld [vmem:[#allocation31_spill] sm:$0xff] }
 0x257   : > { %v14205_v49 = vand.u32 4294901760, %v14446_v8 }
 0x258   : > { %v13226_v39 = vadd.f32 %v8649_v29, %v7711_v47  ;;  %7972 = vmatmul.mubr.f32.vlgmr.msra.gmra.mrb[0].mxu0 %v12766_v31  ;;  %v11430_v31 = vpack.c.bf16 %v14213_v15, %v14214_v52  ;;  %v14442_v29 = vld [vmem:[#allocation26_spill] sm:$0xff] }
 0x259   : > { %7981 = vmatpush1.msra.mxu0 %v13211_v2  ;;  %8044 = vmatprep.mubr.f32.mxu0 %v14392_v3  ;;  %v14198_v21 = vand.u32 4294901760, %v14442_v29  ;;  %v14457_v15 = vld [vmem:[#allocation50_spill] sm:$0xff] }
 0x25a   : > { %14441 = vst [vmem:[#allocation78_spill] sm:$0xff] %v13226_v39  ;;  %8057 = vmatprep.subr.mxu0 %v7821_v5  ;;  %v14209_v5 = vand.u32 4294901760, %v12962_v63  ;;  %v14234_v52 = vand.u32 4294901760, %v14457_v15  ;;  %v14466_v39 = vld [vmem:[#allocation63_spill] sm:$0xff] }
 0x260   : > { %8048 = vmatmul.mubr.f32.vlgmr.msra.gmra.mrb[0].mxu0 %v12779_v60  ;;  %v14210_v60 = vand.u32 4294901760, %v12960_v12 }
 0x261   : > { %8061 = vmatpush1.msra.mxu0 %v7827_v4  ;;  %8124 = vmatprep.mubr.f32.mxu0 %v14392_v3  ;;  %v14203_v4 = vand.u32 4294901760, %v12966_v13 }
 0x262   : > { %8133 = vmatprep.subr.mxu0 %v13200_v9  ;;  %v14206_v9 = vand.u32 4294901760, %v12964_v38  ;;  %v11432_v47 = vpack.c.bf16 %v14209_v5, %v14210_v60  ;;  %v14455_v5 = vld [vmem:[#allocation47_spill] sm:$0xff] }
 0x263   : > { %v14227_v60 = vand.u32 4294901760, %v14455_v5 }
 0x264   : > { %v11434_v28 = vpack.c.bf16 %v14203_v4, %v14206_v9 }
 0x268   : > { %8126 = vmatmul.mubr.f32.vlgmr.msra.gmra.mrb[0].mxu0 %v12753_v50 }
 0x269   : > { %8135 = vmatpush1.msra.mxu0 %v13211_v2  ;;  %8198 = vmatprep.mubr.f32.mxu0 %v14392_v3  ;;  %v14199_v2 = vand.u32 4294901760, %v12970_v24  ;;  %v14459_v3 = vld [vmem:[#allocation52_spill] sm:$0xff] }
 0x26a   : > { %11431 = vmatprep.subr.bf16.mxu0 %v11430_v31  ;;  %v14443_v31 = vld [vmem:[#allocation27_spill] sm:$0xff]  ;;  %v14238_v56 = vand.u32 4294901760, %v14459_v3 }
 0x26b   : > { %v11436_v18 = vpack.c.bf16 %v14199_v2, %v14202_v20  ;;  %v14452_v20 = vld [vmem:[#allocation40_spill] sm:$0xff] }
 0x26c   : > { %v14215_v4 = vand.u32 4294901760, %v14452_v20 }
 0x270   : > { %8200 = vmatmul.mubr.f32.vlgmr.msra.gmra.mrb[0].mxu0 %v12753_v50  ;;  %v14187_v50 = vand.u32 4294901760, %v13004_v33 }
 0x271   : > { %11433 = vmatpush1.bf16.msra.mxu0 %v11432_v47  ;;  %v14197_v47 = vand.u32 4294901760, %v14443_v31 }
 0x272   : > { %11435 = vmatprep.subr.bf16.mxu0 %v11434_v28  ;;  %v11442_v19 = vpack.c.bf16 %v14187_v50, %v14188_v1  ;;  %v11446_v28 = vpack.c.bf16 %v14193_v51, %v14194_v44  ;;  %v14445_v50 = vld [vmem:[#allocation30_spill] sm:$0xff]  ;;  %v14448_v51 = vld [vmem:[#allocation35_spill] sm:$0xff] }
 0x273   : > { %v14200_v1 = vand.u32 4294901760, %v14445_v50  ;;  %v14208_v44 = vand.u32 4294901760, %v14448_v51 }
 0x275   : > { %11437 = vmatpush1.bf16.msra.mxu0 %v11436_v18  ;;  %v14444_v18 = vld [vmem:[#allocation28_spill] sm:$0xff] }
 0x276   : > { %11439 = vmatprep.subr.bf16.mxu0 %v11438_v26  ;;  %v14201_v26 = vand.u32 4294901760, %v14444_v18 }
 0x279   : > { %11441 = vmatpush1.bf16.msra.mxu0 %v11440_v48  ;;  %v11448_v48 = vpack.c.bf16 %v14197_v47, %v14198_v21  ;;  %v14212_v47 = vand.u32 4294901760, %v13079_v59  ;;  %v14450_v21 = vld [vmem:[#allocation38_spill] sm:$0xff] }
 0x27a   : > { %11443 = vmatprep.subr.bf16.mxu0 %v11442_v19  ;;  %v11450_v19 = vpack.c.bf16 %v14200_v1, %v14201_v26  ;;  %v14211_v2 = vand.u32 4294901760, %v14450_v21  ;;  %v14451_v1 = vld [vmem:[#allocation39_spill] sm:$0xff] }
 0x27b   : > { %v14216_v26 = vand.u32 4294901760, %v14451_v1 }
 0x27d   : > { %11445 = vmatpush1.bf16.msra.mxu0 %v11444_v58  ;;  %v11452_v58 = vpack.c.bf16 %v14204_v40, %v14205_v49  ;;  %v14229_v40 = vand.u32 4294901760, %v13100_v10  ;;  %v14453_v49 = vld [vmem:[#allocation44_spill] sm:$0xff] }
 0x27e   : > { %11447 = vmatprep.subr.bf16.mxu0 %v11446_v28  ;;  %v11454_v28 = vpack.c.bf16 %v14207_v22, %v14208_v44  ;;  %v14226_v9 = vand.u32 4294901760, %v14453_v49  ;;  %v14454_v22 = vld [vmem:[#allocation46_spill] sm:$0xff] }
 0x27f   : > { %v14228_v44 = vand.u32 4294901760, %v14454_v22 }
 0x281   : > { %11449 = vmatpush1.bf16.msra.mxu0 %v11448_v48  ;;  %v11456_v48 = vpack.c.bf16 %v14211_v2, %v14212_v47  ;;  %v14456_v2 = vld [vmem:[#allocation49_spill] sm:$0xff] }
 0x282   : > { %11451 = vmatprep.subr.bf16.mxu0 %v11450_v19  ;;  %v11458_v19 = vpack.c.bf16 %v14215_v4, %v14216_v26  ;;  %v14235_v47 = vand.u32 4294901760, %v14456_v2  ;;  %v14458_v4 = vld [vmem:[#allocation51_spill] sm:$0xff]  ;;  %v14263_v2 = vand.u32 4294901760, %v13181_v32 }
 0x283   : > { %v14239_v26 = vand.u32 4294901760, %v14458_v4 }
 0x285   : > { %11453 = vmatpush1.bf16.msra.mxu0 %v11452_v58  ;;  %v11460_v58 = vpack.c.bf16 %v14226_v9, %v14229_v40  ;;  %v11464_v9 = vpack.c.bf16 %v14234_v52, %v14235_v47  ;;  %v14465_v47 = vld [vmem:[#allocation62_spill] sm:$0xff]  ;;  %v14468_v40 = vand.u32 4294901760, %v13138_v42 }
 0x286   : > { %11455 = vmatprep.subr.bf16.mxu0 %v11454_v28  ;;  %v11462_v28 = vpack.c.bf16 %v14227_v60, %v14228_v44  ;;  %v14462_v44 = vld [vmem:[#allocation59_spill] sm:$0xff] }
 0x287   : > { %v14469_v3 = vand.u32 4294901760, %v14462_v44 }
 0x289   : > { %11457 = vmatpush1.bf16.msra.mxu0 %v11456_v48  ;;  %v14460_v48 = vld [vmem:[#allocation55_spill] sm:$0xff]  ;;  %v11470_v4 = vpack.c.bf16 %v14469_v3, %v14468_v40  ;;  %v14470_v40 = vand.u32 4294901760, %v14465_v47  ;;  %v14480_v47 = vand.u32 4294901760, %v13174_v53 }
 0x28a   : > { %11459 = vmatprep.subr.bf16.mxu0 %v11458_v19  ;;  %v11466_v19 = vpack.c.bf16 %v14238_v56, %v14239_v26  ;;  %v14467_v26 = vld [vmem:[#allocation65_spill] sm:$0xff]  ;;  %v14473_v56 = vand.u32 4294901760, %v13356_v16 }
 0x28b   : > { %v14472_v44 = vand.u32 4294901760, %v14467_v26  ;;  %v14477_v26 = vand.u32 4294901760, %v13165_v7 }
 0x28c   : > { %v13399_v3 = vsub.f32 %v13356_v16, %v14473_v56  ;;  %v14479_v56 = vand.u32 4294901760, %v13170_v54 }
 0x28d   : > { %11461 = vmatpush1.bf16.msra.mxu0 %v11460_v58  ;;  %v14463_v58 = vand.u32 4294901760, %v14460_v48  ;;  %v14471_v48 = vand.u32 4294901760, %v14466_v39 }
 0x28e   : > { %11463 = vmatprep.subr.bf16.mxu0 %v11462_v28  ;;  %v14464_v28 = vld [vmem:[#allocation60_spill] sm:$0xff]  ;;  %14474 = vst [vmem:[#allocation26_spill] sm:$0xff] %v13399_v3 }
 0x28f   : > { %v11468_v30 = vpack.c.bf16 %v14244_v0, %v14463_v58  ;;  %v14249_v52 = vand.u32 4294901760, %v14464_v28  ;;  %v13374_v58 = vld [vmem:[#allocation2 + $0x1a0] sm:$0xff]  ;;  %v13378_v0 = vld [vmem:[#allocation2 + $0x1c8] sm:$0xff]  ;;  %v11474_v42 = vpack.c.bf16 %v14472_v44, %v14471_v48  ;;  %v8722_v48 = vld [vmem:[#allocation2 + $0x1d0] sm:$0xff]  ;;  %v11478_v28 = vpack.c.bf16 %v14480_v47, %v14479_v56 }
 0x290   : > { %v8854_v15 = vand.u32 4294901760, %v13374_v58  ;;  %v13408_v44 = vld [vmem:[#allocation2 + $0x1c0] sm:$0xff] }
 0x291   : > { %11465 = vmatpush1.bf16.msra.mxu0 %v11464_v9  ;;  %v13376_v9 = vld [vmem:[#allocation2 + $0x1b0] sm:$0xff]  ;;  %v11472_v37 = vpack.c.bf16 %v14470_v40, %v14249_v52  ;;  %v8860_v40 = vand.u32 4294901760, %v13378_v0  ;;  %v8864_v52 = vand.u32 4294901760, %v13380_v41  ;;  %v8862_v7 = vand.u32 4294901760, %v13408_v44 }
 0x292   : > { %11467 = vmatprep.subr.bf16.mxu0 %v11466_v19  ;;  %v8858_v60 = vand.u32 4294901760, %v13376_v9  ;;  %v13421_v5 = vsub.f32 %v13374_v58, %v8854_v15 }
 0x293   : > { %v13430_v47 = vsub.f32 %v13378_v0, %v8860_v40  ;;  %v13433_v56 = vsub.f32 %v13380_v41, %v8864_v52 }
 0x294   : > { %14481 = vst [vmem:[#allocation28_spill] sm:$0xff] %v13421_v5  ;;  %v13424_v22 = vsub.f32 %v13376_v9, %v8858_v60  ;;  %v14265_v58 = vand.u32 4294901760, %v13421_v5  ;;  %v13442_v9 = vsub.f32 %v13408_v44, %v8862_v7 }
 0x295   : > { %11469 = vmatpush1.bf16.msra.mxu0 %v11468_v30  ;;  %v14475_v30 = vand.u32 4294901760, %v13358_v43  ;;  %14483 = vst [vmem:[#allocation31_spill] sm:$0xff] %v13430_v47  ;;  %14484 = vst [vmem:[#allocation33_spill] sm:$0xff] %v13433_v56 }
 0x296   : > { %11471 = vmatprep.subr.bf16.mxu0 %v11470_v4  ;;  %v14478_v4 = vand.u32 4294901760, %v13167_v17  ;;  %14482 = vst [vmem:[#allocation30_spill] sm:$0xff] %v13424_v22  ;;  %v8866_v17 = vand.u32 4294901760, %v8722_v48  ;;  %14485 = vst [vmem:[#allocation35_spill] sm:$0xff] %v13442_v9  ;;  %v14278_v44 = vand.u32 4294901760, %v13442_v9 }
 0x297   : > { %v13404_v19 = vsub.f32 %v13358_v43, %v14475_v30  ;;  %v14267_v30 = vand.u32 4294901760, %v13179_v23  ;;  %v14279_v23 = vand.u32 4294901760, %v13430_v47 }
 0x298   : > { %v11476_v39 = vpack.c.bf16 %v14478_v4, %v14477_v26  ;;  %v14266_v26 = vand.u32 4294901760, %v13399_v3  ;;  %v13444_v4 = vsub.f32 %v8722_v48, %v8866_v17 }
 0x299   : > { %14476 = vst [vmem:[#allocation27_spill] sm:$0xff] %v13404_v19  ;;  %11473 = vmatpush1.bf16.msra.mxu0 %v11472_v37  ;;  %v11480_v37 = vpack.c.bf16 %v14263_v2, %v14267_v30  ;;  %v14487_v41 = vand.u32 4294901760, %v13404_v19  ;;  %v14276_v2 = vand.u32 4294901760, %v13433_v56  ;;  %v8724_v30 = vld [vmem:[#allocation2 + $0x1e0] sm:$0xff] }
 0x29a   : > { %11475 = vmatprep.subr.bf16.mxu0 %v11474_v42  ;;  %v14264_v42 = vand.u32 4294901760, %v13424_v22  ;;  %14486 = vst [vmem:[#allocation36_spill] sm:$0xff] %v13444_v4  ;;  %v14277_v48 = vand.u32 4294901760, %v13444_v4  ;;  %v8726_v22 = vld [vmem:[#allocation2 + $0x1f0] sm:$0xff]  ;;  %v14493_v4 = vand.u32 4294901760, %v13358_v43  ;;  %v13499_v43 = vpack.c.bf16 %v8866_v17, %v8862_v7 }
 0x29b   : > { %v11482_v0 = vpack.c.bf16 %v14487_v41, %v14266_v26  ;;  %v8725_v41 = vld [vmem:[#allocation2 + $0x1e8] sm:$0xff]  ;;  %v8874_v5 = vand.u32 4294901760, %v8726_v22 }
 0x29c   : > { %14498 = vst [vmem:[#allocation84_spill] sm:$0xff] %v13499_v43 }
 0x29d   : > { %11477 = vmatpush1.bf16.msra.mxu0 %v11476_v39  ;;  %v11484_v39 = vpack.c.bf16 %v14264_v42, %v14265_v58  ;;  %v8727_v42 = vld [vmem:[#allocation2 + $0x1f8] sm:$0xff]  ;;  %v8868_v58 = vand.u32 4294901760, %v8725_v41 }
 0x29e   : > { %11479 = vmatprep.subr.bf16.mxu0 %v11478_v28  ;;  %v11486_v28 = vpack.c.bf16 %v14276_v2, %v14279_v23  ;;  %v8872_v26 = vand.u32 4294901760, %v8727_v42  ;;  %v13472_v2 = vsub.f32 %v8726_v22, %v8874_v5  ;;  %v14492_v23 = vand.u32 4294901760, %v13356_v16 }
 0x29f   : > { %v13466_v47 = vsub.f32 %v8725_v41, %v8868_v58  ;;  %v13496_v16 = vpack.c.bf16 %v8864_v52, %v8860_v40 }
 0x2a0   : > { %v13468_v56 = vsub.f32 %v8727_v42, %v8872_v26  ;;  %14491 = vst [vmem:[#allocation80_spill] sm:$0xff] %v13472_v2  ;;  %v13482_v41 = vpack.c.bf16 %v14493_v4, %v14492_v23  ;;  %v14497_v23 = vld [vmem:[#allocation16_spill] sm:$0xff]  ;;  %v14501_v4 = vand.u32 4294901760, %v12956_v14 }
 0x2a1   : > { %11481 = vmatpush1.bf16.msra.mxu0 %v11480_v37  ;;  %v11488_v37 = vpack.c.bf16 %v14277_v48, %v14278_v44  ;;  %14488 = vst [vmem:[#allocation38_spill] sm:$0xff] %v13466_v47  ;;  %v14285_v48 = vand.u32 4294901760, %v13466_v47  ;;  %v14282_v44 = vand.u32 4294901760, %v13472_v2  ;;  %14496 = vst [vmem:[#allocation83_spill] sm:$0xff] %v13496_v16 }
 0x2a2   : > { %11483 = vmatprep.subr.bf16.mxu0 %v11482_v0  ;;  %v8870_v0 = vand.u32 4294901760, %v8724_v30  ;;  %14489 = vst [vmem:[#allocation39_spill] sm:$0xff] %v13468_v56  ;;  %14494 = vst [vmem:[#allocation81_spill] sm:$0xff] %v13482_v41  ;;  %11227 = vmatprep.subr.bf16.mxu1 %v13482_v41 }
 0x2a5   : > { %11485 = vmatpush1.bf16.msra.mxu0 %v11484_v39  ;;  %v13470_v39 = vsub.f32 %v8724_v30, %v8870_v0  ;;  %v13488_v30 = vpack.c.bf16 %v8858_v60, %v8854_v15  ;;  %v13503_v15 = vpack.c.bf16 %v8872_v26, %v8868_v58  ;;  %v13505_v60 = vpack.c.bf16 %v8874_v5, %v8870_v0  ;;  %v13515_v26 = vpop.permute.xlu1 %8658 }
 0x2a6   : > { %11487 = vmatprep.subr.bf16.mxu0 %v11486_v28  ;;  %v14284_v28 = vand.u32 4294901760, %v13468_v56 }
 0x2a7   : > { %14490 = vst [vmem:[#allocation79_spill] sm:$0xff] %v13470_v39  ;;  %14495 = vst [vmem:[#allocation82_spill] sm:$0xff] %v13488_v30  ;;  %11229 = vmatpush1.bf16.msra.mxu1 %v13488_v30 }
 0x2a8   : > { %v11490_v22 = vpack.c.bf16 %v14284_v28, %v14285_v48  ;;  %11231 = vmatprep.subr.bf16.mxu1 %v13496_v16  ;;  %14499 = vst [vmem:[#allocation85_spill] sm:$0xff] %v13503_v15  ;;  %14500 = vst [vmem:[#allocation86_spill] sm:$0xff] %v13505_v60 }
 0x2a9   : > { %11489 = vmatpush1.bf16.msra.mxu0 %v11488_v37  ;;  %v14283_v37 = vand.u32 4294901760, %v13470_v39 }
 0x2aa   : > { %11491 = vmatprep.subr.bf16.mxu0 %v11490_v22  ;;  %v8896_v22 = vsub.f32 %v12956_v14, %v14501_v4  ;;  %v14518_v14 = vld [vmem:[#allocation22_spill] sm:$0xff] }
 0x2ab   : > { %v11492_v42 = vpack.c.bf16 %v14282_v44, %v14283_v37  ;;  %11233 = vmatpush1.bf16.msra.mxu1 %v13499_v43 }
 0x2ac   : > { %11235 = vmatprep.subr.bf16.mxu1 %v13503_v15  ;;  %v8897_v7 = vand.u32 4294901760, %v8896_v22 }
 0x2ad   : > { %11493 = vmatpush1.bf16.msra.mxu0 %v11492_v42  ;;  %v14502_v42 = vand.u32 4294901760, %v12958_v11 }
 0x2ae   : > { %11495 = vmatprep.subr.bf16.mxu0 %v14497_v23 }
 0x2af   : > { %v8908_v52 = vsub.f32 %v12958_v11, %v14502_v42  ;;  %11237 = vmatpush1.bf16.msra.mxu1 %v13505_v60  ;;  %v14504_v42 = vand.u32 4294901760, %v12960_v12 }
 0x2b1   : > { %v8909_v17 = vand.u32 4294901760, %v8908_v52  ;;  %v8902_v37 = vsub.f32 %v12960_v12, %v14504_v42  ;;  %v14505_v52 = vand.u32 4294901760, %v12962_v63  ;;  %v14515_v12 = vld [vmem:[#allocation19_spill] sm:$0xff] }
 0x2b3   : > { %v11238_v40 = vpack.c.bf16 %v8909_v17, %v8897_v7  ;;  %v8914_v7 = vsub.f32 %v12962_v63, %v14505_v52  ;;  %v8903_v23 = vand.u32 4294901760, %v8902_v37  ;;  %v14509_v52 = vand.u32 4294901760, %v12968_v35 }
 0x2b4   : > { %v14510_v63 = vand.u32 4294901760, %v12970_v24  ;;  %v14513_v37 = vand.u32 4294901760, %v12990_v6 }
 0x2b5   : > { %11239 = vmatprep.subr.bf16.mxu1 %v11238_v40  ;;  %v14507_v40 = vand.u32 4294901760, %v12964_v38 }
 0x343   : > { %v8201_v5 = vpop.f32.mrb[0].mxu0 }
 0x344   : > { %v8661_v58 = vadd.f32 %v13515_v26, %v8201_v5  ;;  %v8203_v0 = vpop.f32.mrb[1].mxu0  ;;  %v8920_v5 = vsub.f32 %v12964_v38, %v14507_v40  ;;  %v8938_v40 = vsub.f32 %v12970_v24, %v14510_v63  ;;  %v14511_v38 = vld [vmem:[#allocation17_spill] sm:$0xff] }
 0x345   : > { %v8662_v4 = vadd.f32 %v13515_v26, %v8203_v0  ;;  %v14508_v0 = vand.u32 4294901760, %v12966_v13 }
 0x346   : > { %v13519_v44 = vand.u32 4294901760, %v8661_v58  ;;  %v8921_v63 = vand.u32 4294901760, %v8920_v5  ;;  %v8939_v11 = vand.u32 4294901760, %v8938_v40 }
 0x347   : > { %v8876_v22 = vand.u32 4294901760, %v8662_v4  ;;  %v8932_v28 = vsub.f32 %v12966_v13, %v14508_v0  ;;  %v8915_v0 = vand.u32 4294901760, %v8914_v7  ;;  %v14512_v13 = vand.u32 4294901760, %v12986_v45 }
 0x348   : > { %14503 = vst [vmem:[#allocation87_spill] sm:$0xff] %v13519_v44  ;;  %v13528_v17 = vsub.f32 %v8661_v58, %v13519_v44  ;;  %v8926_v58 = vsub.f32 %v12968_v35, %v14509_v52 }
 0x349   : > { %v13536_v48 = vsub.f32 %v8662_v4, %v8876_v22  ;;  %9887 = vmatprep.mubr.f32.mxu0 %v8876_v22  ;;  %v8944_v42 = vsub.f32 %v12986_v45, %v14512_v13  ;;  %v14516_v13 = vand.u32 4294901760, %v12993_v27 }
 0x34a   : > { %14506 = vst [vmem:[#allocation88_spill] sm:$0xff] %v13528_v17  ;;  %9889 = vmatmul.mubr.f32.vlgmr.msra.gmra.mrb[10].mxu0 %v13519_v44  ;;  %v8956_v44 = vsub.f32 %v12990_v6, %v14513_v37  ;;  %v14514_v52 = vand.u32 4294901760, %v13528_v17  ;;  %v8927_v24 = vand.u32 4294901760, %v8926_v58  ;;  %v14517_v37 = vand.u32 4294901760, %v12995_v36 }
 0x34b   : > { %11497 = vmatpush1.bf16.msra.mxu0 %v14511_v38  ;;  %10024 = vmatprep.mubr.f32.mxu0 %v8876_v22  ;;  %v14302_v4 = vand.u32 4294901760, %v13536_v48  ;;  %v8933_v38 = vand.u32 4294901760, %v8932_v28  ;;  %v8950_v45 = vsub.f32 %v12993_v27, %v14516_v13  ;;  %v8945_v5 = vand.u32 4294901760, %v8944_v42 }
 0x34c   : > { %v8885_v35 = vsub.f32 %v13528_v17, %v14514_v52  ;;  %11499 = vmatprep.subr.bf16.mxu0 %v14515_v12  ;;  %v8962_v6 = vsub.f32 %v12995_v36, %v14517_v37  ;;  %v11240_v12 = vpack.c.bf16 %v8915_v0, %v8903_v23  ;;  %v8957_v28 = vand.u32 4294901760, %v8956_v44  ;;  %v14519_v17 = vld [vmem:[#allocation23_spill] sm:$0xff]  ;;  %v14522_v23 = vld [vmem:[#allocation24_spill] sm:$0xff] }
 0x34d   : > { %v8879_v7 = vsub.f32 %v13536_v48, %v14302_v4  ;;  %v11242_v4 = vpack.c.bf16 %v8933_v38, %v8921_v63  ;;  %v14520_v58 = vand.u32 4294901760, %v13002_v34  ;;  %v14521_v13 = vand.u32 4294901760, %v13004_v33 }
 0x34e   : > { %v8886_v60 = vand.u32 4294901760, %v8885_v35  ;;  %v11244_v37 = vpack.c.bf16 %v8939_v11, %v8927_v24  ;;  %v11246_v44 = vpack.c.bf16 %v8957_v28, %v8945_v5  ;;  %v14523_v35 = vand.u32 4294901760, %v13007_v57 }
 0x34f   : > { %11501 = vmatpush1.bf16.msra.mxu0 %v14518_v14  ;;  %v8880_v52 = vand.u32 4294901760, %v8879_v7  ;;  %v8968_v40 = vsub.f32 %v13002_v34, %v14520_v58  ;;  %v8980_v27 = vsub.f32 %v13004_v33, %v14521_v13  ;;  %v8951_v14 = vand.u32 4294901760, %v8950_v45 }
 0x350   : > { %11503 = vmatprep.subr.bf16.mxu0 %v14519_v17  ;;  %v8963_v7 = vand.u32 4294901760, %v8962_v6  ;;  %v8974_v38 = vsub.f32 %v13007_v57, %v14523_v35  ;;  %v14524_v42 = vand.u32 4294901760, %v13010_v61  ;;  %v14525_v11 = vand.u32 4294901760, %v13026_v46  ;;  %v14527_v6 = vld [vmem:[#allocation25_spill] sm:$0xff] }
 0x351   : > { %8881 = vmatprep.mubr.f32.mxu1 %v8880_v52  ;;  %v8969_v63 = vand.u32 4294901760, %v8968_v40  ;;  %v8981_v52 = vand.u32 4294901760, %v8980_v27  ;;  %v14528_v5 = vand.u32 4294901760, %v14442_v29  ;;  %v14530_v27 = vld [vmem:[#allocation29_spill] sm:$0xff]  ;;  %v14531_v13 = vand.u32 4294901760, %v14444_v18 }
 0x352   : > { %8887 = vmatmul.mubr.f32.vlgmr.msra.gmra.mrb[100].mxu1 %v8886_v60  ;;  %v8986_v0 = vsub.f32 %v13010_v61, %v14524_v42  ;;  %v8992_v24 = vsub.f32 %v13026_v46, %v14525_v11  ;;  %v11248_v60 = vpack.c.bf16 %v8963_v7, %v8951_v14  ;;  %v8975_v58 = vand.u32 4294901760, %v8974_v38  ;;  %v14533_v7 = vld [vmem:[#allocation32_spill] sm:$0xff]  ;;  %v14554_v17 = vld [vmem:[#allocation49_spill] sm:$0xff] }
 0x353   : > { %11241 = vmatpush1.bf16.msra.mxu1 %v11240_v12  ;;  %11505 = vmatpush1.bf16.msra.mxu0 %v14522_v23  ;;  %v14526_v12 = vand.u32 4294901760, %v13028_v25  ;;  %v8998_v28 = vsub.f32 %v14442_v29, %v14528_v5  ;;  %v9016_v35 = vsub.f32 %v14444_v18, %v14531_v13  ;;  %v14532_v42 = vand.u32 4294901760, %v14445_v50 }
 0x354   : > { %9278 = vmatprep.mubr.f32.mxu1 %v8876_v22  ;;  %11243 = vmatprep.subr.bf16.mxu1 %v11242_v4  ;;  %v14529_v22 = vand.u32 4294901760, %v14443_v31  ;;  %v8987_v40 = vand.u32 4294901760, %v8986_v0  ;;  %v11250_v11 = vpack.c.bf16 %v8981_v52, %v8969_v63  ;;  %v14535_v0 = vand.u32 4294901760, %v14447_v62  ;;  %v14537_v63 = vld [vmem:[#allocation37_spill] sm:$0xff] }
 0x355   : > { %v9004_v45 = vsub.f32 %v13028_v25, %v14526_v12  ;;  %11507 = vmatprep.subr.bf16.mxu0 %v14527_v6  ;;  %v9028_v14 = vsub.f32 %v14445_v50, %v14532_v42  ;;  %v8993_v12 = vand.u32 4294901760, %v8992_v24  ;;  %v14536_v6 = vld [vmem:[#allocation34_spill] sm:$0xff]  ;;  %v14538_v24 = vand.u32 4294901760, %v14448_v51 }
 0x356   : > { %v9010_v4 = vsub.f32 %v14443_v31, %v14529_v22  ;;  %v8999_v22 = vand.u32 4294901760, %v8998_v28  ;;  %v9034_v13 = vsub.f32 %v14447_v62, %v14535_v0  ;;  %v11252_v42 = vpack.c.bf16 %v8987_v40, %v8975_v58 }
 0x357   : > { %11245 = vmatpush1.bf16.msra.mxu1 %v11244_v37  ;;  %11509 = vmatpush1.bf16.msra.mxu0 %v14530_v27  ;;  %v9005_v5 = vand.u32 4294901760, %v9004_v45  ;;  %v14534_v27 = vand.u32 4294901760, %v14446_v8  ;;  %v9029_v23 = vand.u32 4294901760, %v9028_v14  ;;  %v9040_v45 = vsub.f32 %v14448_v51, %v14538_v24 }
 0x358   : > { %11247 = vmatprep.subr.bf16.mxu1 %v11246_v44  ;;  %11511 = vmatprep.subr.bf16.mxu0 %v14533_v7  ;;  %v9011_v37 = vand.u32 4294901760, %v9010_v4  ;;  %v9017_v44 = vand.u32 4294901760, %v9016_v35  ;;  %v14539_v28 = vand.u32 4294901760, %v14449_v55  ;;  %v14541_v40 = vand.u32 4294901760, %v13079_v59 }
 0x359   : > { %v9022_v38 = vsub.f32 %v14446_v8, %v14534_v27  ;;  %v11254_v52 = vpack.c.bf16 %v9005_v5, %v8993_v12  ;;  %v14542_v14 = vand.u32 4294901760, %v14450_v21  ;;  %v14543_v12 = vld [vmem:[#allocation43_spill] sm:$0xff]  ;;  %v9041_v5 = vand.u32 4294901760, %v9040_v45  ;;  %v14548_v45 = vld [vmem:[#allocation45_spill] sm:$0xff] }
 0x35a   : > { %v9052_v4 = vsub.f32 %v14449_v55, %v14539_v28  ;;  %v11256_v27 = vpack.c.bf16 %v9011_v37, %v8999_v22  ;;  %v11258_v58 = vpack.c.bf16 %v9029_v23, %v9017_v44  ;;  %v9046_v35 = vsub.f32 %v13079_v59, %v14541_v40 }
 0x35b   : > { %11249 = vmatpush1.bf16.msra.mxu1 %v11248_v60  ;;  %11513 = vmatpush1.bf16.msra.mxu0 %v14536_v6  ;;  %v9023_v0 = vand.u32 4294901760, %v9022_v38  ;;  %v9035_v60 = vand.u32 4294901760, %v9034_v13  ;;  %v14540_v6 = vld [vmem:[#allocation41_spill] sm:$0xff]  ;;  %v14544_v22 = vand.u32 4294901760, %v14451_v1  ;;  %v14545_v38 = vand.u32 4294901760, %v14452_v20 }
 0x35c   : > { %11251 = vmatprep.subr.bf16.mxu1 %v11250_v11  ;;  %11515 = vmatprep.subr.bf16.mxu0 %v14537_v63  ;;  %v9058_v11 = vsub.f32 %v14450_v21, %v14542_v14  ;;  %v9053_v24 = vand.u32 4294901760, %v9052_v4  ;;  %v14547_v28 = vand.u32 4294901760, %v14453_v49  ;;  %v9047_v4 = vand.u32 4294901760, %v9046_v35  ;;  %v14549_v14 = vld [vmem:[#allocation46_spill] sm:$0xff] }
 0x35d   : > { %v9064_v37 = vsub.f32 %v14451_v1, %v14544_v22  ;;  %v9076_v23 = vsub.f32 %v14452_v20, %v14545_v38  ;;  %v11260_v13 = vpack.c.bf16 %v9035_v60, %v9023_v0  ;;  %v14550_v22 = vand.u32 4294901760, %v14549_v14  ;;  %v14553_v60 = vld [vmem:[#allocation48_spill] sm:$0xff] }
 0x35e   : > { %v9059_v40 = vand.u32 4294901760, %v9058_v11  ;;  %v14556_v11 = vld [vmem:[#allocation53_spill] sm:$0xff] }
 0x35f   : > { %11253 = vmatpush1.bf16.msra.mxu1 %v11252_v42  ;;  %11517 = vmatpush1.bf16.msra.mxu0 %v14540_v6  ;;  %v14546_v42 = vand.u32 4294901760, %v13100_v10  ;;  %v14551_v6 = vld [vmem:[#allocation47_spill] sm:$0xff]  ;;  %v9065_v63 = vand.u32 4294901760, %v9064_v37  ;;  %v9077_v7 = vand.u32 4294901760, %v9076_v23 }
 0x360   : > { %11255 = vmatprep.subr.bf16.mxu1 %v11254_v52  ;;  %11519 = vmatprep.subr.bf16.mxu0 %v14543_v12  ;;  %v9082_v52 = vsub.f32 %v14453_v49, %v14547_v28  ;;  %v9088_v12 = vsub.f32 %v14549_v14, %v14550_v22  ;;  %v14552_v38 = vand.u32 4294901760, %v14551_v6  ;;  %v11264_v22 = vpack.c.bf16 %v9059_v40, %v9047_v4  ;;  %v14560_v37 = vld [vmem:[#allocation51_spill] sm:$0xff] }
 0x361   : > { %v9070_v44 = vsub.f32 %v13100_v10, %v14546_v42  ;;  %v11262_v42 = vpack.c.bf16 %v9053_v24, %v9041_v5  ;;  %v14557_v10 = vld [vmem:[#allocation50_spill] sm:$0xff]  ;;  %v11266_v24 = vpack.c.bf16 %v9077_v7, %v9065_v63  ;;  %v14561_v23 = vand.u32 4294901760, %v14560_v37  ;;  %v14566_v7 = vld [vmem:[#allocation55_spill] sm:$0xff] }
 0x362   : > { %v9100_v0 = vsub.f32 %v14551_v6, %v14552_v38  ;;  %v9089_v14 = vand.u32 4294901760, %v9088_v12  ;;  %v14558_v38 = vand.u32 4294901760, %v14557_v10  ;;  %v14559_v5 = vld [vmem:[#allocation54_spill] sm:$0xff]  ;;  %v14567_v63 = vand.u32 4294901760, %v14566_v7 }
 0x363   : > { %11257 = vmatpush1.bf16.msra.mxu1 %v11256_v27  ;;  %11521 = vmatpush1.bf16.msra.mxu0 %v14548_v45  ;;  %v9071_v28 = vand.u32 4294901760, %v9070_v44  ;;  %v9083_v27 = vand.u32 4294901760, %v9082_v52  ;;  %v14555_v45 = vand.u32 4294901760, %v14554_v17  ;;  %v9112_v44 = vsub.f32 %v14560_v37, %v14561_v23  ;;  %v14562_v52 = vld [vmem:[#allocation52_spill] sm:$0xff] }
 0x364   : > { %11259 = vmatprep.subr.bf16.mxu1 %v11258_v58  ;;  %11523 = vmatprep.subr.bf16.mxu0 %v14553_v60  ;;  %v9101_v49 = vand.u32 4294901760, %v9100_v0  ;;  %v9106_v58 = vsub.f32 %v14557_v10, %v14558_v38  ;;  %v14565_v0 = vld [vmem:[#allocation58_spill] sm:$0xff]  ;;  %v14568_v23 = vld [vmem:[#allocation56_spill] sm:$0xff] }
 0x365   : > { %v9094_v35 = vsub.f32 %v14554_v17, %v14555_v45  ;;  %v14563_v45 = vand.u32 4294901760, %v14562_v52  ;;  %v11268_v4 = vpack.c.bf16 %v9083_v27, %v9071_v28  ;;  %v14569_v60 = vand.u32 4294901760, %v14568_v23  ;;  %v14571_v28 = vld [vmem:[#allocation57_spill] sm:$0xff] }
 0x366   : > { %v9107_v38 = vand.u32 4294901760, %v9106_v58  ;;  %v14572_v27 = vand.u32 4294901760, %v14571_v28 }
 0x367   : > { %11261 = vmatpush1.bf16.msra.mxu1 %v11260_v13  ;;  %11525 = vmatpush1.bf16.msra.mxu0 %v14556_v11  ;;  %v9124_v13 = vsub.f32 %v14562_v52, %v14563_v45  ;;  %v14564_v11 = vld [vmem:[#allocation78_spill] sm:$0xff]  ;;  %v9095_v40 = vand.u32 4294901760, %v9094_v35  ;;  %v9130_v37 = vsub.f32 %v14568_v23, %v14569_v60  ;;  %v14570_v45 = vld [vmem:[#allocation61_spill] sm:$0xff] }
 0x368   : > { %11263 = vmatprep.subr.bf16.mxu1 %v11262_v42  ;;  %11527 = vmatprep.subr.bf16.mxu0 %v14559_v5  ;;  %v8663_v12 = vadd.f32 %v13515_v26, %v14564_v11  ;;  %v11270_v42 = vpack.c.bf16 %v9101_v49, %v9089_v14  ;;  %v9118_v5 = vsub.f32 %v14566_v7, %v14567_v63  ;;  %v9113_v26 = vand.u32 4294901760, %v9112_v44  ;;  %v14577_v52 = vld [vmem:[#allocation62_spill] sm:$0xff]  ;;  %v14581_v23 = vld [vmem:[#allocation65_spill] sm:$0xff] }
 0x369   : > { %v9125_v11 = vand.u32 4294901760, %v9124_v13  ;;  %v9136_v35 = vsub.f32 %v14571_v28, %v14572_v27  ;;  %v14578_v60 = vand.u32 4294901760, %v14577_v52  ;;  %v14582_v10 = vand.u32 4294901760, %v14581_v23  ;;  %v14583_v28 = vld [vmem:[#allocation64_spill] sm:$0xff] }
 0x36a   : > { %v8746_v58 = vsel %vm8744_vm11, %v8663_v12, 0  ;;  %v11272_v12 = vpack.c.bf16 %v9107_v38, %v9095_v40  ;;  %v14590_v38 = vand.u32 4294901760, %v13170_v54 }
 0x36b   : > { %11265 = vmatpush1.bf16.msra.mxu1 %v11264_v22  ;;  %11529 = vmatpush1.bf16.msra.mxu0 %v14565_v0  ;;  %v14573_v22 = vld [vmem:[#allocation59_spill] sm:$0xff]  ;;  %v14575_v0 = vld [vmem:[#allocation60_spill] sm:$0xff]  ;;  %v9172_v27 = vsub.f32 %v14581_v23, %v14582_v10  ;;  %v13688_v17 = vand.u32 4294901760, %v8746_v58 }
 0x36c   : > { %11267 = vmatprep.subr.bf16.mxu1 %v11266_v24  ;;  %11531 = vmatprep.subr.bf16.mxu0 %v14570_v45  ;;  %v14574_v49 = vand.u32 4294901760, %v14573_v22  ;;  %v14576_v63 = vand.u32 4294901760, %v14575_v0  ;;  %v9154_v24 = vsub.f32 %v14577_v52, %v14578_v60  ;;  %v14579_v45 = vld [vmem:[#allocation63_spill] sm:$0xff]  ;;  %v11274_v60 = vpack.c.bf16 %v9125_v11, %v9113_v26  ;;  %v14591_v26 = vld [vmem:[#allocation70_spill] sm:$0xff] }
 0x36d   : > { %v14580_v44 = vand.u32 4294901760, %v14579_v45  ;;  %14584 = vst [vmem:[#allocation78_spill] sm:$0xff] %v13688_v17  ;;  %v9137_v52 = vand.u32 4294901760, %v9136_v35 }
 0x36e   : > { %v9148_v14 = vsub.f32 %v14573_v22, %v14574_v49  ;;  %v9142_v7 = vsub.f32 %v14575_v0, %v14576_v63  ;;  %v9119_v49 = vand.u32 4294901760, %v9118_v5  ;;  %v9131_v22 = vand.u32 4294901760, %v9130_v37  ;;  %v14585_v63 = vld [vmem:[#allocation66_spill] sm:$0xff] }
 0x36f   : > { %v9160_v13 = vsub.f32 %v14579_v45, %v14580_v44  ;;  %11269 = vmatpush1.bf16.msra.mxu1 %v11268_v4  ;;  %11533 = vmatpush1.bf16.msra.mxu0 %v14583_v28  ;;  %v9155_v44 = vand.u32 4294901760, %v9154_v24  ;;  %v14586_v45 = vld [vmem:[#allocation67_spill] sm:$0xff]  ;;  %v14588_v4 = vld [vmem:[#allocation68_spill] sm:$0xff]  ;;  %v9173_v37 = vand.u32 4294901760, %v9172_v27 }
 0x370   : > { %11271 = vmatprep.subr.bf16.mxu1 %v11270_v42  ;;  %11535 = vmatprep.subr.bf16.mxu0 %v14585_v63  ;;  %v9149_v0 = vand.u32 4294901760, %v9148_v14  ;;  %v9143_v6 = vand.u32 4294901760, %v9142_v7  ;;  %v14587_v20 = vand.u32 4294901760, %v14586_v45  ;;  %v14589_v23 = vand.u32 4294901760, %v14588_v4 }
 0x371   : > { %v9161_v5 = vand.u32 4294901760, %v9160_v13  ;;  %v9184_v42 = vsub.f32 %v13170_v54, %v14590_v38  ;;  %v11276_v11 = vpack.c.bf16 %v9131_v22, %v9119_v49  ;;  %v14592_v7 = vand.u32 4294901760, %v13174_v53  ;;  %v8730_v54 = vld [vmem:[#allocation2 + $0x210] sm:$0xff] }
 0x372   : > { %v9166_v10 = vsub.f32 %v14586_v45, %v14587_v20  ;;  %v9178_v40 = vsub.f32 %v14588_v4, %v14589_v23  ;;  %v14593_v20 = vld [vmem:[#allocation72_spill] sm:$0xff]  ;;  %v11278_v14 = vpack.c.bf16 %v9149_v0, %v9137_v52  ;;  %v13706_v23 = vsub.f32 %v8746_v58, %v13688_v17  ;;  %v14640_v17 = vld [vmem:[#allocation15_spill] sm:$0xff] }
 0x373   : > { %11273 = vmatpush1.bf16.msra.mxu1 %v11272_v12  ;;  %11537 = vmatpush1.bf16.msra.mxu0 %v14591_v26  ;;  %v9196_v35 = vsub.f32 %v13174_v53, %v14592_v7  ;;  %v11280_v24 = vpack.c.bf16 %v9155_v44, %v9143_v6  ;;  %v11282_v63 = vpack.c.bf16 %v9173_v37, %v9161_v5  ;;  %v9185_v38 = vand.u32 4294901760, %v9184_v42  ;;  %v14595_v12 = vld [vmem:[#allocation73_spill] sm:$0xff]  ;;  %v14603_v5 = vld [vmem:[#allocation76_spill] sm:$0xff]  ;;  %v14604_v37 = vld [vmem:[#allocation30_spill] sm:$0xff] }
 0x374   : > { %11275 = vmatprep.subr.bf16.mxu1 %v11274_v60  ;;  %11539 = vmatprep.subr.bf16.mxu0 %v14593_v20  ;;  %14594 = vst [vmem:[#allocation89_spill] sm:$0xff] %v13706_v23  ;;  %v9167_v13 = vand.u32 4294901760, %v9166_v10  ;;  %v9179_v27 = vand.u32 4294901760, %v9178_v40  ;;  %v14596_v28 = vand.u32 4294901760, %v14595_v12  ;;  %v14597_v49 = vand.u32 4294901760, %v13181_v32  ;;  %v14598_v60 = vld [vmem:[#allocation75_spill] sm:$0xff] }
 0x375   : > { %v9197_v52 = vand.u32 4294901760, %v9196_v35  ;;  %v14599_v0 = vand.u32 4294901760, %v13399_v3  ;;  %v14600_v58 = vand.u32 4294901760, %v13404_v19  ;;  %v14601_v10 = vld [vmem:[#allocation28_spill] sm:$0xff]  ;;  %v14605_v42 = vand.u32 4294901760, %v14604_v37  ;;  %v14606_v35 = vld [vmem:[#allocation31_spill] sm:$0xff] }
 0x376   : > { %v9190_v22 = vsub.f32 %v14595_v12, %v14596_v28  ;;  %v9202_v7 = vsub.f32 %v13181_v32, %v14597_v49  ;;  %v14602_v40 = vand.u32 4294901760, %v14601_v10  ;;  %v14607_v49 = vand.u32 4294901760, %v14606_v35  ;;  %v8731_v32 = vld [vmem:[#allocation2 + $0x218] sm:$0xff] }
 0x377   : > { %11277 = vmatpush1.bf16.msra.mxu1 %v11276_v11  ;;  %11541 = vmatpush1.bf16.msra.mxu0 %v14598_v60  ;;  %v9208_v6 = vsub.f32 %v13399_v3, %v14599_v0  ;;  %v9220_v44 = vsub.f32 %v13404_v19, %v14600_v58  ;;  %v9226_v11 = vsub.f32 %v14604_v37, %v14605_v42  ;;  %v14608_v0 = vld [vmem:[#allocation33_spill] sm:$0xff]  ;;  %v14610_v58 = vand.u32 4294901760, %v13442_v9  ;;  %v8729_v37 = vld [vmem:[#allocation2 + $0x208] sm:$0xff] }
 0x378   : > { %v9214_v28 = vsub.f32 %v14601_v10, %v14602_v40  ;;  %11279 = vmatprep.subr.bf16.mxu1 %v11278_v14  ;;  %11543 = vmatprep.subr.bf16.mxu0 %v14603_v5  ;;  %v9232_v60 = vsub.f32 %v14606_v35, %v14607_v49  ;;  %v14609_v20 = vand.u32 4294901760, %v14608_v0  ;;  %v14611_v40 = vld [vmem:[#allocation36_spill] sm:$0xff]  ;;  %v11284_v3 = vpack.c.bf16 %v9179_v27, %v9167_v13  ;;  %v14613_v49 = vld [vmem:[#allocation77_spill] sm:$0xff] }
 0x379   : > { %v9238_v19 = vsub.f32 %v13442_v9, %v14610_v58  ;;  %v14612_v14 = vand.u32 4294901760, %v14611_v40  ;;  %v9191_v42 = vand.u32 4294901760, %v9190_v22  ;;  %v11286_v35 = vpack.c.bf16 %v9197_v52, %v9185_v38  ;;  %v8728_v22 = vld [vmem:[#allocation2 + $0x200] sm:$0xff] }
 0x37a   : > { %v9244_v26 = vsub.f32 %v14608_v0, %v14609_v20  ;;  %v9203_v12 = vand.u32 4294901760, %v9202_v7  ;;  %v9209_v20 = vand.u32 4294901760, %v9208_v6  ;;  %v9221_v0 = vand.u32 4294901760, %v9220_v44 }
 0x37b   : > { %v9250_v5 = vsub.f32 %v14611_v40, %v14612_v14  ;;  %11281 = vmatpush1.bf16.msra.mxu1 %v11280_v24  ;;  %11545 = vmatpush1.bf16.msra.mxu0 %v14613_v49  ;;  %v9215_v58 = vand.u32 4294901760, %v9214_v28  ;;  %v9227_v9 = vand.u32 4294901760, %v9226_v11  ;;  %v9233_v53 = vand.u32 4294901760, %v9232_v60  ;;  %v8733_v60 = vld [vmem:[#allocation2 + $0x228] sm:$0xff] }
 0x37c   : > { %11283 = vmatprep.subr.bf16.mxu1 %v11282_v63  ;;  %11547 = vmatprep.subr.bf16.mxu0 %v13482_v41  ;;  %v9245_v14 = vand.u32 4294901760, %v9244_v26  ;;  %v10032_v40 = vand.u32 4294901760, %v8729_v37  ;;  %v10036_v10 = vand.u32 4294901760, %v8731_v32  ;;  %v9239_v13 = vand.u32 4294901760, %v9238_v19  ;;  %v8735_v26 = vld [vmem:[#allocation2 + $0x238] sm:$0xff] }
 0x37d   : > { %v9251_v27 = vand.u32 4294901760, %v9250_v5  ;;  %v14614_v24 = vand.u32 4294901760, %v13466_v47  ;;  %v14615_v7 = vand.u32 4294901760, %v13468_v56  ;;  %v11288_v52 = vpack.c.bf16 %v9203_v12, %v9191_v42 }
 0x37e   : > { %v14616_v6 = vand.u32 4294901760, %v13470_v39  ;;  %v14617_v44 = vand.u32 4294901760, %v13472_v2  ;;  %v11290_v5 = vpack.c.bf16 %v9221_v0, %v9209_v20  ;;  %v10034_v11 = vand.u32 4294901760, %v8728_v22  ;;  %v8739_v0 = vld [vmem:[#allocation2 + $0x258] sm:$0xff] }
 0x37f   : > { %v9256_v38 = vsub.f32 %v13466_v47, %v14614_v24  ;;  %v9268_v63 = vsub.f32 %v13468_v56, %v14615_v7  ;;  %11285 = vmatpush1.bf16.msra.mxu1 %v11284_v3  ;;  %11549 = vmatpush1.bf16.msra.mxu0 %v13488_v30  ;;  %v10038_v24 = vand.u32 4294901760, %v8730_v54  ;;  %v8732_v3 = vld [vmem:[#allocation2 + $0x220] sm:$0xff]  ;;  %v8734_v7 = vld [vmem:[#allocation2 + $0x230] sm:$0xff]  ;;  %v14618_v12 = vand.u32 4294901760, %v13706_v23 }
 0x380   : > { %v9262_v19 = vsub.f32 %v13470_v39, %v14616_v6  ;;  %v9274_v28 = vsub.f32 %v13472_v2, %v14617_v44  ;;  %11287 = vmatprep.subr.bf16.mxu1 %v11286_v35  ;;  %11551 = vmatprep.subr.bf16.mxu0 %v13496_v16  ;;  %v11292_v30 = vpack.c.bf16 %v9227_v9, %v9215_v58  ;;  %v10040_v35 = vand.u32 4294901760, %v8733_v60  ;;  %v8737_v16 = vld [vmem:[#allocation2 + $0x248] sm:$0xff] }
 0x381   : > { %v13760_v42 = vsub.f32 %v13706_v23, %v14618_v12  ;;  %v11294_v41 = vpack.c.bf16 %v9245_v14, %v9233_v53  ;;  %v13762_v6 = vpack.c.bf16 %v10036_v10, %v10032_v40  ;;  %v11296_v49 = vpack.c.bf16 %v9251_v27, %v9239_v13 }
 0x382   : > { %v9257_v39 = vand.u32 4294901760, %v9256_v38  ;;  %v9269_v44 = vand.u32 4294901760, %v9268_v63  ;;  %v10044_v2 = vand.u32 4294901760, %v8735_v26  ;;  %v9263_v20 = vand.u32 4294901760, %v9262_v19  ;;  %v8736_v63 = vld [vmem:[#allocation2 + $0x240] sm:$0xff] }
 0x383   : > { %14619 = vst [vmem:[#allocation90_spill] sm:$0xff] %v13762_v6  ;;  %11289 = vmatpush1.bf16.msra.mxu1 %v11288_v52  ;;  %11553 = vmatpush1.bf16.msra.mxu0 %v13499_v43  ;;  %v9275_v56 = vand.u32 4294901760, %v9274_v28  ;;  %v10042_v47 = vand.u32 4294901760, %v8732_v3  ;;  %v10046_v4 = vand.u32 4294901760, %v8734_v7  ;;  %v13766_v53 = vsub.f32 %v8729_v37, %v10032_v40  ;;  %v8738_v52 = vld [vmem:[#allocation2 + $0x250] sm:$0xff] }
 0x384   : > { %11291 = vmatprep.subr.bf16.mxu1 %v11290_v5  ;;  %11555 = vmatprep.subr.bf16.mxu0 %v13503_v15  ;;  %v13768_v9 = vsub.f32 %v8731_v32, %v10036_v10  ;;  %v13770_v58 = vpack.c.bf16 %v10038_v24, %v10034_v11  ;;  %v13772_v14 = vsub.f32 %v8728_v22, %v10034_v11  ;;  %v10048_v27 = vand.u32 4294901760, %v8737_v16  ;;  %v14623_v32 = vld [vmem:[#allocation86_spill] sm:$0xff]  ;;  %v8743_v22 = vld [vmem:[#allocation2 + $0x278] sm:$0xff]  ;;  %v8742_v43 = vld [vmem:[#allocation2 + $0x270] sm:$0xff] }
 0x385   : > { %v13774_v13 = vsub.f32 %v8730_v54, %v10038_v24  ;;  %v10052_v38 = vand.u32 4294901760, %v8739_v0  ;;  %v11298_v19 = vpack.c.bf16 %v9269_v44, %v9257_v39  ;;  %v13776_v28 = vpack.c.bf16 %v10044_v2, %v10040_v35  ;;  %v8741_v54 = vld [vmem:[#allocation2 + $0x268] sm:$0xff]  ;;  %v14626_v24 = vld [vmem:[#allocation9_spill] sm:$0xff]  ;;  %v8740_v15 = vld [vmem:[#allocation2 + $0x260] sm:$0xff] }
 0x386   : > { %14620 = vst [vmem:[#allocation91_spill] sm:$0xff] %v13770_v58  ;;  %v13778_v5 = vsub.f32 %v8733_v60, %v10040_v35  ;;  %v13780_v12 = vsub.f32 %v8735_v26, %v10044_v2  ;;  %v11300_v10 = vpack.c.bf16 %v9275_v56, %v9263_v20  ;;  %v13783_v37 = vpack.c.bf16 %v10046_v4, %v10042_v47  ;;  %v14629_v20 = vld [vmem:[#allocation87_spill] sm:$0xff]  ;;  %v14634_v60 = vld [vmem:[#allocation13_spill] sm:$0xff] }
 0x387   : > { %14621 = vst [vmem:[#allocation92_spill] sm:$0xff] %v13776_v28  ;;  %11293 = vmatpush1.bf16.msra.mxu1 %v11292_v30  ;;  %11557 = vmatpush1.bf16.msra.mxu0 %v14623_v32  ;;  %v13785_v40 = vsub.f32 %v8732_v3, %v10042_v47  ;;  %v10050_v39 = vand.u32 4294901760, %v8736_v63  ;;  %v10054_v11 = vand.u32 4294901760, %v8738_v52  ;;  %v13790_v26 = vsub.f32 %v8734_v7, %v10046_v4  ;;  %v14625_v30 = vld [vmem:[#allocation8_spill] sm:$0xff]  ;;  %v14627_v47 = vld [vmem:[#allocation10_spill] sm:$0xff]  ;;  %v14628_v3 = vld [vmem:[#allocation11_spill] sm:$0xff] }
 0x388   : > { %14622 = vst [vmem:[#allocation93_spill] sm:$0xff] %v13778_v5  ;;  %14624 = vst [vmem:[#allocation94_spill] sm:$0xff] %v13783_v37  ;;  %11295 = vmatprep.subr.bf16.mxu1 %v11294_v41  ;;  %11559 = vmatprep.subr.bf16.mxu0 %v13762_v6  ;;  %v11302_v56 = vpack.c.bf16 %v14626_v24, %v14625_v30  ;;  %v13794_v44 = vpack.c.bf16 %v10052_v38, %v10048_v27  ;;  %v10056_v41 = vand.u32 4294901760, %v8741_v54  ;;  %v14632_v24 = vmov 0.0   ;;  %v14639_v6 = vld [vmem:[#allocation14_spill] sm:$0xff] }
 0x389   : > { %v11304_v35 = vpack.c.bf16 %v14628_v3, %v14627_v47  ;;  %v10060_v32 = vand.u32 4294901760, %v8743_v22  ;;  %v13802_v4 = vsub.f32 %v8737_v16, %v10048_v27  ;;  %v13804_v7 = vsub.f32 %v8739_v0, %v10052_v38 }
 0x38a   : > { %10026 = vmatmul.mubr.f32.vlgmr.msra.gmra.mrb[10].mxu0 %v14629_v20  ;;  %v13809_v47 = vpack.c.bf16 %v10054_v11, %v10050_v39  ;;  %v14630_v3 = vand.u32 4294901760, %v13766_v53  ;;  %v13817_v27 = vsub.f32 %v8736_v63, %v10050_v39  ;;  %v13819_v0 = vsub.f32 %v8738_v52, %v10054_v11 }
 0x38b   : > { %11297 = vmatpush1.bf16.msra.mxu1 %v11296_v49  ;;  %11561 = vmatpush1.bf16.msra.mxu0 %v13770_v58  ;;  %v14631_v49 = vand.u32 4294901760, %v13768_v9  ;;  %v10058_v38 = vand.u32 4294901760, %v8740_v15  ;;  %v10062_v30 = vand.u32 4294901760, %v8742_v43  ;;  %v13824_v58 = vpack.c.bf16 %v10060_v32, %v10056_v41 }
 0x38c   : > { %11299 = vmatprep.subr.bf16.mxu1 %v11298_v19  ;;  %11563 = vmatprep.subr.bf16.mxu0 %v13776_v28  ;;  %v10127_v2 = vsub.f32 %v13766_v53, %v14630_v3  ;;  %v14633_v19 = vld [vmem:[#allocation12_spill] sm:$0xff]  ;;  %v14635_v45 = vand.u32 4294901760, %v13772_v14  ;;  %v14636_v23 = vand.u32 4294901760, %v13774_v13  ;;  %v14637_v52 = vand.u32 4294901760, %v13778_v5 }
 0x38d   : > { %v10139_v16 = vsub.f32 %v13768_v9, %v14631_v49  ;;  %10112 = vmatprep.mubr.f32.mxu0 %v14632_v24  ;;  %v11306_v28 = vpack.c.bf16 %v14634_v60, %v14633_v19  ;;  %v14638_v11 = vand.u32 4294901760, %v13780_v12  ;;  %v14359_v49 = vand.u32 4294901760, %v13804_v7 }
 0x38e   : > { %v10133_v3 = vsub.f32 %v13772_v14, %v14635_v45  ;;  %v10145_v63 = vsub.f32 %v13774_v13, %v14636_v23  ;;  %v10151_v39 = vsub.f32 %v13778_v5, %v14637_v52  ;;  %v13842_v45 = vsub.f32 %v8741_v54, %v10056_v41 }
 0x38f   : > { %11301 = vmatpush1.bf16.msra.mxu1 %v11300_v10  ;;  %11565 = vmatpush1.bf16.msra.mxu0 %v13783_v37  ;;  %v10163_v60 = vsub.f32 %v13780_v12, %v14638_v11  ;;  %v13844_v23 = vsub.f32 %v8743_v22, %v10060_v32  ;;  %v10128_v10 = vand.u32 4294901760, %v10127_v2  ;;  %v10140_v37 = vand.u32 4294901760, %v10139_v16 }
 0x390   : > { %11303 = vmatprep.subr.bf16.mxu1 %v11302_v56  ;;  %11567 = vmatprep.subr.bf16.mxu0 %v13794_v44  ;;  %v11308_v52 = vpack.c.bf16 %v14640_v17, %v14639_v6  ;;  %v13848_v5 = vpack.c.bf16 %v10062_v30, %v10058_v38  ;;  %v14358_v11 = vand.u32 4294901760, %v13802_v4  ;;  %v13853_v56 = vsub.f32 %v8740_v15, %v10058_v38  ;;  %v14644_v15 = vld [vmem:[#allocation20_spill] sm:$0xff] }
 0x391   : > { %v13855_v19 = vsub.f32 %v8742_v43, %v10062_v30  ;;  %v10134_v54 = vand.u32 4294901760, %v10133_v3  ;;  %v10146_v32 = vand.u32 4294901760, %v10145_v63  ;;  %v10152_v22 = vand.u32 4294901760, %v10151_v39  ;;  %v14643_v43 = vld [vmem:[#allocation18_spill] sm:$0xff] }
 0x392   : > { %9280 = vmatmul.mubr.f32.vlgmr.msra.gmra.mrb[100].mxu1 %v14629_v20  ;;  %v10164_v2 = vand.u32 4294901760, %v10163_v60  ;;  %v14641_v17 = vand.u32 4294901760, %v13785_v40  ;;  %v14642_v41 = vand.u32 4294901760, %v13790_v26  ;;  %v11310_v20 = vpack.c.bf16 %v14644_v15, %v14643_v43  ;;  %v14645_v60 = vld [vmem:[#allocation21_spill] sm:$0xff] }
 0x393   : > { %11305 = vmatpush1.bf16.msra.mxu1 %v11304_v35  ;;  %9480 = vmatprep.mubr.f32.mxu1 %v13536_v48  ;;  %v11574_v30 = vpack.c.bf16 %v10140_v37, %v10128_v10  ;;  %v10180_v35 = vand.u32 4294901760, %v13817_v27  ;;  %v10192_v38 = vand.u32 4294901760, %v13819_v0  ;;  %v10175_v3 = vsub.f32 %v13802_v4, %v14358_v11 }
 0x394   : > { %v10157_v6 = vsub.f32 %v13785_v40, %v14641_v17  ;;  %v10169_v16 = vsub.f32 %v13790_v26, %v14642_v41  ;;  %11569 = vmatpush1.bf16.msra.mxu0 %v13809_v47  ;;  %11307 = vmatprep.subr.bf16.mxu1 %v11306_v28  ;;  %v10187_v63 = vsub.f32 %v13804_v7, %v14359_v49  ;;  %v10198_v28 = vand.u32 4294901760, %v13842_v45 }
 0x395   : > { %11571 = vmatprep.subr.bf16.mxu0 %v13824_v58  ;;  %v10210_v39 = vand.u32 4294901760, %v13844_v23  ;;  %v10117_v37 = vand.u32 4294901760, %v13760_v42  ;;  %v11312_v10 = vpack.c.bf16 %v12995_v36, %v14645_v60  ;;  %v11314_v17 = vpack.c.bf16 %v13004_v33, %v13002_v34 }
 0x396   : > { %v11576_v41 = vpack.c.bf16 %v10146_v32, %v10134_v54  ;;  %v11578_v43 = vpack.c.bf16 %v10164_v2, %v10152_v22  ;;  %v10158_v15 = vand.u32 4294901760, %v10157_v6  ;;  %v10170_v11 = vand.u32 4294901760, %v10169_v16 }
 0x397   : > { %11309 = vmatpush1.bf16.msra.mxu1 %v11308_v52  ;;  %v10181_v49 = vsub.f32 %v13817_v27, %v10180_v35  ;;  %v10193_v42 = vsub.f32 %v13819_v0, %v10192_v38  ;;  %v10204_v36 = vand.u32 4294901760, %v13853_v56  ;;  %v10216_v34 = vand.u32 4294901760, %v13855_v19 }
 0x398   : > { %11573 = vmatpush1.bf16.msra.mxu0 %v13848_v5  ;;  %11311 = vmatprep.subr.bf16.mxu1 %v11310_v20  ;;  %v10176_v33 = vand.u32 4294901760, %v10175_v3  ;;  %v10188_v52 = vand.u32 4294901760, %v10187_v63  ;;  %v10199_v54 = vsub.f32 %v13842_v45, %v10198_v28  ;;  %v10211_v32 = vsub.f32 %v13844_v23, %v10210_v39 }
 0x399   : > { %11575 = vmatprep.subr.bf16.mxu0 %v11574_v30  ;;  %v11316_v22 = vpack.c.bf16 %v13010_v61, %v13007_v57  ;;  %v11580_v2 = vpack.c.bf16 %v10170_v11, %v10158_v15  ;;  %v11318_v6 = vpack.c.bf16 %v13028_v25, %v13026_v46  ;;  %v10182_v16 = vand.u32 4294901760, %v10181_v49  ;;  %v14650_v15 = vld [vmem:[#allocation44_spill] sm:$0xff] }
 0x39a   : > { %v10194_v20 = vand.u32 4294901760, %v10193_v42  ;;  %v10205_v30 = vsub.f32 %v13853_v56, %v10204_v36  ;;  %v10217_v3 = vsub.f32 %v13855_v19, %v10216_v34  ;;  %v11582_v63 = vpack.c.bf16 %v10188_v52, %v10176_v33  ;;  %v14652_v33 = vld [vmem:[#allocation47_spill] sm:$0xff] }
 0x39b   : > { %10118 = vmatmul.mubr.f32.vlgmr.msra.gmra.mrb[10].mxu0 %v10117_v37  ;;  %11313 = vmatpush1.bf16.msra.mxu1 %v11312_v10  ;;  %v10200_v37 = vand.u32 4294901760, %v10199_v54  ;;  %v10212_v57 = vand.u32 4294901760, %v10211_v32  ;;  %v11320_v61 = vpack.c.bf16 %v14443_v31, %v14442_v29  ;;  %v11322_v25 = vpack.c.bf16 %v14445_v50, %v14444_v18  ;;  %v14653_v54 = vld [vmem:[#allocation49_spill] sm:$0xff]  ;;  %v14654_v32 = vld [vmem:[#allocation50_spill] sm:$0xff] }
 0x39c   : > { %11577 = vmatpush1.bf16.msra.mxu0 %v11576_v41  ;;  %11315 = vmatprep.subr.bf16.mxu1 %v11314_v17  ;;  %v11584_v46 = vpack.c.bf16 %v10194_v20, %v10182_v16  ;;  %v10206_v49 = vand.u32 4294901760, %v10205_v30  ;;  %v10218_v11 = vand.u32 4294901760, %v10217_v3  ;;  %v11324_v10 = vpack.c.bf16 %v14447_v62, %v14446_v8  ;;  %v14646_v62 = vld [vmem:[#allocation40_spill] sm:$0xff]  ;;  %v14647_v41 = vld [vmem:[#allocation93_spill] sm:$0xff]  ;;  %v14657_v3 = vld [vmem:[#allocation55_spill] sm:$0xff] }
 0x39d   : > { %11579 = vmatprep.subr.bf16.mxu0 %v11578_v43  ;;  %10268 = vmatprep.mubr.f32.mxu0 %v14632_v24  ;;  %v11586_v60 = vpack.c.bf16 %v10212_v57, %v10200_v37  ;;  %v11326_v29 = vpack.c.bf16 %v14449_v55, %v14448_v51  ;;  %v11590_v31 = vpack.c.bf16 %v13768_v9, %v13766_v53  ;;  %v14648_v51 = vld [vmem:[#allocation78_spill] sm:$0xff]  ;;  %v14656_v16 = vld [vmem:[#allocation52_spill] sm:$0xff] }
 0x39e   : > { %v11588_v17 = vpack.c.bf16 %v10218_v11, %v10206_v49  ;;  %v11328_v50 = vpack.c.bf16 %v14450_v21, %v13079_v59  ;;  %v11592_v18 = vpack.c.bf16 %v13774_v13, %v13772_v14  ;;  %v11330_v8 = vpack.c.bf16 %v14646_v62, %v14451_v1  ;;  %v14649_v43 = vld [vmem:[#allocation42_spill] sm:$0xff]  ;;  %v14661_v49 = vld [vmem:[#allocation60_spill] sm:$0xff] }
 0x39f   : > { %11317 = vmatpush1.bf16.msra.mxu1 %v11316_v22  ;;  %v11594_v55 = vpack.c.bf16 %v13780_v12, %v14647_v41  ;;  %v11332_v42 = vpack.c.bf16 %v14650_v15, %v14649_v43  ;;  %v11596_v59 = vpack.c.bf16 %v13790_v26, %v13785_v40  ;;  %v14651_v21 = vld [vmem:[#allocation46_spill] sm:$0xff]  ;;  %v11598_v1 = vpack.c.bf16 %v13804_v7, %v13802_v4  ;;  %v14668_v62 = vld [vmem:[#allocation68_spill] sm:$0xff]  ;;  %v14670_v43 = vld [vmem:[#allocation69_spill] sm:$0xff] }
 0x3a0   : > { %11581 = vmatpush1.bf16.msra.mxu0 %v11580_v2  ;;  %11319 = vmatprep.subr.bf16.mxu1 %v11318_v6  ;;  %v11334_v52 = vpack.c.bf16 %v14652_v33, %v14651_v21  ;;  %v11336_v22 = vpack.c.bf16 %v14654_v32, %v14653_v54  ;;  %v11600_v2 = vpack.c.bf16 %v13819_v0, %v13817_v27  ;;  %v14655_v6 = vld [vmem:[#allocation51_spill] sm:$0xff]  ;;  %v14662_v11 = vld [vmem:[#allocation62_spill] sm:$0xff]  ;;  %v14673_v21 = vld [vmem:[#allocation73_spill] sm:$0xff] }
 0x3a1   : > { %11583 = vmatprep.subr.bf16.mxu0 %v11582_v63  ;;  %v11338_v20 = vpack.c.bf16 %v14656_v16, %v14655_v6  ;;  %v11602_v30 = vpack.c.bf16 %v13844_v23, %v13842_v45  ;;  %v14658_v63 = vld [vmem:[#allocation56_spill] sm:$0xff]  ;;  %v11604_v57 = vpack.c.bf16 %v13855_v19, %v13853_v56  ;;  %v14671_v15 = vld [vmem:[#allocation71_spill] sm:$0xff]  ;;  %v14674_v33 = vld [vmem:[#allocation74_spill] sm:$0xff]  ;;  %v11636_v27 = vpack.c.bf16 %v10216_v34, %v10204_v36 }
 0x3a2   : > { %v11340_v37 = vpack.c.bf16 %v14658_v63, %v14657_v3  ;;  %v14676_v54 = vld [vmem:[#allocation26_spill] sm:$0xff]  ;;  %v14677_v32 = vld [vmem:[#allocation27_spill] sm:$0xff]  ;;  %v14682_v63 = vand.u32 4294901760, %v13766_v53  ;;  %v14690_v53 = vand.u32 4294901760, %v14647_v41  ;;  %v14697_v41 = vand.u32 4294901760, %v13802_v4  ;;  %v14700_v4 = vld [vmem:[#allocation88_spill] sm:$0xff] }
 0x3a3   : > { %11321 = vmatpush1.bf16.msra.mxu1 %v11320_v61  ;;  %v14659_v61 = vld [vmem:[#allocation57_spill] sm:$0xff]  ;;  %v14679_v6 = vld [vmem:[#allocation30_spill] sm:$0xff]  ;;  %v14705_v45 = vld [vmem:[#allocation23_spill] sm:$0xff] }
 0x3a4   : > { %11585 = vmatpush1.bf16.msra.mxu0 %v11584_v46  ;;  %11323 = vmatprep.subr.bf16.mxu1 %v11322_v25  ;;  %v14660_v46 = vld [vmem:[#allocation59_spill] sm:$0xff]  ;;  %v14704_v0 = vld [vmem:[#allocation22_spill] sm:$0xff]  ;;  %v14707_v23 = vld [vmem:[#allocation25_spill] sm:$0xff] }
 0x3a5   : > { %11587 = vmatprep.subr.bf16.mxu0 %v11586_v60  ;;  %v11342_v25 = vpack.c.bf16 %v14660_v46, %v14659_v61  ;;  %v11344_v60 = vpack.c.bf16 %v14662_v11, %v14661_v49  ;;  %v14684_v61 = vld [vmem:[#allocation35_spill] sm:$0xff]  ;;  %v14685_v46 = vld [vmem:[#allocation36_spill] sm:$0xff]  ;;  %v14686_v49 = vand.u32 4294901760, %v13772_v14  ;;  %v14687_v11 = vand.u32 4294901760, %v13774_v13  ;;  %v14708_v19 = vld [vmem:[#allocation29_spill] sm:$0xff] }
 0x3a6   : > { %v14695_v14 = vand.u32 4294901760, %v13785_v40  ;;  %v14696_v13 = vand.u32 4294901760, %v13790_v26  ;;  %v11632_v40 = vpack.c.bf16 %v10192_v38, %v10180_v35  ;;  %v11634_v26 = vpack.c.bf16 %v10210_v39, %v10198_v28  ;;  %v14709_v56 = vld [vmem:[#allocation32_spill] sm:$0xff]  ;;  %v14710_v35 = vld [vmem:[#allocation34_spill] sm:$0xff]  ;;  %v14711_v38 = vld [vmem:[#allocation37_spill] sm:$0xff] }
 0x3a7   : > { %11325 = vmatpush1.bf16.msra.mxu1 %v11324_v10  ;;  %v14663_v10 = vld [vmem:[#allocation63_spill] sm:$0xff]  ;;  %v14712_v28 = vld [vmem:[#allocation41_spill] sm:$0xff]  ;;  %v14715_v36 = vld [vmem:[#allocation48_spill] sm:$0xff] }
 0x3a8   : > { %11589 = vmatpush1.bf16.msra.mxu0 %v11588_v17  ;;  %11327 = vmatprep.subr.bf16.mxu1 %v11326_v29  ;;  %v14664_v17 = vld [vmem:[#allocation65_spill] sm:$0xff]  ;;  %v14717_v34 = vld [vmem:[#allocation54_spill] sm:$0xff] }
 0x3a9   : > { %11591 = vmatprep.subr.bf16.mxu0 %v11590_v31  ;;  %v11346_v29 = vpack.c.bf16 %v14664_v17, %v14663_v10  ;;  %v14665_v31 = vld [vmem:[#allocation90_spill] sm:$0xff]  ;;  %v14689_v17 = vld [vmem:[#allocation39_spill] sm:$0xff]  ;;  %v14714_v39 = vld [vmem:[#allocation45_spill] sm:$0xff] }
 0x3aa   : > { %v14688_v10 = vld [vmem:[#allocation38_spill] sm:$0xff] }
 0x3ab   : > { %10270 = vmatmul.mubr.f32.vlgmr.msra.gmra.mrb[10].mxu0 %v14648_v51  ;;  %11329 = vmatpush1.bf16.msra.mxu1 %v11328_v50  ;;  %v14666_v50 = vld [vmem:[#allocation89_spill] sm:$0xff] }
 0x3ac   : > { %11593 = vmatpush1.bf16.msra.mxu0 %v11592_v18  ;;  %11331 = vmatprep.subr.bf16.mxu1 %v11330_v8  ;;  %v14667_v18 = vld [vmem:[#allocation67_spill] sm:$0xff] }
 0x3ad   : > { %11595 = vmatprep.subr.bf16.mxu0 %v11594_v55  ;;  %10372 = vmatprep.mubr.f32.mxu0 %v14632_v24  ;;  %v11348_v8 = vpack.c.bf16 %v14668_v62, %v14667_v18  ;;  %v14669_v55 = vld [vmem:[#allocation91_spill] sm:$0xff]  ;;  %v14692_v62 = vand.u32 4294901760, %v14666_v50 }
 0x3af   : > { %11333 = vmatpush1.bf16.msra.mxu1 %v11332_v42  ;;  %v11350_v42 = vpack.c.bf16 %v14671_v15, %v14670_v43  ;;  %v14694_v43 = vld [vmem:[#allocation80_spill] sm:$0xff] }
 0x3b0   : > { %11597 = vmatpush1.bf16.msra.mxu0 %v11596_v59  ;;  %11335 = vmatprep.subr.bf16.mxu1 %v11334_v52  ;;  %v14672_v59 = vld [vmem:[#allocation92_spill] sm:$0xff]  ;;  %v11352_v52 = vpack.c.bf16 %v14674_v33, %v14673_v21  ;;  %v14702_v33 = vand.u32 4294901760, %v13536_v48 }
 0x3b1   : > { %11599 = vmatprep.subr.bf16.mxu0 %v11598_v1  ;;  %v14675_v1 = vld [vmem:[#allocation94_spill] sm:$0xff]  ;;  %v14706_v48 = vld [vmem:[#allocation24_spill] sm:$0xff] }
 0x3b3   : > { %11337 = vmatpush1.bf16.msra.mxu1 %v11336_v22  ;;  %v11354_v22 = vpack.c.bf16 %v14677_v32, %v14676_v54  ;;  %v14726_v54 = vld [vmem:[#allocation77_spill] sm:$0xff] }
 0x3b4   : > { %11601 = vmatpush1.bf16.msra.mxu0 %v11600_v2  ;;  %11339 = vmatprep.subr.bf16.mxu1 %v11338_v20  ;;  %v14678_v2 = vld [vmem:[#allocation28_spill] sm:$0xff]  ;;  %v14680_v20 = vld [vmem:[#allocation31_spill] sm:$0xff]  ;;  %v14727_v32 = vld [vmem:[#allocation81_spill] sm:$0xff] }
 0x3b5   : > { %11603 = vmatprep.subr.bf16.mxu0 %v11602_v30  ;;  %v11356_v16 = vpack.c.bf16 %v14679_v6, %v14678_v2  ;;  %v14681_v30 = vld [vmem:[#allocation33_spill] sm:$0xff]  ;;  %v14729_v2 = vld [vmem:[#allocation83_spill] sm:$0xff]  ;;  %v14730_v6 = vld [vmem:[#allocation84_spill] sm:$0xff] }
 0x3b6   : > { %v11358_v3 = vpack.c.bf16 %v14681_v30, %v14680_v20  ;;  %v14732_v20 = vld [vmem:[#allocation86_spill] sm:$0xff]  ;;  %v14733_v30 = vand.u32 4294901760, %v14700_v4 }
 0x3b7   : > { %11341 = vmatpush1.bf16.msra.mxu1 %v11340_v37  ;;  %v14683_v37 = vand.u32 4294901760, %v13768_v9  ;;  %v14691_v9 = vand.u32 4294901760, %v13780_v12  ;;  %v14698_v12 = vand.u32 4294901760, %v13804_v7  ;;  %v14701_v7 = vld [vmem:[#allocation17_spill] sm:$0xff] }
 0x3b8   : > { %11605 = vmatpush1.bf16.msra.mxu0 %v11604_v57  ;;  %11343 = vmatprep.subr.bf16.mxu1 %v11342_v25  ;;  %v11360_v25 = vpack.c.bf16 %v14685_v46, %v14684_v61 }
 0x3b9   : > { %11607 = vmatprep.subr.bf16.mxu0 %v14665_v31  ;;  %v11622_v57 = vpack.c.bf16 %v14683_v37, %v14682_v63  ;;  %v11626_v18 = vpack.c.bf16 %v14691_v9, %v14690_v53  ;;  %v11630_v21 = vpack.c.bf16 %v14698_v12, %v14697_v41 }
 0x3bb   : > { %10375 = vmatmul.mubr.f32.vlgmr.msra.gmra.mrb[10].mxu0 %v14666_v50  ;;  %11345 = vmatpush1.bf16.msra.mxu1 %v11344_v60  ;;  %v11624_v60 = vpack.c.bf16 %v14687_v11, %v14686_v49  ;;  %v14699_v50 = vld [vmem:[#allocation16_spill] sm:$0xff] }
 0x3bc   : > { %11609 = vmatpush1.bf16.msra.mxu0 %v14669_v55  ;;  %11347 = vmatprep.subr.bf16.mxu1 %v11346_v29  ;;  %v11362_v29 = vpack.c.bf16 %v14689_v17, %v14688_v10 }
 0x3bd   : > { %11611 = vmatprep.subr.bf16.mxu0 %v14672_v59  ;;  %10461 = vmatprep.mubr.f32.mxu0 %v14632_v24 }
 0x3bf   : > { %11349 = vmatpush1.bf16.msra.mxu1 %v11348_v8  ;;  %v14693_v8 = vld [vmem:[#allocation79_spill] sm:$0xff] }
 0x3c0   : > { %11613 = vmatpush1.bf16.msra.mxu0 %v14675_v1  ;;  %11351 = vmatprep.subr.bf16.mxu1 %v11350_v42  ;;  %v11364_v15 = vpack.c.bf16 %v14694_v43, %v14693_v8  ;;  %v11628_v42 = vpack.c.bf16 %v14696_v13, %v14695_v14 }
 0x3c1   : > { %11615 = vmatprep.subr.bf16.mxu0 %v13794_v44 }
 0x3c3   : > { %11353 = vmatpush1.bf16.msra.mxu1 %v11352_v52  ;;  %v14703_v52 = vld [vmem:[#allocation19_spill] sm:$0xff] }
 0x3c4   : > { %11617 = vmatpush1.bf16.msra.mxu0 %v13809_v47  ;;  %11355 = vmatprep.subr.bf16.mxu1 %v11354_v22  ;;  %v14728_v22 = vld [vmem:[#allocation82_spill] sm:$0xff] }
 0x3c5   : > { %11619 = vmatprep.subr.bf16.mxu0 %v13824_v58 }
 0x3c7   : > { %11357 = vmatpush1.bf16.msra.mxu1 %v11356_v16  ;;  %v14731_v16 = vld [vmem:[#allocation85_spill] sm:$0xff] }
 0x3c8   : > { %11621 = vmatpush1.bf16.msra.mxu0 %v13848_v5  ;;  %11359 = vmatprep.subr.bf16.mxu1 %v11358_v3 }
 0x3c9   : > { %11623 = vmatprep.subr.bf16.mxu0 %v11622_v57 }
 0x3cb   : > { %10465 = vmatmul.mubr.f32.vlgmr.msra.gmra.mrb[10].mxu0 %v14692_v62  ;;  %11361 = vmatpush1.bf16.msra.mxu1 %v11360_v25 }
 0x3cc   : > { %11625 = vmatpush1.bf16.msra.mxu0 %v11624_v60  ;;  %11363 = vmatprep.subr.bf16.mxu1 %v11362_v29 }
 0x3cd   : > { %11627 = vmatprep.subr.bf16.mxu0 %v11626_v18  ;;  %10583 = vmatprep.mubr.f32.mxu0 %v14632_v24 }
 0x3cf   : > { %11365 = vmatpush1.bf16.msra.mxu1 %v11364_v15 }
 0x3d0   : > { %11629 = vmatpush1.bf16.msra.mxu0 %v11628_v42  ;;  %11367 = vmatprep.subr.bf16.mxu1 %v14699_v50 }
 0x3d1   : > { %11631 = vmatprep.subr.bf16.mxu0 %v11630_v21 }
 0x3d2   : > { %9483 = vmatmul.mubr.f32.vlgmr.msra.gmra.mrb[100].mxu1 %v14700_v4 }
 0x3d3   : > { %11369 = vmatpush1.bf16.msra.mxu1 %v14701_v7  ;;  %9620 = vmatprep.mubr.f32.mxu1 %v14702_v33 }
 0x3d4   : > { %11633 = vmatpush1.bf16.msra.mxu0 %v11632_v40  ;;  %11371 = vmatprep.subr.bf16.mxu1 %v14703_v52 }
 0x3d5   : > { %11635 = vmatprep.subr.bf16.mxu0 %v11634_v26 }
 0x3d7   : > { %11373 = vmatpush1.bf16.msra.mxu1 %v14704_v0 }
 0x3d8   : > { %11637 = vmatpush1.bf16.msra.mxu0 %v11636_v27  ;;  %11375 = vmatprep.subr.bf16.mxu1 %v14705_v45 }
 0x3d9   : > { %11639 = vmatprep.subr.bf16.mxu0 %v14665_v31  ;;  %v14719_v31 = vld [vmem:[#allocation61_spill] sm:$0xff] }
 0x3db   : > { %10585 = vmatmul.mubr.f32.vlgmr.msra.gmra.mrb[10].mxu0 %v14648_v51  ;;  %11377 = vmatpush1.bf16.msra.mxu1 %v14706_v48 }
 0x3dc   : > { %11641 = vmatpush1.bf16.msra.mxu0 %v14669_v55  ;;  %11379 = vmatprep.subr.bf16.mxu1 %v14707_v23  ;;  %v14721_v55 = vld [vmem:[#allocation66_spill] sm:$0xff] }
 0x3dd   : > { %11643 = vmatprep.subr.bf16.mxu0 %v14672_v59  ;;  %10671 = vmatprep.mubr.f32.mxu0 %v14632_v24  ;;  %v14713_v24 = vld [vmem:[#allocation43_spill] sm:$0xff] }
 0x3de   : > { %v14724_v59 = vld [vmem:[#allocation75_spill] sm:$0xff] }
 0x3df   : > { %11381 = vmatpush1.bf16.msra.mxu1 %v14708_v19 }
 0x3e0   : > { %11645 = vmatpush1.bf16.msra.mxu0 %v14675_v1  ;;  %11383 = vmatprep.subr.bf16.mxu1 %v14709_v56  ;;  %v14725_v1 = vld [vmem:[#allocation76_spill] sm:$0xff] }
 0x3e1   : > { %11647 = vmatprep.subr.bf16.mxu0 %v13794_v44  ;;  %v14716_v44 = vld [vmem:[#allocation53_spill] sm:$0xff] }
 0x3e3   : > { %11385 = vmatpush1.bf16.msra.mxu1 %v14710_v35 }
 0x3e4   : > { %11649 = vmatpush1.bf16.msra.mxu0 %v13809_v47  ;;  %11387 = vmatprep.subr.bf16.mxu1 %v14711_v38  ;;  %v14718_v47 = vld [vmem:[#allocation58_spill] sm:$0xff] }
 0x3e5   : > { %11651 = vmatprep.subr.bf16.mxu0 %v13824_v58  ;;  %v14720_v58 = vld [vmem:[#allocation64_spill] sm:$0xff] }
 0x3e7   : > { %11389 = vmatpush1.bf16.msra.mxu1 %v14712_v28 }
 0x3e8   : > { %11653 = vmatpush1.bf16.msra.mxu0 %v13848_v5  ;;  %11391 = vmatprep.subr.bf16.mxu1 %v14713_v24  ;;  %v14722_v5 = vld [vmem:[#allocation70_spill] sm:$0xff] }
 0x3eb   : > { %10673 = vmatmul.mubr.f32.vlgmr.msra.gmra.mrb[10].mxu0 %v14648_v51  ;;  %11393 = vmatpush1.bf16.msra.mxu1 %v14714_v39  ;;  %v14723_v51 = vld [vmem:[#allocation72_spill] sm:$0xff] }
 0x3ec   : > { %11395 = vmatprep.subr.bf16.mxu1 %v14715_v36 }
 0x3ef   : > { %11397 = vmatpush1.bf16.msra.mxu1 %v14716_v44 }
 0x3f0   : > { %11399 = vmatprep.subr.bf16.mxu1 %v14717_v34 }
 0x3f3   : > { %11401 = vmatpush1.bf16.msra.mxu1 %v14718_v47 }
 0x3f4   : > { %11403 = vmatprep.subr.bf16.mxu1 %v14719_v31 }
 0x3f7   : > { %11405 = vmatpush1.bf16.msra.mxu1 %v14720_v58 }
 0x3f8   : > { %11407 = vmatprep.subr.bf16.mxu1 %v14721_v55 }
 0x3fb   : > { %11409 = vmatpush1.bf16.msra.mxu1 %v14722_v5 }
 0x3fc   : > { %11411 = vmatprep.subr.bf16.mxu1 %v14723_v51 }
 0x3ff   : > { %11413 = vmatpush1.bf16.msra.mxu1 %v14724_v59 }
 0x400   : > { %11415 = vmatprep.subr.bf16.mxu1 %v14725_v1 }
 0x403   : > { %11417 = vmatpush1.bf16.msra.mxu1 %v14726_v54 }
 0x404   : > { %11419 = vmatprep.subr.bf16.mxu1 %v14727_v32 }
 0x407   : > { %11421 = vmatpush1.bf16.msra.mxu1 %v14728_v22 }
 0x408   : > { %11423 = vmatprep.subr.bf16.mxu1 %v14729_v2 }
 0x40b   : > { %11425 = vmatpush1.bf16.msra.mxu1 %v14730_v6 }
 0x40c   : > { %11427 = vmatprep.subr.bf16.mxu1 %v14731_v16 }
 0x40f   : > { %11429 = vmatpush1.bf16.msra.mxu1 %v14732_v20 }
 0x412   : > { %9624 = vmatmul.mubr.f32.vlgmr.msra.gmra.mrb[100].mxu1 %v14733_v30 }
 0x4be   : > { %v10674_v3 = vpop.f32.mrb[10].mxu0 }
 0x4bf   : > { %v10676_v63 = vpop.f32.mrb[11].mxu0 }
 0x4e5   : > { %v9625_v37 = vpop.f32.mrb[100].mxu1 }
 0x4e6   : > { %v11654_v57 = vadd.f32 %v10674_v3, %v9625_v37  ;;  %v9627_v61 = vpop.f32.mrb[101].mxu1 }
 0x4e7   : > { %v11655_v46 = vadd.f32 %v10676_v63, %v9627_v61 }
 0x4e8   : > { %v10679_v25 = vmax.f32 %v11654_v57, 0.0 }
 0x4e9   : > { %v10680_v49 = vmax.f32 %v11655_v46, 0.0 }
 0x4eb   : > { %v10683_v11 = vcombine.low %v10679_v25, %v10680_v49 }
 0x4ed   : > { %10685 = vst [vmem:[%s205_s5] sm:$0xff] %v10683_v11 }
 0x4ee   : > { %11890 = shalt.err (!%p11887_p7)
}
 0x4ef   : > { %s11891_s11 = scalar_lea.hbm %s14071_s29, 128  ;;  %s11895_s14 = scalar_lea.hbm %s14117_s4, 256 }
 0x4f0   : > { %p11892_p8 = scmp.ne.s32.totalorder %s14071_s29, %s11891_s11  ;;  %p11896_p1 = scmp.lt.u32.totalorder %s14071_s29, %s14117_s4 }
 0x4f1   : > { %p11897_p0 = scmp.lt.u32.totalorder %s11895_s14, %s11891_s11  ;;  %p11899_p6 = scmp.lt.u32.totalorder %s11891_s11, %s14071_s29 }
 0x4f2   : > { %p11893_p11 = pnand %p11892_p8, %p14734_p9 }
 0x4f3   : > { %p11898_p5 = por %p11897_p0, %p11896_p1 }
 0x4f4   : > { %p11894_p13 = pneg %p11893_p11 }
 0x4f5   : > { %p11900_p10 = por %p11899_p6, %p11898_p5 }
 0x4f7   : > { %p11901_p12 = pnand %p11900_p10, %p11894_p13 }
 0x4f9   : > { %11904 = shalt.err (!%p11901_p12)
}
 0x4fa   : > { %11786 = dma.vmem_to_hbm [thread:$0]  (%p14734_p9), %s14073_s30, 128, %s14071_s29, %s10687_s7  }
 0x4fb PF: > { %p11798_p2 = scmp.ge.s32.totalorder %s11943_s18, 2  ;;  %s10713_s23 = sand.u32 1, %s11931_s15  }
 0x4fc   : > { %p14735_p3 = scmp.ne.s32.totalorder %s14361_s26, 0  ;;  %s10714_s28 = scalar_lea.sflag [#allocation4], %s10713_s23 }
 0x4fe   : > { %p11793_p4 = pnand %p11798_p2, %p14735_p3 }
 0x500   : > { %11926 = dma.done.wait (!%p11793_p4), %s10714_s28, 128  }
 0x501   : > { %11928 = vsyncadd (!%p11793_p4), %s10714_s28, 4294967168  ;;  %p15_p7 = scmp.ge.s32.totalorder %s12010_s21, 4   ;;  %s14736_s15 = smov %s11935_s16 }
 0x502   : > { %s14737_s16 = smov %s11939_s17  ;;  %s14738_s17 = smov %s12021_s24 }
 0x503   : > { %s14739_s18 = smov %s12010_s21  ;;  %17 = sbr.rel (!%p15_p7) target bundleno = 4 (0x4), region = 84 }
 0x50a   :  { %10719 = vsyncpa [#allocation3], 1 }
 0x50b   :  { %10721 = vsyncpa [#allocation3 + $0x1], 1 }
 0x50c   :  { %10722 = vsyncpa [#allocation4], 1 }
 0x50d   :  { %10724 = vsyncpa [#allocation4 + $0x1], 1 }

</bundles_post_ra>
